<compile_context>
chip_gen: v7x
topology: tpu7x:2x2x1
jax: 0.10.0
libtpu: 0.0.40
codegen_flags: <defaults>
</compile_context>

<pallas_src>
import numpy as np
import jax
import jax.numpy as jnp
from jax.experimental import pallas as pl
from jax.experimental.pallas import tpu as pltpu

# ---------------- configuration (small, consistent with the module) ---------
ENC_NTOK = 20
DEC_NTOK = 24
INPUT_SIZE = 32          # must equal HIDDEN (decoder LSTM takes hidden_size input)
HIDDEN = 32
IN_MAX_LEN = 10          # L  (encoder / source length)
OUT_MAX_LEN = 8          # T  (decoder / target length)
BATCH = 4
NLAYERS = 1

N_STEPS = OUT_MAX_LEN - 1        # 7 decoder steps actually consumed
NJ = 32                          # N_STEPS*BATCH (=28) padded to a sublane-tile multiple
VPAD = 128                       # vocab padded to one full lane width
NEG_PAD = -1e30                  # bias for padded vocab lanes (vanishes under softmax)
EMB_DEC_OFF = 48                 # decoder rows offset inside the emb slab (multiple of 16)


# ---------------- constant 0/1 selector (built once with numpy) --------------
def _build_rep():
    """Row r = l*NJ + t*B + b has ones at columns (l*B+b) and (L*B + t*B+b).

    rep @ [enc_conv ; dproj] -> att_in  (= enc_conv[l,b,:] + dproj[t,b,:])
    rep @ [enc_out  ; 0    ] -> enc_out replicated to the same rows.
    Pad rows (t*B+b >= 28 within each 32-row block) are all-zero.
    """
    rep = np.zeros((IN_MAX_LEN * NJ, IN_MAX_LEN * BATCH + N_STEPS * BATCH),
                   np.float32)
    for l in range(IN_MAX_LEN):
        for t in range(N_STEPS):
            for b in range(BATCH):
                r = l * NJ + t * BATCH + b
                rep[r, l * BATCH + b] = 1.0
                rep[r, IN_MAX_LEN * BATCH + t * BATCH + b] = 1.0
    return rep


REP_NP = _build_rep()


# ---------------- single fused kernel ----------------------------------------
def seq2seq_kernel(emb_ref, lstm_w_ref, att_w_ref, out_w_ref, rep_ref,
                   pred_ref, enc_scr, dec_scr):
    B, H, L, TS = BATCH, HIDDEN, IN_MAX_LEN, N_STEPS
    f32 = jnp.float32

    # Packed LSTM weights (bf16), gate column order [i | f | o | g].
    wih_e = lstm_w_ref[0:H, :]
    whh_e = lstm_w_ref[H:2 * H, :]
    wih_d = lstm_w_ref[2 * H:3 * H, :]
    whh_d = lstm_w_ref[3 * H:4 * H, :]

    def lstm(xg, whh, h, c, nsteps, scr):
        # xg: (nsteps*B, 4H) f32 -- input projection hoisted out of the
        # recurrence; the per-step body only does h @ W_hh on the MXU.
        for t in range(nsteps):
            g = xg[t * B:(t + 1) * B, :] + jnp.dot(
                h.astype(jnp.bfloat16), whh, preferred_element_type=f32)
            ifo = jax.nn.sigmoid(g[:, 0:3 * H])      # i, f, o in one EUP push
            gg = jnp.tanh(g[:, 3 * H:4 * H])
            c = ifo[:, H:2 * H] * c + ifo[:, 0:H] * gg
            h = ifo[:, 2 * H:3 * H] * jnp.tanh(c)
            scr[t * B:(t + 1) * B, :] = h            # bound vreg live ranges
        return h, c

    zero = jnp.zeros((B, H), f32)

    # ---- encoder (batched input projection, then 10 recurrence steps) ----
    xg_e = jnp.dot(emb_ref[0:L * B, :], wih_e, preferred_element_type=f32)
    h_e, c_e = lstm(xg_e, whh_e, zero, zero, L, enc_scr)

    # ---- decoder: only T-1 steps are ever consumed ----
    xg_d = jnp.dot(emb_ref[EMB_DEC_OFF:EMB_DEC_OFF + TS * B, :], wih_d,
                   preferred_element_type=f32)
    lstm(xg_d, whh_d, h_e, c_e, TS, dec_scr)

    # ---- attention + prediction, batched over all (step, batch) pairs ----
    conv_w = att_w_ref[0:H, :]            # (H, H)   enc_out @ conv_w
    wd = att_w_ref[H:2 * H, :]            # (H, H)   dh @ wd
    wa_dec = att_w_ref[2 * H:3 * H, :]
    wa_ctx = att_w_ref[3 * H:4 * H, :]
    attw_sel = att_w_ref[4 * H:5 * H, :]  # (H, H), column 0 = att_weight

    wl = out_w_ref[0:H, :]                # (H, VPAD)
    bl = out_w_ref[H:H + 1, :]            # (1, VPAD), padded lanes = -1e30
    cb_bd = out_w_ref[40:41, 0:H]         # (1, H)   conv bias + attn_dec bias
    ba = out_w_ref[48:49, 0:H]            # (1, H)   attn_linear bias

    enc_out = enc_scr[...]                # (L*B, H)   dense reload
    dh_all = dec_scr[...]                 # (TS*B, H)

    enc_conv = jnp.dot(enc_out, conv_w, preferred_element_type=f32) + cb_bd
    dproj = jnp.dot(dh_all, wd, preferred_element_type=f32)

    # Gather + pairwise add via the constant selector (f32, exact 0/1).
    rep = rep_ref[...]                                            # (L*NJ, 68)
    s1 = jnp.concatenate([enc_conv, dproj], axis=0)               # (68, H)
    s2 = jnp.concatenate([enc_out, jnp.zeros((TS * B, H), f32)], axis=0)

    att_in = jnp.dot(rep, s1, preferred_element_type=f32)         # (320, H)
    enc_rep = jnp.dot(rep, s2, preferred_element_type=f32)        # (320, H)

    att_val = jnp.tanh(att_in)
    scores = jnp.dot(att_val, attw_sel, preferred_element_type=f32)[:, 0:1]
    # softmax over L without the max shift: |scores| <= H*|tanh|*|w| is tiny.
    e = jnp.exp(scores)                                            # (320, 1)
    weighted = e * enc_rep                                         # (320, H)

    # Sum the 10 aligned 32-row source blocks -> unnormalized ctx + denom.
    acc_c = weighted[0:NJ, :]
    acc_e = e[0:NJ, :]
    for l in range(1, L):
        acc_c = acc_c + weighted[l * NJ:(l + 1) * NJ, :]
        acc_e = acc_e + e[l * NJ:(l + 1) * NJ, :]
    ctx = acc_c[0:TS * B, :] / acc_e[0:TS * B, :]                  # (TS*B, H)

    # attn_linear(cat(dec_h, ctx)) split to avoid an in-kernel concat.
    x = (jnp.dot(dh_all, wa_dec, preferred_element_type=f32)
         + jnp.dot(ctx, wa_ctx, preferred_element_type=f32) + ba)  # (TS*B, H)

    # Output projection (vocab padded to 128 lanes) + log-softmax, one store.
    logits = jnp.dot(x, wl, preferred_element_type=f32) + bl       # (TS*B, VPAD)
    m = jnp.max(logits, axis=1, keepdims=True)
    sh = logits - m
    lse = jnp.log(jnp.sum(jnp.exp(sh), axis=1, keepdims=True))
    pred_ref[...] = sh - lse


# ---------------- wrapper (single pallas_call) --------------------------------
def _pack_lstm(w):
    """torch (4H, In) rows [i; f; g; o]  ->  (In, 4H) columns [i | f | o | g]."""
    H = HIDDEN
    return jnp.concatenate([w[0:H], w[H:2 * H], w[3 * H:4 * H], w[2 * H:3 * H]],
                           axis=0).T


@jax.jit
def seq2seq_forward(params, encoder_inputs, decoder_inputs):
    """encoder_inputs: (L, B) int32, decoder_inputs: (T, B) int32.
    Returns stacked log-softmax predictions (T-1, B, DEC_NTOK)."""
    L, B = encoder_inputs.shape
    T = decoder_inputs.shape[0]
    H, V, In = HIDDEN, DEC_NTOK, INPUT_SIZE
    TS = T - 1

    # Embedding gathers in XLA, flattened to 2D and packed into one bf16 slab.
    enc_emb = params["enc_embedding"][encoder_inputs].reshape(L * B, In)
    dec_emb = params["dec_embedding"][decoder_inputs[:TS]].reshape(TS * B, In)
    emb = jnp.zeros((EMB_DEC_OFF + TS * B, In), jnp.bfloat16)
    emb = emb.at[0:L * B].set(enc_emb.astype(jnp.bfloat16))
    emb = emb.at[EMB_DEC_OFF:EMB_DEC_OFF + TS * B].set(dec_emb.astype(jnp.bfloat16))

    # Packed LSTM weight slab (bf16): [wih_e; whh_e; wih_d; whh_d].
    lstm_w = jnp.concatenate([
        _pack_lstm(params["enc_w_ih"]), _pack_lstm(params["enc_w_hh"]),
        _pack_lstm(params["dec_w_ih"]), _pack_lstm(params["dec_w_hh"]),
    ], axis=0).astype(jnp.bfloat16)                                # (128, 128)

    # Attention weight slab (f32): [conv_w^T; wd^T; wa_dec; wa_ctx; attw_sel].
    conv_w_t = params["attn_conv_w"].reshape(H, H).T
    wd_t = params["attn_dec_w"].T
    wa_t = params["attn_linear_w"].T                               # (2H, H)
    attw_sel = jnp.zeros((H, H), jnp.float32).at[:, 0].set(params["att_weight"][:, 0])
    att_w = jnp.concatenate([conv_w_t, wd_t, wa_t[:H], wa_t[H:], attw_sel],
                            axis=0)                                # (160, 32)

    # Output projection / bias slab (f32, 128 lanes).
    wl_pad = jnp.zeros((H, VPAD), jnp.float32).at[:, :V].set(params["linear_w"].T)
    bl_pad = jnp.full((1, VPAD), NEG_PAD, jnp.float32).at[0, :V].set(params["linear_b"])
    out_w = jnp.zeros((56, VPAD), jnp.float32)
    out_w = out_w.at[0:H].set(wl_pad)
    out_w = out_w.at[H:H + 1].set(bl_pad)
    out_w = out_w.at[40, 0:H].set(params["attn_conv_b"] + params["attn_dec_b"])
    out_w = out_w.at[48, 0:H].set(params["attn_linear_b"])

    rep = jnp.asarray(REP_NP)                                      # (320, 68)

    pred = pl.pallas_call(
        seq2seq_kernel,
        out_shape=jax.ShapeDtypeStruct((TS * B, VPAD), jnp.float32),
        scratch_shapes=[
            pltpu.VMEM((L * B, H), jnp.float32),       # encoder outputs
            pltpu.VMEM((TS * B, H), jnp.float32),      # decoder outputs
        ],
    )(emb, lstm_w, att_w, out_w, rep)

    return pred.reshape(TS, B, VPAD)[:, :, :V]                     # (T-1, B, V)


# ---------------- pure-JAX reference (for verification) ----------------------
def lstm_ref(x, h0, c0, w_ih, w_hh):
    H = h0.shape[-1]

    def step(carry, xt):
        h, c = carry
        g = xt @ w_ih.T + h @ w_hh.T
        i = jax.nn.sigmoid(g[:, :H])
        f = jax.nn.sigmoid(g[:, H:2 * H])
        gg = jnp.tanh(g[:, 2 * H:3 * H])
        o = jax.nn.sigmoid(g[:, 3 * H:])
        c = f * c + i * gg
        h = o * jnp.tanh(c)
        return (h, c), h

    (hN, cN), outs = jax.lax.scan(step, (h0, c0), x)
    return outs, hN, cN


def seq2seq_ref(params, enc_in, dec_in):
    enc_emb = params["enc_embedding"][enc_in]
    h0 = jnp.zeros((BATCH, HIDDEN), jnp.float32)
    c0 = jnp.zeros_like(h0)
    enc_out, hN, cN = lstm_ref(enc_emb, h0, c0,
                               params["enc_w_ih"], params["enc_w_hh"])
    dec_emb = params["dec_embedding"][dec_in]
    dec_out, _, _ = lstm_ref(dec_emb, hN, cN,
                             params["dec_w_ih"], params["dec_w_hh"])
    conv_w = params["attn_conv_w"].reshape(HIDDEN, HIDDEN)
    enc_conv = enc_out @ conv_w.T + params["attn_conv_b"]
    preds = []
    for t in range(OUT_MAX_LEN - 1):
        dh = dec_out[t]
        dproj = dh @ params["attn_dec_w"].T + params["attn_dec_b"]
        att_val = jnp.tanh(enc_conv + dproj[None])
        scores = jnp.einsum("lbh,h->lb", att_val, params["att_weight"][:, 0])
        attn = jax.nn.softmax(scores, axis=0)
        ctx = jnp.einsum("lb,lbh->bh", attn, enc_out)
        x = (jnp.concatenate([dh, ctx], axis=1) @ params["attn_linear_w"].T
             + params["attn_linear_b"])
        logits = x @ params["linear_w"].T + params["linear_b"]
        preds.append(jax.nn.log_softmax(logits, axis=1))
    return jnp.stack(preds)


# ---------------- deterministic parameter init --------------------------------
def init_params(key):
    def u(key, shape):
        return jax.random.uniform(key, shape, jnp.float32, -0.1, 0.1)

    ks = jax.random.split(key, 16)
    H, In, V = HIDDEN, INPUT_SIZE, DEC_NTOK
    return {
        "enc_embedding": u(ks[0], (ENC_NTOK, In)),
        "enc_w_ih": u(ks[1], (4 * H, In)),
        "enc_w_hh": u(ks[2], (4 * H, H)),
        "dec_embedding": u(ks[3], (DEC_NTOK, In)),
        "dec_w_ih": u(ks[4], (4 * H, H)),
        "dec_w_hh": u(ks[5], (4 * H, H)),
        "attn_dec_w": u(ks[6], (H, H)),
        "attn_dec_b": u(ks[7], (H,)),
        "attn_linear_w": u(ks[8], (H, 2 * H)),
        "attn_linear_b": u(ks[9], (H,)),
        "att_weight": u(ks[10], (H, 1)),
        "attn_conv_w": u(ks[11], (H, 1, 1, H)),
        "attn_conv_b": u(ks[12], (H,)),
        "linear_w": u(ks[13], (V, H)),
        "linear_b": u(ks[14], (V,)),
    }


if __name__ == "__main__":
    key = jax.random.PRNGKey(0)
    pkey, k_enc, k_dec = jax.random.split(key, 3)
    params = init_params(pkey)

    encoder_inputs = jax.random.randint(k_enc, (IN_MAX_LEN, BATCH), 0, ENC_NTOK,
                                        dtype=jnp.int32)
    decoder_inputs = jax.random.randint(k_dec, (OUT_MAX_LEN, BATCH), 0, DEC_NTOK,
                                        dtype=jnp.int32)

    pred = jax.block_until_ready(
        seq2seq_forward(params, encoder_inputs, decoder_inputs))
    ref = jax.block_until_ready(
        seq2seq_ref(params, encoder_inputs, decoder_inputs))

    assert pred.shape == (OUT_MAX_LEN - 1, BATCH, DEC_NTOK), pred.shape
    assert np.allclose(np.asarray(pred), np.asarray(ref), atol=2e-2, rtol=2e-2), (
        "mismatch vs reference")

    print("KERNEL_OK")
</pallas_src>

<mosaic_0001>
module attributes {stable_mosaic.version = 11 : i64} {
  func.func @seq2seq_kernel(%arg0: memref<76x32xbf16, #tpu.memory_space<vmem>>, %arg1: memref<128x128xbf16, #tpu.memory_space<vmem>>, %arg2: memref<160x32xf32, #tpu.memory_space<vmem>>, %arg3: memref<56x128xf32, #tpu.memory_space<vmem>>, %arg4: memref<320x68xf32, #tpu.memory_space<vmem>>, %arg5: memref<28x128xf32, #tpu.memory_space<vmem>>, %arg6: memref<40x32xf32, #tpu.memory_space<vmem>>, %arg7: memref<28x32xf32, #tpu.memory_space<vmem>>) attributes {dimension_semantics = [], scalar_prefetch = 0 : i64, scratch_operands = 2 : i64, tpu.core_type = #tpu.core_type<tc>} {
    %c0 = arith.constant 0 : index
    %c0_0 = arith.constant 0 : index
    %0 = vector.load %arg1[%c0, %c0_0] : memref<128x128xbf16, #tpu.memory_space<vmem>>, vector<32x128xbf16>
    %c32 = arith.constant 32 : index
    %c0_1 = arith.constant 0 : index
    %1 = vector.load %arg1[%c32, %c0_1] : memref<128x128xbf16, #tpu.memory_space<vmem>>, vector<32x128xbf16>
    %c64 = arith.constant 64 : index
    %c0_2 = arith.constant 0 : index
    %2 = vector.load %arg1[%c64, %c0_2] : memref<128x128xbf16, #tpu.memory_space<vmem>>, vector<32x128xbf16>
    %c96 = arith.constant 96 : index
    %c0_3 = arith.constant 0 : index
    %3 = vector.load %arg1[%c96, %c0_3] : memref<128x128xbf16, #tpu.memory_space<vmem>>, vector<32x128xbf16>
    %cst = arith.constant 0.000000e+00 : f32
    %4 = vector.broadcast %cst : f32 to vector<4x32xf32>
    %c0_4 = arith.constant 0 : index
    %c0_5 = arith.constant 0 : index
    %5 = vector.load %arg0[%c0_4, %c0_5] : memref<76x32xbf16, #tpu.memory_space<vmem>>, vector<40x32xbf16>
    %cst_6 = arith.constant dense<0.000000e+00> : vector<40x128xf32>
    %6 = tpu.matmul %5, %0, %cst_6 {dimension_numbers = #tpu.dot_dimension_numbers<[1], [0], [0], [1], [0, 0, 1, 1], [], []>} : vector<40x32xbf16>, vector<32x128xbf16>, vector<40x128xf32> -> vector<40x128xf32>
    %7 = vector.extract_strided_slice %6 {offsets = [0, 0], sizes = [4, 128], strides = [1, 1]} : vector<40x128xf32> to vector<4x128xf32>
    %8 = arith.truncf %4 : vector<4x32xf32> to vector<4x32xbf16>
    %cst_7 = arith.constant dense<0.000000e+00> : vector<4x128xf32>
    %9 = tpu.matmul %8, %1, %cst_7 {dimension_numbers = #tpu.dot_dimension_numbers<[1], [0], [0], [1], [0, 0, 1, 1], [], []>} : vector<4x32xbf16>, vector<32x128xbf16>, vector<4x128xf32> -> vector<4x128xf32>
    %10 = arith.addf %7, %9 : vector<4x128xf32>
    %11 = vector.extract_strided_slice %10 {offsets = [0, 0], sizes = [4, 96], strides = [1, 1]} : vector<4x128xf32> to vector<4x96xf32>
    %12 = arith.negf %11 : vector<4x96xf32>
    %13 = math.exp %12 : vector<4x96xf32>
    %cst_8 = arith.constant 1.000000e+00 : f32
    %14 = vector.broadcast %cst_8 : f32 to vector<4x96xf32>
    %15 = arith.addf %14, %13 : vector<4x96xf32>
    %16 = arith.divf %14, %15 : vector<4x96xf32>
    %17 = vector.extract_strided_slice %10 {offsets = [0, 96], sizes = [4, 32], strides = [1, 1]} : vector<4x128xf32> to vector<4x32xf32>
    %18 = math.tanh %17 : vector<4x32xf32>
    %19 = vector.extract_strided_slice %16 {offsets = [0, 32], sizes = [4, 32], strides = [1, 1]} : vector<4x96xf32> to vector<4x32xf32>
    %20 = arith.mulf %19, %4 : vector<4x32xf32>
    %21 = vector.extract_strided_slice %16 {offsets = [0, 0], sizes = [4, 32], strides = [1, 1]} : vector<4x96xf32> to vector<4x32xf32>
    %22 = arith.mulf %21, %18 : vector<4x32xf32>
    %23 = arith.addf %20, %22 : vector<4x32xf32>
    %24 = vector.extract_strided_slice %16 {offsets = [0, 64], sizes = [4, 32], strides = [1, 1]} : vector<4x96xf32> to vector<4x32xf32>
    %25 = math.tanh %23 : vector<4x32xf32>
    %26 = arith.mulf %24, %25 : vector<4x32xf32>
    %c0_9 = arith.constant 0 : index
    %c0_10 = arith.constant 0 : index
    %27 = vector.load %arg6[%c0_9, %c0_10] : memref<40x32xf32, #tpu.memory_space<vmem>>, vector<4x32xf32>
    tpu.vector_store %arg6[%c0_9, %c0_10], %26 {strides = array<i32>} : memref<40x32xf32, #tpu.memory_space<vmem>>, vector<4x32xf32>,
    %28 = vector.extract_strided_slice %6 {offsets = [4, 0], sizes = [4, 128], strides = [1, 1]} : vector<40x128xf32> to vector<4x128xf32>
    %29 = arith.truncf %26 : vector<4x32xf32> to vector<4x32xbf16>
    %cst_11 = arith.constant dense<0.000000e+00> : vector<4x128xf32>
    %30 = tpu.matmul %29, %1, %cst_11 {dimension_numbers = #tpu.dot_dimension_numbers<[1], [0], [0], [1], [0, 0, 1, 1], [], []>} : vector<4x32xbf16>, vector<32x128xbf16>, vector<4x128xf32> -> vector<4x128xf32>
    %31 = arith.addf %28, %30 : vector<4x128xf32>
    %32 = vector.extract_strided_slice %31 {offsets = [0, 0], sizes = [4, 96], strides = [1, 1]} : vector<4x128xf32> to vector<4x96xf32>
    %33 = arith.negf %32 : vector<4x96xf32>
    %34 = math.exp %33 : vector<4x96xf32>
    %cst_12 = arith.constant 1.000000e+00 : f32
    %35 = vector.broadcast %cst_12 : f32 to vector<4x96xf32>
    %36 = arith.addf %35, %34 : vector<4x96xf32>
    %37 = arith.divf %35, %36 : vector<4x96xf32>
    %38 = vector.extract_strided_slice %31 {offsets = [0, 96], sizes = [4, 32], strides = [1, 1]} : vector<4x128xf32> to vector<4x32xf32>
    %39 = math.tanh %38 : vector<4x32xf32>
    %40 = vector.extract_strided_slice %37 {offsets = [0, 32], sizes = [4, 32], strides = [1, 1]} : vector<4x96xf32> to vector<4x32xf32>
    %41 = arith.mulf %40, %23 : vector<4x32xf32>
    %42 = vector.extract_strided_slice %37 {offsets = [0, 0], sizes = [4, 32], strides = [1, 1]} : vector<4x96xf32> to vector<4x32xf32>
    %43 = arith.mulf %42, %39 : vector<4x32xf32>
    %44 = arith.addf %41, %43 : vector<4x32xf32>
    %45 = vector.extract_strided_slice %37 {offsets = [0, 64], sizes = [4, 32], strides = [1, 1]} : vector<4x96xf32> to vector<4x32xf32>
    %46 = math.tanh %44 : vector<4x32xf32>
    %47 = arith.mulf %45, %46 : vector<4x32xf32>
    %c4 = arith.constant 4 : index
    %c0_13 = arith.constant 0 : index
    %48 = vector.load %arg6[%c4, %c0_13] : memref<40x32xf32, #tpu.memory_space<vmem>>, vector<4x32xf32>
    tpu.vector_store %arg6[%c4, %c0_13], %47 {strides = array<i32>} : memref<40x32xf32, #tpu.memory_space<vmem>>, vector<4x32xf32>,
    %49 = vector.extract_strided_slice %6 {offsets = [8, 0], sizes = [4, 128], strides = [1, 1]} : vector<40x128xf32> to vector<4x128xf32>
    %50 = arith.truncf %47 : vector<4x32xf32> to vector<4x32xbf16>
    %cst_14 = arith.constant dense<0.000000e+00> : vector<4x128xf32>
    %51 = tpu.matmul %50, %1, %cst_14 {dimension_numbers = #tpu.dot_dimension_numbers<[1], [0], [0], [1], [0, 0, 1, 1], [], []>} : vector<4x32xbf16>, vector<32x128xbf16>, vector<4x128xf32> -> vector<4x128xf32>
    %52 = arith.addf %49, %51 : vector<4x128xf32>
    %53 = vector.extract_strided_slice %52 {offsets = [0, 0], sizes = [4, 96], strides = [1, 1]} : vector<4x128xf32> to vector<4x96xf32>
    %54 = arith.negf %53 : vector<4x96xf32>
    %55 = math.exp %54 : vector<4x96xf32>
    %cst_15 = arith.constant 1.000000e+00 : f32
    %56 = vector.broadcast %cst_15 : f32 to vector<4x96xf32>
    %57 = arith.addf %56, %55 : vector<4x96xf32>
    %58 = arith.divf %56, %57 : vector<4x96xf32>
    %59 = vector.extract_strided_slice %52 {offsets = [0, 96], sizes = [4, 32], strides = [1, 1]} : vector<4x128xf32> to vector<4x32xf32>
    %60 = math.tanh %59 : vector<4x32xf32>
    %61 = vector.extract_strided_slice %58 {offsets = [0, 32], sizes = [4, 32], strides = [1, 1]} : vector<4x96xf32> to vector<4x32xf32>
    %62 = arith.mulf %61, %44 : vector<4x32xf32>
    %63 = vector.extract_strided_slice %58 {offsets = [0, 0], sizes = [4, 32], strides = [1, 1]} : vector<4x96xf32> to vector<4x32xf32>
    %64 = arith.mulf %63, %60 : vector<4x32xf32>
    %65 = arith.addf %62, %64 : vector<4x32xf32>
    %66 = vector.extract_strided_slice %58 {offsets = [0, 64], sizes = [4, 32], strides = [1, 1]} : vector<4x96xf32> to vector<4x32xf32>
    %67 = math.tanh %65 : vector<4x32xf32>
    %68 = arith.mulf %66, %67 : vector<4x32xf32>
    %c8 = arith.constant 8 : index
    %c0_16 = arith.constant 0 : index
    %69 = vector.load %arg6[%c8, %c0_16] : memref<40x32xf32, #tpu.memory_space<vmem>>, vector<4x32xf32>
    tpu.vector_store %arg6[%c8, %c0_16], %68 {strides = array<i32>} : memref<40x32xf32, #tpu.memory_space<vmem>>, vector<4x32xf32>,
    %70 = vector.extract_strided_slice %6 {offsets = [12, 0], sizes = [4, 128], strides = [1, 1]} : vector<40x128xf32> to vector<4x128xf32>
    %71 = arith.truncf %68 : vector<4x32xf32> to vector<4x32xbf16>
    %cst_17 = arith.constant dense<0.000000e+00> : vector<4x128xf32>
    %72 = tpu.matmul %71, %1, %cst_17 {dimension_numbers = #tpu.dot_dimension_numbers<[1], [0], [0], [1], [0, 0, 1, 1], [], []>} : vector<4x32xbf16>, vector<32x128xbf16>, vector<4x128xf32> -> vector<4x128xf32>
    %73 = arith.addf %70, %72 : vector<4x128xf32>
    %74 = vector.extract_strided_slice %73 {offsets = [0, 0], sizes = [4, 96], strides = [1, 1]} : vector<4x128xf32> to vector<4x96xf32>
    %75 = arith.negf %74 : vector<4x96xf32>
    %76 = math.exp %75 : vector<4x96xf32>
    %cst_18 = arith.constant 1.000000e+00 : f32
    %77 = vector.broadcast %cst_18 : f32 to vector<4x96xf32>
    %78 = arith.addf %77, %76 : vector<4x96xf32>
    %79 = arith.divf %77, %78 : vector<4x96xf32>
    %80 = vector.extract_strided_slice %73 {offsets = [0, 96], sizes = [4, 32], strides = [1, 1]} : vector<4x128xf32> to vector<4x32xf32>
    %81 = math.tanh %80 : vector<4x32xf32>
    %82 = vector.extract_strided_slice %79 {offsets = [0, 32], sizes = [4, 32], strides = [1, 1]} : vector<4x96xf32> to vector<4x32xf32>
    %83 = arith.mulf %82, %65 : vector<4x32xf32>
    %84 = vector.extract_strided_slice %79 {offsets = [0, 0], sizes = [4, 32], strides = [1, 1]} : vector<4x96xf32> to vector<4x32xf32>
    %85 = arith.mulf %84, %81 : vector<4x32xf32>
    %86 = arith.addf %83, %85 : vector<4x32xf32>
    %87 = vector.extract_strided_slice %79 {offsets = [0, 64], sizes = [4, 32], strides = [1, 1]} : vector<4x96xf32> to vector<4x32xf32>
    %88 = math.tanh %86 : vector<4x32xf32>
    %89 = arith.mulf %87, %88 : vector<4x32xf32>
    %c12 = arith.constant 12 : index
    %c0_19 = arith.constant 0 : index
    %90 = vector.load %arg6[%c12, %c0_19] : memref<40x32xf32, #tpu.memory_space<vmem>>, vector<4x32xf32>
    tpu.vector_store %arg6[%c12, %c0_19], %89 {strides = array<i32>} : memref<40x32xf32, #tpu.memory_space<vmem>>, vector<4x32xf32>,
    %91 = vector.extract_strided_slice %6 {offsets = [16, 0], sizes = [4, 128], strides = [1, 1]} : vector<40x128xf32> to vector<4x128xf32>
    %92 = arith.truncf %89 : vector<4x32xf32> to vector<4x32xbf16>
    %cst_20 = arith.constant dense<0.000000e+00> : vector<4x128xf32>
    %93 = tpu.matmul %92, %1, %cst_20 {dimension_numbers = #tpu.dot_dimension_numbers<[1], [0], [0], [1], [0, 0, 1, 1], [], []>} : vector<4x32xbf16>, vector<32x128xbf16>, vector<4x128xf32> -> vector<4x128xf32>
    %94 = arith.addf %91, %93 : vector<4x128xf32>
    %95 = vector.extract_strided_slice %94 {offsets = [0, 0], sizes = [4, 96], strides = [1, 1]} : vector<4x128xf32> to vector<4x96xf32>
    %96 = arith.negf %95 : vector<4x96xf32>
    %97 = math.exp %96 : vector<4x96xf32>
    %cst_21 = arith.constant 1.000000e+00 : f32
    %98 = vector.broadcast %cst_21 : f32 to vector<4x96xf32>
    %99 = arith.addf %98, %97 : vector<4x96xf32>
    %100 = arith.divf %98, %99 : vector<4x96xf32>
    %101 = vector.extract_strided_slice %94 {offsets = [0, 96], sizes = [4, 32], strides = [1, 1]} : vector<4x128xf32> to vector<4x32xf32>
    %102 = math.tanh %101 : vector<4x32xf32>
    %103 = vector.extract_strided_slice %100 {offsets = [0, 32], sizes = [4, 32], strides = [1, 1]} : vector<4x96xf32> to vector<4x32xf32>
    %104 = arith.mulf %103, %86 : vector<4x32xf32>
    %105 = vector.extract_strided_slice %100 {offsets = [0, 0], sizes = [4, 32], strides = [1, 1]} : vector<4x96xf32> to vector<4x32xf32>
    %106 = arith.mulf %105, %102 : vector<4x32xf32>
    %107 = arith.addf %104, %106 : vector<4x32xf32>
    %108 = vector.extract_strided_slice %100 {offsets = [0, 64], sizes = [4, 32], strides = [1, 1]} : vector<4x96xf32> to vector<4x32xf32>
    %109 = math.tanh %107 : vector<4x32xf32>
    %110 = arith.mulf %108, %109 : vector<4x32xf32>
    %c16 = arith.constant 16 : index
    %c0_22 = arith.constant 0 : index
    %111 = vector.load %arg6[%c16, %c0_22] : memref<40x32xf32, #tpu.memory_space<vmem>>, vector<4x32xf32>
    tpu.vector_store %arg6[%c16, %c0_22], %110 {strides = array<i32>} : memref<40x32xf32, #tpu.memory_space<vmem>>, vector<4x32xf32>,
    %112 = vector.extract_strided_slice %6 {offsets = [20, 0], sizes = [4, 128], strides = [1, 1]} : vector<40x128xf32> to vector<4x128xf32>
    %113 = arith.truncf %110 : vector<4x32xf32> to vector<4x32xbf16>
    %cst_23 = arith.constant dense<0.000000e+00> : vector<4x128xf32>
    %114 = tpu.matmul %113, %1, %cst_23 {dimension_numbers = #tpu.dot_dimension_numbers<[1], [0], [0], [1], [0, 0, 1, 1], [], []>} : vector<4x32xbf16>, vector<32x128xbf16>, vector<4x128xf32> -> vector<4x128xf32>
    %115 = arith.addf %112, %114 : vector<4x128xf32>
    %116 = vector.extract_strided_slice %115 {offsets = [0, 0], sizes = [4, 96], strides = [1, 1]} : vector<4x128xf32> to vector<4x96xf32>
    %117 = arith.negf %116 : vector<4x96xf32>
    %118 = math.exp %117 : vector<4x96xf32>
    %cst_24 = arith.constant 1.000000e+00 : f32
    %119 = vector.broadcast %cst_24 : f32 to vector<4x96xf32>
    %120 = arith.addf %119, %118 : vector<4x96xf32>
    %121 = arith.divf %119, %120 : vector<4x96xf32>
    %122 = vector.extract_strided_slice %115 {offsets = [0, 96], sizes = [4, 32], strides = [1, 1]} : vector<4x128xf32> to vector<4x32xf32>
    %123 = math.tanh %122 : vector<4x32xf32>
    %124 = vector.extract_strided_slice %121 {offsets = [0, 32], sizes = [4, 32], strides = [1, 1]} : vector<4x96xf32> to vector<4x32xf32>
    %125 = arith.mulf %124, %107 : vector<4x32xf32>
    %126 = vector.extract_strided_slice %121 {offsets = [0, 0], sizes = [4, 32], strides = [1, 1]} : vector<4x96xf32> to vector<4x32xf32>
    %127 = arith.mulf %126, %123 : vector<4x32xf32>
    %128 = arith.addf %125, %127 : vector<4x32xf32>
    %129 = vector.extract_strided_slice %121 {offsets = [0, 64], sizes = [4, 32], strides = [1, 1]} : vector<4x96xf32> to vector<4x32xf32>
    %130 = math.tanh %128 : vector<4x32xf32>
    %131 = arith.mulf %129, %130 : vector<4x32xf32>
    %c20 = arith.constant 20 : index
    %c0_25 = arith.constant 0 : index
    %132 = vector.load %arg6[%c20, %c0_25] : memref<40x32xf32, #tpu.memory_space<vmem>>, vector<4x32xf32>
    tpu.vector_store %arg6[%c20, %c0_25], %131 {strides = array<i32>} : memref<40x32xf32, #tpu.memory_space<vmem>>, vector<4x32xf32>,
    %133 = vector.extract_strided_slice %6 {offsets = [24, 0], sizes = [4, 128], strides = [1, 1]} : vector<40x128xf32> to vector<4x128xf32>
    %134 = arith.truncf %131 : vector<4x32xf32> to vector<4x32xbf16>
    %cst_26 = arith.constant dense<0.000000e+00> : vector<4x128xf32>
    %135 = tpu.matmul %134, %1, %cst_26 {dimension_numbers = #tpu.dot_dimension_numbers<[1], [0], [0], [1], [0, 0, 1, 1], [], []>} : vector<4x32xbf16>, vector<32x128xbf16>, vector<4x128xf32> -> vector<4x128xf32>
    %136 = arith.addf %133, %135 : vector<4x128xf32>
    %137 = vector.extract_strided_slice %136 {offsets = [0, 0], sizes = [4, 96], strides = [1, 1]} : vector<4x128xf32> to vector<4x96xf32>
    %138 = arith.negf %137 : vector<4x96xf32>
    %139 = math.exp %138 : vector<4x96xf32>
    %cst_27 = arith.constant 1.000000e+00 : f32
    %140 = vector.broadcast %cst_27 : f32 to vector<4x96xf32>
    %141 = arith.addf %140, %139 : vector<4x96xf32>
    %142 = arith.divf %140, %141 : vector<4x96xf32>
    %143 = vector.extract_strided_slice %136 {offsets = [0, 96], sizes = [4, 32], strides = [1, 1]} : vector<4x128xf32> to vector<4x32xf32>
    %144 = math.tanh %143 : vector<4x32xf32>
    %145 = vector.extract_strided_slice %142 {offsets = [0, 32], sizes = [4, 32], strides = [1, 1]} : vector<4x96xf32> to vector<4x32xf32>
    %146 = arith.mulf %145, %128 : vector<4x32xf32>
    %147 = vector.extract_strided_slice %142 {offsets = [0, 0], sizes = [4, 32], strides = [1, 1]} : vector<4x96xf32> to vector<4x32xf32>
    %148 = arith.mulf %147, %144 : vector<4x32xf32>
    %149 = arith.addf %146, %148 : vector<4x32xf32>
    %150 = vector.extract_strided_slice %142 {offsets = [0, 64], sizes = [4, 32], strides = [1, 1]} : vector<4x96xf32> to vector<4x32xf32>
    %151 = math.tanh %149 : vector<4x32xf32>
    %152 = arith.mulf %150, %151 : vector<4x32xf32>
    %c24 = arith.constant 24 : index
    %c0_28 = arith.constant 0 : index
    %153 = vector.load %arg6[%c24, %c0_28] : memref<40x32xf32, #tpu.memory_space<vmem>>, vector<4x32xf32>
    tpu.vector_store %arg6[%c24, %c0_28], %152 {strides = array<i32>} : memref<40x32xf32, #tpu.memory_space<vmem>>, vector<4x32xf32>,
    %154 = vector.extract_strided_slice %6 {offsets = [28, 0], sizes = [4, 128], strides = [1, 1]} : vector<40x128xf32> to vector<4x128xf32>
    %155 = arith.truncf %152 : vector<4x32xf32> to vector<4x32xbf16>
    %cst_29 = arith.constant dense<0.000000e+00> : vector<4x128xf32>
    %156 = tpu.matmul %155, %1, %cst_29 {dimension_numbers = #tpu.dot_dimension_numbers<[1], [0], [0], [1], [0, 0, 1, 1], [], []>} : vector<4x32xbf16>, vector<32x128xbf16>, vector<4x128xf32> -> vector<4x128xf32>
    %157 = arith.addf %154, %156 : vector<4x128xf32>
    %158 = vector.extract_strided_slice %157 {offsets = [0, 0], sizes = [4, 96], strides = [1, 1]} : vector<4x128xf32> to vector<4x96xf32>
    %159 = arith.negf %158 : vector<4x96xf32>
    %160 = math.exp %159 : vector<4x96xf32>
    %cst_30 = arith.constant 1.000000e+00 : f32
    %161 = vector.broadcast %cst_30 : f32 to vector<4x96xf32>
    %162 = arith.addf %161, %160 : vector<4x96xf32>
    %163 = arith.divf %161, %162 : vector<4x96xf32>
    %164 = vector.extract_strided_slice %157 {offsets = [0, 96], sizes = [4, 32], strides = [1, 1]} : vector<4x128xf32> to vector<4x32xf32>
    %165 = math.tanh %164 : vector<4x32xf32>
    %166 = vector.extract_strided_slice %163 {offsets = [0, 32], sizes = [4, 32], strides = [1, 1]} : vector<4x96xf32> to vector<4x32xf32>
    %167 = arith.mulf %166, %149 : vector<4x32xf32>
    %168 = vector.extract_strided_slice %163 {offsets = [0, 0], sizes = [4, 32], strides = [1, 1]} : vector<4x96xf32> to vector<4x32xf32>
    %169 = arith.mulf %168, %165 : vector<4x32xf32>
    %170 = arith.addf %167, %169 : vector<4x32xf32>
    %171 = vector.extract_strided_slice %163 {offsets = [0, 64], sizes = [4, 32], strides = [1, 1]} : vector<4x96xf32> to vector<4x32xf32>
    %172 = math.tanh %170 : vector<4x32xf32>
    %173 = arith.mulf %171, %172 : vector<4x32xf32>
    %c28 = arith.constant 28 : index
    %c0_31 = arith.constant 0 : index
    %174 = vector.load %arg6[%c28, %c0_31] : memref<40x32xf32, #tpu.memory_space<vmem>>, vector<4x32xf32>
    tpu.vector_store %arg6[%c28, %c0_31], %173 {strides = array<i32>} : memref<40x32xf32, #tpu.memory_space<vmem>>, vector<4x32xf32>,
    %175 = vector.extract_strided_slice %6 {offsets = [32, 0], sizes = [4, 128], strides = [1, 1]} : vector<40x128xf32> to vector<4x128xf32>
    %176 = arith.truncf %173 : vector<4x32xf32> to vector<4x32xbf16>
    %cst_32 = arith.constant dense<0.000000e+00> : vector<4x128xf32>
    %177 = tpu.matmul %176, %1, %cst_32 {dimension_numbers = #tpu.dot_dimension_numbers<[1], [0], [0], [1], [0, 0, 1, 1], [], []>} : vector<4x32xbf16>, vector<32x128xbf16>, vector<4x128xf32> -> vector<4x128xf32>
    %178 = arith.addf %175, %177 : vector<4x128xf32>
    %179 = vector.extract_strided_slice %178 {offsets = [0, 0], sizes = [4, 96], strides = [1, 1]} : vector<4x128xf32> to vector<4x96xf32>
    %180 = arith.negf %179 : vector<4x96xf32>
    %181 = math.exp %180 : vector<4x96xf32>
    %cst_33 = arith.constant 1.000000e+00 : f32
    %182 = vector.broadcast %cst_33 : f32 to vector<4x96xf32>
    %183 = arith.addf %182, %181 : vector<4x96xf32>
    %184 = arith.divf %182, %183 : vector<4x96xf32>
    %185 = vector.extract_strided_slice %178 {offsets = [0, 96], sizes = [4, 32], strides = [1, 1]} : vector<4x128xf32> to vector<4x32xf32>
    %186 = math.tanh %185 : vector<4x32xf32>
    %187 = vector.extract_strided_slice %184 {offsets = [0, 32], sizes = [4, 32], strides = [1, 1]} : vector<4x96xf32> to vector<4x32xf32>
    %188 = arith.mulf %187, %170 : vector<4x32xf32>
    %189 = vector.extract_strided_slice %184 {offsets = [0, 0], sizes = [4, 32], strides = [1, 1]} : vector<4x96xf32> to vector<4x32xf32>
    %190 = arith.mulf %189, %186 : vector<4x32xf32>
    %191 = arith.addf %188, %190 : vector<4x32xf32>
    %192 = vector.extract_strided_slice %184 {offsets = [0, 64], sizes = [4, 32], strides = [1, 1]} : vector<4x96xf32> to vector<4x32xf32>
    %193 = math.tanh %191 : vector<4x32xf32>
    %194 = arith.mulf %192, %193 : vector<4x32xf32>
    %c32_34 = arith.constant 32 : index
    %c0_35 = arith.constant 0 : index
    %195 = vector.load %arg6[%c32_34, %c0_35] : memref<40x32xf32, #tpu.memory_space<vmem>>, vector<4x32xf32>
    tpu.vector_store %arg6[%c32_34, %c0_35], %194 {strides = array<i32>} : memref<40x32xf32, #tpu.memory_space<vmem>>, vector<4x32xf32>,
    %196 = vector.extract_strided_slice %6 {offsets = [36, 0], sizes = [4, 128], strides = [1, 1]} : vector<40x128xf32> to vector<4x128xf32>
    %197 = arith.truncf %194 : vector<4x32xf32> to vector<4x32xbf16>
    %cst_36 = arith.constant dense<0.000000e+00> : vector<4x128xf32>
    %198 = tpu.matmul %197, %1, %cst_36 {dimension_numbers = #tpu.dot_dimension_numbers<[1], [0], [0], [1], [0, 0, 1, 1], [], []>} : vector<4x32xbf16>, vector<32x128xbf16>, vector<4x128xf32> -> vector<4x128xf32>
    %199 = arith.addf %196, %198 : vector<4x128xf32>
    %200 = vector.extract_strided_slice %199 {offsets = [0, 0], sizes = [4, 96], strides = [1, 1]} : vector<4x128xf32> to vector<4x96xf32>
    %201 = arith.negf %200 : vector<4x96xf32>
    %202 = math.exp %201 : vector<4x96xf32>
    %cst_37 = arith.constant 1.000000e+00 : f32
    %203 = vector.broadcast %cst_37 : f32 to vector<4x96xf32>
    %204 = arith.addf %203, %202 : vector<4x96xf32>
    %205 = arith.divf %203, %204 : vector<4x96xf32>
    %206 = vector.extract_strided_slice %199 {offsets = [0, 96], sizes = [4, 32], strides = [1, 1]} : vector<4x128xf32> to vector<4x32xf32>
    %207 = math.tanh %206 : vector<4x32xf32>
    %208 = vector.extract_strided_slice %205 {offsets = [0, 32], sizes = [4, 32], strides = [1, 1]} : vector<4x96xf32> to vector<4x32xf32>
    %209 = arith.mulf %208, %191 : vector<4x32xf32>
    %210 = vector.extract_strided_slice %205 {offsets = [0, 0], sizes = [4, 32], strides = [1, 1]} : vector<4x96xf32> to vector<4x32xf32>
    %211 = arith.mulf %210, %207 : vector<4x32xf32>
    %212 = arith.addf %209, %211 : vector<4x32xf32>
    %213 = vector.extract_strided_slice %205 {offsets = [0, 64], sizes = [4, 32], strides = [1, 1]} : vector<4x96xf32> to vector<4x32xf32>
    %214 = math.tanh %212 : vector<4x32xf32>
    %215 = arith.mulf %213, %214 : vector<4x32xf32>
    %c36 = arith.constant 36 : index
    %c0_38 = arith.constant 0 : index
    %216 = vector.load %arg6[%c36, %c0_38] : memref<40x32xf32, #tpu.memory_space<vmem>>, vector<4x32xf32>
    tpu.vector_store %arg6[%c36, %c0_38], %215 {strides = array<i32>} : memref<40x32xf32, #tpu.memory_space<vmem>>, vector<4x32xf32>,
    %c48 = arith.constant 48 : index
    %c0_39 = arith.constant 0 : index
    %217 = vector.load %arg0[%c48, %c0_39] : memref<76x32xbf16, #tpu.memory_space<vmem>>, vector<28x32xbf16>
    %cst_40 = arith.constant dense<0.000000e+00> : vector<28x128xf32>
    %218 = tpu.matmul %217, %2, %cst_40 {dimension_numbers = #tpu.dot_dimension_numbers<[1], [0], [0], [1], [0, 0, 1, 1], [], []>} : vector<28x32xbf16>, vector<32x128xbf16>, vector<28x128xf32> -> vector<28x128xf32>
    %219 = vector.extract_strided_slice %218 {offsets = [0, 0], sizes = [4, 128], strides = [1, 1]} : vector<28x128xf32> to vector<4x128xf32>
    %220 = arith.truncf %215 : vector<4x32xf32> to vector<4x32xbf16>
    %cst_41 = arith.constant dense<0.000000e+00> : vector<4x128xf32>
    %221 = tpu.matmul %220, %3, %cst_41 {dimension_numbers = #tpu.dot_dimension_numbers<[1], [0], [0], [1], [0, 0, 1, 1], [], []>} : vector<4x32xbf16>, vector<32x128xbf16>, vector<4x128xf32> -> vector<4x128xf32>
    %222 = arith.addf %219, %221 : vector<4x128xf32>
    %223 = vector.extract_strided_slice %222 {offsets = [0, 0], sizes = [4, 96], strides = [1, 1]} : vector<4x128xf32> to vector<4x96xf32>
    %224 = arith.negf %223 : vector<4x96xf32>
    %225 = math.exp %224 : vector<4x96xf32>
    %cst_42 = arith.constant 1.000000e+00 : f32
    %226 = vector.broadcast %cst_42 : f32 to vector<4x96xf32>
    %227 = arith.addf %226, %225 : vector<4x96xf32>
    %228 = arith.divf %226, %227 : vector<4x96xf32>
    %229 = vector.extract_strided_slice %222 {offsets = [0, 96], sizes = [4, 32], strides = [1, 1]} : vector<4x128xf32> to vector<4x32xf32>
    %230 = math.tanh %229 : vector<4x32xf32>
    %231 = vector.extract_strided_slice %228 {offsets = [0, 32], sizes = [4, 32], strides = [1, 1]} : vector<4x96xf32> to vector<4x32xf32>
    %232 = arith.mulf %231, %212 : vector<4x32xf32>
    %233 = vector.extract_strided_slice %228 {offsets = [0, 0], sizes = [4, 32], strides = [1, 1]} : vector<4x96xf32> to vector<4x32xf32>
    %234 = arith.mulf %233, %230 : vector<4x32xf32>
    %235 = arith.addf %232, %234 : vector<4x32xf32>
    %236 = vector.extract_strided_slice %228 {offsets = [0, 64], sizes = [4, 32], strides = [1, 1]} : vector<4x96xf32> to vector<4x32xf32>
    %237 = math.tanh %235 : vector<4x32xf32>
    %238 = arith.mulf %236, %237 : vector<4x32xf32>
    %c0_43 = arith.constant 0 : index
    %c0_44 = arith.constant 0 : index
    %239 = vector.load %arg7[%c0_43, %c0_44] : memref<28x32xf32, #tpu.memory_space<vmem>>, vector<4x32xf32>
    tpu.vector_store %arg7[%c0_43, %c0_44], %238 {strides = array<i32>} : memref<28x32xf32, #tpu.memory_space<vmem>>, vector<4x32xf32>,
    %240 = vector.extract_strided_slice %218 {offsets = [4, 0], sizes = [4, 128], strides = [1, 1]} : vector<28x128xf32> to vector<4x128xf32>
    %241 = arith.truncf %238 : vector<4x32xf32> to vector<4x32xbf16>
    %cst_45 = arith.constant dense<0.000000e+00> : vector<4x128xf32>
    %242 = tpu.matmul %241, %3, %cst_45 {dimension_numbers = #tpu.dot_dimension_numbers<[1], [0], [0], [1], [0, 0, 1, 1], [], []>} : vector<4x32xbf16>, vector<32x128xbf16>, vector<4x128xf32> -> vector<4x128xf32>
    %243 = arith.addf %240, %242 : vector<4x128xf32>
    %244 = vector.extract_strided_slice %243 {offsets = [0, 0], sizes = [4, 96], strides = [1, 1]} : vector<4x128xf32> to vector<4x96xf32>
    %245 = arith.negf %244 : vector<4x96xf32>
    %246 = math.exp %245 : vector<4x96xf32>
    %cst_46 = arith.constant 1.000000e+00 : f32
    %247 = vector.broadcast %cst_46 : f32 to vector<4x96xf32>
    %248 = arith.addf %247, %246 : vector<4x96xf32>
    %249 = arith.divf %247, %248 : vector<4x96xf32>
    %250 = vector.extract_strided_slice %243 {offsets = [0, 96], sizes = [4, 32], strides = [1, 1]} : vector<4x128xf32> to vector<4x32xf32>
    %251 = math.tanh %250 : vector<4x32xf32>
    %252 = vector.extract_strided_slice %249 {offsets = [0, 32], sizes = [4, 32], strides = [1, 1]} : vector<4x96xf32> to vector<4x32xf32>
    %253 = arith.mulf %252, %235 : vector<4x32xf32>
    %254 = vector.extract_strided_slice %249 {offsets = [0, 0], sizes = [4, 32], strides = [1, 1]} : vector<4x96xf32> to vector<4x32xf32>
    %255 = arith.mulf %254, %251 : vector<4x32xf32>
    %256 = arith.addf %253, %255 : vector<4x32xf32>
    %257 = vector.extract_strided_slice %249 {offsets = [0, 64], sizes = [4, 32], strides = [1, 1]} : vector<4x96xf32> to vector<4x32xf32>
    %258 = math.tanh %256 : vector<4x32xf32>
    %259 = arith.mulf %257, %258 : vector<4x32xf32>
    %c4_47 = arith.constant 4 : index
    %c0_48 = arith.constant 0 : index
    %260 = vector.load %arg7[%c4_47, %c0_48] : memref<28x32xf32, #tpu.memory_space<vmem>>, vector<4x32xf32>
    tpu.vector_store %arg7[%c4_47, %c0_48], %259 {strides = array<i32>} : memref<28x32xf32, #tpu.memory_space<vmem>>, vector<4x32xf32>,
    %261 = vector.extract_strided_slice %218 {offsets = [8, 0], sizes = [4, 128], strides = [1, 1]} : vector<28x128xf32> to vector<4x128xf32>
    %262 = arith.truncf %259 : vector<4x32xf32> to vector<4x32xbf16>
    %cst_49 = arith.constant dense<0.000000e+00> : vector<4x128xf32>
    %263 = tpu.matmul %262, %3, %cst_49 {dimension_numbers = #tpu.dot_dimension_numbers<[1], [0], [0], [1], [0, 0, 1, 1], [], []>} : vector<4x32xbf16>, vector<32x128xbf16>, vector<4x128xf32> -> vector<4x128xf32>
    %264 = arith.addf %261, %263 : vector<4x128xf32>
    %265 = vector.extract_strided_slice %264 {offsets = [0, 0], sizes = [4, 96], strides = [1, 1]} : vector<4x128xf32> to vector<4x96xf32>
    %266 = arith.negf %265 : vector<4x96xf32>
    %267 = math.exp %266 : vector<4x96xf32>
    %cst_50 = arith.constant 1.000000e+00 : f32
    %268 = vector.broadcast %cst_50 : f32 to vector<4x96xf32>
    %269 = arith.addf %268, %267 : vector<4x96xf32>
    %270 = arith.divf %268, %269 : vector<4x96xf32>
    %271 = vector.extract_strided_slice %264 {offsets = [0, 96], sizes = [4, 32], strides = [1, 1]} : vector<4x128xf32> to vector<4x32xf32>
    %272 = math.tanh %271 : vector<4x32xf32>
    %273 = vector.extract_strided_slice %270 {offsets = [0, 32], sizes = [4, 32], strides = [1, 1]} : vector<4x96xf32> to vector<4x32xf32>
    %274 = arith.mulf %273, %256 : vector<4x32xf32>
    %275 = vector.extract_strided_slice %270 {offsets = [0, 0], sizes = [4, 32], strides = [1, 1]} : vector<4x96xf32> to vector<4x32xf32>
    %276 = arith.mulf %275, %272 : vector<4x32xf32>
    %277 = arith.addf %274, %276 : vector<4x32xf32>
    %278 = vector.extract_strided_slice %270 {offsets = [0, 64], sizes = [4, 32], strides = [1, 1]} : vector<4x96xf32> to vector<4x32xf32>
    %279 = math.tanh %277 : vector<4x32xf32>
    %280 = arith.mulf %278, %279 : vector<4x32xf32>
    %c8_51 = arith.constant 8 : index
    %c0_52 = arith.constant 0 : index
    %281 = vector.load %arg7[%c8_51, %c0_52] : memref<28x32xf32, #tpu.memory_space<vmem>>, vector<4x32xf32>
    tpu.vector_store %arg7[%c8_51, %c0_52], %280 {strides = array<i32>} : memref<28x32xf32, #tpu.memory_space<vmem>>, vector<4x32xf32>,
    %282 = vector.extract_strided_slice %218 {offsets = [12, 0], sizes = [4, 128], strides = [1, 1]} : vector<28x128xf32> to vector<4x128xf32>
    %283 = arith.truncf %280 : vector<4x32xf32> to vector<4x32xbf16>
    %cst_53 = arith.constant dense<0.000000e+00> : vector<4x128xf32>
    %284 = tpu.matmul %283, %3, %cst_53 {dimension_numbers = #tpu.dot_dimension_numbers<[1], [0], [0], [1], [0, 0, 1, 1], [], []>} : vector<4x32xbf16>, vector<32x128xbf16>, vector<4x128xf32> -> vector<4x128xf32>
    %285 = arith.addf %282, %284 : vector<4x128xf32>
    %286 = vector.extract_strided_slice %285 {offsets = [0, 0], sizes = [4, 96], strides = [1, 1]} : vector<4x128xf32> to vector<4x96xf32>
    %287 = arith.negf %286 : vector<4x96xf32>
    %288 = math.exp %287 : vector<4x96xf32>
    %cst_54 = arith.constant 1.000000e+00 : f32
    %289 = vector.broadcast %cst_54 : f32 to vector<4x96xf32>
    %290 = arith.addf %289, %288 : vector<4x96xf32>
    %291 = arith.divf %289, %290 : vector<4x96xf32>
    %292 = vector.extract_strided_slice %285 {offsets = [0, 96], sizes = [4, 32], strides = [1, 1]} : vector<4x128xf32> to vector<4x32xf32>
    %293 = math.tanh %292 : vector<4x32xf32>
    %294 = vector.extract_strided_slice %291 {offsets = [0, 32], sizes = [4, 32], strides = [1, 1]} : vector<4x96xf32> to vector<4x32xf32>
    %295 = arith.mulf %294, %277 : vector<4x32xf32>
    %296 = vector.extract_strided_slice %291 {offsets = [0, 0], sizes = [4, 32], strides = [1, 1]} : vector<4x96xf32> to vector<4x32xf32>
    %297 = arith.mulf %296, %293 : vector<4x32xf32>
    %298 = arith.addf %295, %297 : vector<4x32xf32>
    %299 = vector.extract_strided_slice %291 {offsets = [0, 64], sizes = [4, 32], strides = [1, 1]} : vector<4x96xf32> to vector<4x32xf32>
    %300 = math.tanh %298 : vector<4x32xf32>
    %301 = arith.mulf %299, %300 : vector<4x32xf32>
    %c12_55 = arith.constant 12 : index
    %c0_56 = arith.constant 0 : index
    %302 = vector.load %arg7[%c12_55, %c0_56] : memref<28x32xf32, #tpu.memory_space<vmem>>, vector<4x32xf32>
    tpu.vector_store %arg7[%c12_55, %c0_56], %301 {strides = array<i32>} : memref<28x32xf32, #tpu.memory_space<vmem>>, vector<4x32xf32>,
    %303 = vector.extract_strided_slice %218 {offsets = [16, 0], sizes = [4, 128], strides = [1, 1]} : vector<28x128xf32> to vector<4x128xf32>
    %304 = arith.truncf %301 : vector<4x32xf32> to vector<4x32xbf16>
    %cst_57 = arith.constant dense<0.000000e+00> : vector<4x128xf32>
    %305 = tpu.matmul %304, %3, %cst_57 {dimension_numbers = #tpu.dot_dimension_numbers<[1], [0], [0], [1], [0, 0, 1, 1], [], []>} : vector<4x32xbf16>, vector<32x128xbf16>, vector<4x128xf32> -> vector<4x128xf32>
    %306 = arith.addf %303, %305 : vector<4x128xf32>
    %307 = vector.extract_strided_slice %306 {offsets = [0, 0], sizes = [4, 96], strides = [1, 1]} : vector<4x128xf32> to vector<4x96xf32>
    %308 = arith.negf %307 : vector<4x96xf32>
    %309 = math.exp %308 : vector<4x96xf32>
    %cst_58 = arith.constant 1.000000e+00 : f32
    %310 = vector.broadcast %cst_58 : f32 to vector<4x96xf32>
    %311 = arith.addf %310, %309 : vector<4x96xf32>
    %312 = arith.divf %310, %311 : vector<4x96xf32>
    %313 = vector.extract_strided_slice %306 {offsets = [0, 96], sizes = [4, 32], strides = [1, 1]} : vector<4x128xf32> to vector<4x32xf32>
    %314 = math.tanh %313 : vector<4x32xf32>
    %315 = vector.extract_strided_slice %312 {offsets = [0, 32], sizes = [4, 32], strides = [1, 1]} : vector<4x96xf32> to vector<4x32xf32>
    %316 = arith.mulf %315, %298 : vector<4x32xf32>
    %317 = vector.extract_strided_slice %312 {offsets = [0, 0], sizes = [4, 32], strides = [1, 1]} : vector<4x96xf32> to vector<4x32xf32>
    %318 = arith.mulf %317, %314 : vector<4x32xf32>
    %319 = arith.addf %316, %318 : vector<4x32xf32>
    %320 = vector.extract_strided_slice %312 {offsets = [0, 64], sizes = [4, 32], strides = [1, 1]} : vector<4x96xf32> to vector<4x32xf32>
    %321 = math.tanh %319 : vector<4x32xf32>
    %322 = arith.mulf %320, %321 : vector<4x32xf32>
    %c16_59 = arith.constant 16 : index
    %c0_60 = arith.constant 0 : index
    %323 = vector.load %arg7[%c16_59, %c0_60] : memref<28x32xf32, #tpu.memory_space<vmem>>, vector<4x32xf32>
    tpu.vector_store %arg7[%c16_59, %c0_60], %322 {strides = array<i32>} : memref<28x32xf32, #tpu.memory_space<vmem>>, vector<4x32xf32>,
    %324 = vector.extract_strided_slice %218 {offsets = [20, 0], sizes = [4, 128], strides = [1, 1]} : vector<28x128xf32> to vector<4x128xf32>
    %325 = arith.truncf %322 : vector<4x32xf32> to vector<4x32xbf16>
    %cst_61 = arith.constant dense<0.000000e+00> : vector<4x128xf32>
    %326 = tpu.matmul %325, %3, %cst_61 {dimension_numbers = #tpu.dot_dimension_numbers<[1], [0], [0], [1], [0, 0, 1, 1], [], []>} : vector<4x32xbf16>, vector<32x128xbf16>, vector<4x128xf32> -> vector<4x128xf32>
    %327 = arith.addf %324, %326 : vector<4x128xf32>
    %328 = vector.extract_strided_slice %327 {offsets = [0, 0], sizes = [4, 96], strides = [1, 1]} : vector<4x128xf32> to vector<4x96xf32>
    %329 = arith.negf %328 : vector<4x96xf32>
    %330 = math.exp %329 : vector<4x96xf32>
    %cst_62 = arith.constant 1.000000e+00 : f32
    %331 = vector.broadcast %cst_62 : f32 to vector<4x96xf32>
    %332 = arith.addf %331, %330 : vector<4x96xf32>
    %333 = arith.divf %331, %332 : vector<4x96xf32>
    %334 = vector.extract_strided_slice %327 {offsets = [0, 96], sizes = [4, 32], strides = [1, 1]} : vector<4x128xf32> to vector<4x32xf32>
    %335 = math.tanh %334 : vector<4x32xf32>
    %336 = vector.extract_strided_slice %333 {offsets = [0, 32], sizes = [4, 32], strides = [1, 1]} : vector<4x96xf32> to vector<4x32xf32>
    %337 = arith.mulf %336, %319 : vector<4x32xf32>
    %338 = vector.extract_strided_slice %333 {offsets = [0, 0], sizes = [4, 32], strides = [1, 1]} : vector<4x96xf32> to vector<4x32xf32>
    %339 = arith.mulf %338, %335 : vector<4x32xf32>
    %340 = arith.addf %337, %339 : vector<4x32xf32>
    %341 = vector.extract_strided_slice %333 {offsets = [0, 64], sizes = [4, 32], strides = [1, 1]} : vector<4x96xf32> to vector<4x32xf32>
    %342 = math.tanh %340 : vector<4x32xf32>
    %343 = arith.mulf %341, %342 : vector<4x32xf32>
    %c20_63 = arith.constant 20 : index
    %c0_64 = arith.constant 0 : index
    %344 = vector.load %arg7[%c20_63, %c0_64] : memref<28x32xf32, #tpu.memory_space<vmem>>, vector<4x32xf32>
    tpu.vector_store %arg7[%c20_63, %c0_64], %343 {strides = array<i32>} : memref<28x32xf32, #tpu.memory_space<vmem>>, vector<4x32xf32>,
    %345 = vector.extract_strided_slice %218 {offsets = [24, 0], sizes = [4, 128], strides = [1, 1]} : vector<28x128xf32> to vector<4x128xf32>
    %346 = arith.truncf %343 : vector<4x32xf32> to vector<4x32xbf16>
    %cst_65 = arith.constant dense<0.000000e+00> : vector<4x128xf32>
    %347 = tpu.matmul %346, %3, %cst_65 {dimension_numbers = #tpu.dot_dimension_numbers<[1], [0], [0], [1], [0, 0, 1, 1], [], []>} : vector<4x32xbf16>, vector<32x128xbf16>, vector<4x128xf32> -> vector<4x128xf32>
    %348 = arith.addf %345, %347 : vector<4x128xf32>
    %349 = vector.extract_strided_slice %348 {offsets = [0, 0], sizes = [4, 96], strides = [1, 1]} : vector<4x128xf32> to vector<4x96xf32>
    %350 = arith.negf %349 : vector<4x96xf32>
    %351 = math.exp %350 : vector<4x96xf32>
    %cst_66 = arith.constant 1.000000e+00 : f32
    %352 = vector.broadcast %cst_66 : f32 to vector<4x96xf32>
    %353 = arith.addf %352, %351 : vector<4x96xf32>
    %354 = arith.divf %352, %353 : vector<4x96xf32>
    %355 = vector.extract_strided_slice %348 {offsets = [0, 96], sizes = [4, 32], strides = [1, 1]} : vector<4x128xf32> to vector<4x32xf32>
    %356 = math.tanh %355 : vector<4x32xf32>
    %357 = vector.extract_strided_slice %354 {offsets = [0, 32], sizes = [4, 32], strides = [1, 1]} : vector<4x96xf32> to vector<4x32xf32>
    %358 = arith.mulf %357, %340 : vector<4x32xf32>
    %359 = vector.extract_strided_slice %354 {offsets = [0, 0], sizes = [4, 32], strides = [1, 1]} : vector<4x96xf32> to vector<4x32xf32>
    %360 = arith.mulf %359, %356 : vector<4x32xf32>
    %361 = arith.addf %358, %360 : vector<4x32xf32>
    %362 = vector.extract_strided_slice %354 {offsets = [0, 64], sizes = [4, 32], strides = [1, 1]} : vector<4x96xf32> to vector<4x32xf32>
    %363 = math.tanh %361 : vector<4x32xf32>
    %364 = arith.mulf %362, %363 : vector<4x32xf32>
    %c24_67 = arith.constant 24 : index
    %c0_68 = arith.constant 0 : index
    %365 = vector.load %arg7[%c24_67, %c0_68] : memref<28x32xf32, #tpu.memory_space<vmem>>, vector<4x32xf32>
    tpu.vector_store %arg7[%c24_67, %c0_68], %364 {strides = array<i32>} : memref<28x32xf32, #tpu.memory_space<vmem>>, vector<4x32xf32>,
    %c0_69 = arith.constant 0 : index
    %c0_70 = arith.constant 0 : index
    %366 = vector.load %arg2[%c0_69, %c0_70] : memref<160x32xf32, #tpu.memory_space<vmem>>, vector<32x32xf32>
    %c32_71 = arith.constant 32 : index
    %c0_72 = arith.constant 0 : index
    %367 = vector.load %arg2[%c32_71, %c0_72] : memref<160x32xf32, #tpu.memory_space<vmem>>, vector<32x32xf32>
    %c64_73 = arith.constant 64 : index
    %c0_74 = arith.constant 0 : index
    %368 = vector.load %arg2[%c64_73, %c0_74] : memref<160x32xf32, #tpu.memory_space<vmem>>, vector<32x32xf32>
    %c96_75 = arith.constant 96 : index
    %c0_76 = arith.constant 0 : index
    %369 = vector.load %arg2[%c96_75, %c0_76] : memref<160x32xf32, #tpu.memory_space<vmem>>, vector<32x32xf32>
    %c128 = arith.constant 128 : index
    %c0_77 = arith.constant 0 : index
    %370 = vector.load %arg2[%c128, %c0_77] : memref<160x32xf32, #tpu.memory_space<vmem>>, vector<32x32xf32>
    %c0_78 = arith.constant 0 : index
    %c0_79 = arith.constant 0 : index
    %371 = vector.load %arg3[%c0_78, %c0_79] : memref<56x128xf32, #tpu.memory_space<vmem>>, vector<32x128xf32>
    %c32_80 = arith.constant 32 : index
    %c0_81 = arith.constant 0 : index
    %372 = vector.load %arg3[%c32_80, %c0_81] : memref<56x128xf32, #tpu.memory_space<vmem>>, vector<1x128xf32>
    %c40 = arith.constant 40 : index
    %c0_82 = arith.constant 0 : index
    %373 = vector.load %arg3[%c40, %c0_82] : memref<56x128xf32, #tpu.memory_space<vmem>>, vector<1x32xf32>
    %c48_83 = arith.constant 48 : index
    %c0_84 = arith.constant 0 : index
    %374 = vector.load %arg3[%c48_83, %c0_84] : memref<56x128xf32, #tpu.memory_space<vmem>>, vector<1x32xf32>
    %c0_85 = arith.constant 0 : index
    %c0_86 = arith.constant 0 : index
    %375 = vector.load %arg6[%c0_85, %c0_86] : memref<40x32xf32, #tpu.memory_space<vmem>>, vector<40x32xf32>
    %c0_87 = arith.constant 0 : index
    %c0_88 = arith.constant 0 : index
    %376 = vector.load %arg7[%c0_87, %c0_88] : memref<28x32xf32, #tpu.memory_space<vmem>>, vector<28x32xf32>
    %cst_89 = arith.constant dense<0.000000e+00> : vector<40x32xf32>
    %377 = tpu.matmul %375, %366, %cst_89 {dimension_numbers = #tpu.dot_dimension_numbers<[1], [0], [0], [1], [0, 0, 1, 1], [], []>} : vector<40x32xf32>, vector<32x32xf32>, vector<40x32xf32> -> vector<40x32xf32>
    %378 = vector.broadcast %373 : vector<1x32xf32> to vector<40x32xf32>
    %379 = arith.addf %377, %378 : vector<40x32xf32>
    %cst_90 = arith.constant dense<0.000000e+00> : vector<28x32xf32>
    %380 = tpu.matmul %376, %367, %cst_90 {dimension_numbers = #tpu.dot_dimension_numbers<[1], [0], [0], [1], [0, 0, 1, 1], [], []>} : vector<28x32xf32>, vector<32x32xf32>, vector<28x32xf32> -> vector<28x32xf32>
    %c0_91 = arith.constant 0 : index
    %c0_92 = arith.constant 0 : index
    %381 = vector.load %arg4[%c0_91, %c0_92] : memref<320x68xf32, #tpu.memory_space<vmem>>, vector<320x68xf32>
    %382 = tpu.concatenate %379, %380 in 0 : vector<40x32xf32>, vector<28x32xf32> -> vector<68x32xf32>
    %cst_93 = arith.constant 0.000000e+00 : f32
    %383 = vector.broadcast %cst_93 : f32 to vector<28x32xf32>
    %384 = tpu.concatenate %375, %383 in 0 : vector<40x32xf32>, vector<28x32xf32> -> vector<68x32xf32>
    %cst_94 = arith.constant dense<0.000000e+00> : vector<320x32xf32>
    %385 = tpu.matmul %381, %382, %cst_94 {dimension_numbers = #tpu.dot_dimension_numbers<[1], [0], [0], [1], [0, 0, 1, 1], [], []>} : vector<320x68xf32>, vector<68x32xf32>, vector<320x32xf32> -> vector<320x32xf32>
    %cst_95 = arith.constant dense<0.000000e+00> : vector<320x32xf32>
    %386 = tpu.matmul %381, %384, %cst_95 {dimension_numbers = #tpu.dot_dimension_numbers<[1], [0], [0], [1], [0, 0, 1, 1], [], []>} : vector<320x68xf32>, vector<68x32xf32>, vector<320x32xf32> -> vector<320x32xf32>
    %387 = math.tanh %385 : vector<320x32xf32>
    %cst_96 = arith.constant dense<0.000000e+00> : vector<320x32xf32>
    %388 = tpu.matmul %387, %370, %cst_96 {dimension_numbers = #tpu.dot_dimension_numbers<[1], [0], [0], [1], [0, 0, 1, 1], [], []>} : vector<320x32xf32>, vector<32x32xf32>, vector<320x32xf32> -> vector<320x32xf32>
    %389 = vector.extract_strided_slice %388 {offsets = [0, 0], sizes = [320, 1], strides = [1, 1]} : vector<320x32xf32> to vector<320x1xf32>
    %390 = math.exp %389 : vector<320x1xf32>
    %391 = vector.broadcast %390 : vector<320x1xf32> to vector<320x32xf32>
    %392 = arith.mulf %391, %386 : vector<320x32xf32>
    %393 = vector.extract_strided_slice %392 {offsets = [0, 0], sizes = [32, 32], strides = [1, 1]} : vector<320x32xf32> to vector<32x32xf32>
    %394 = vector.extract_strided_slice %390 {offsets = [0, 0], sizes = [32, 1], strides = [1, 1]} : vector<320x1xf32> to vector<32x1xf32>
    %395 = vector.extract_strided_slice %392 {offsets = [32, 0], sizes = [32, 32], strides = [1, 1]} : vector<320x32xf32> to vector<32x32xf32>
    %396 = arith.addf %393, %395 : vector<32x32xf32>
    %397 = vector.extract_strided_slice %390 {offsets = [32, 0], sizes = [32, 1], strides = [1, 1]} : vector<320x1xf32> to vector<32x1xf32>
    %398 = arith.addf %394, %397 : vector<32x1xf32>
    %399 = vector.extract_strided_slice %392 {offsets = [64, 0], sizes = [32, 32], strides = [1, 1]} : vector<320x32xf32> to vector<32x32xf32>
    %400 = arith.addf %396, %399 : vector<32x32xf32>
    %401 = vector.extract_strided_slice %390 {offsets = [64, 0], sizes = [32, 1], strides = [1, 1]} : vector<320x1xf32> to vector<32x1xf32>
    %402 = arith.addf %398, %401 : vector<32x1xf32>
    %403 = vector.extract_strided_slice %392 {offsets = [96, 0], sizes = [32, 32], strides = [1, 1]} : vector<320x32xf32> to vector<32x32xf32>
    %404 = arith.addf %400, %403 : vector<32x32xf32>
    %405 = vector.extract_strided_slice %390 {offsets = [96, 0], sizes = [32, 1], strides = [1, 1]} : vector<320x1xf32> to vector<32x1xf32>
    %406 = arith.addf %402, %405 : vector<32x1xf32>
    %407 = vector.extract_strided_slice %392 {offsets = [128, 0], sizes = [32, 32], strides = [1, 1]} : vector<320x32xf32> to vector<32x32xf32>
    %408 = arith.addf %404, %407 : vector<32x32xf32>
    %409 = vector.extract_strided_slice %390 {offsets = [128, 0], sizes = [32, 1], strides = [1, 1]} : vector<320x1xf32> to vector<32x1xf32>
    %410 = arith.addf %406, %409 : vector<32x1xf32>
    %411 = vector.extract_strided_slice %392 {offsets = [160, 0], sizes = [32, 32], strides = [1, 1]} : vector<320x32xf32> to vector<32x32xf32>
    %412 = arith.addf %408, %411 : vector<32x32xf32>
    %413 = vector.extract_strided_slice %390 {offsets = [160, 0], sizes = [32, 1], strides = [1, 1]} : vector<320x1xf32> to vector<32x1xf32>
    %414 = arith.addf %410, %413 : vector<32x1xf32>
    %415 = vector.extract_strided_slice %392 {offsets = [192, 0], sizes = [32, 32], strides = [1, 1]} : vector<320x32xf32> to vector<32x32xf32>
    %416 = arith.addf %412, %415 : vector<32x32xf32>
    %417 = vector.extract_strided_slice %390 {offsets = [192, 0], sizes = [32, 1], strides = [1, 1]} : vector<320x1xf32> to vector<32x1xf32>
    %418 = arith.addf %414, %417 : vector<32x1xf32>
    %419 = vector.extract_strided_slice %392 {offsets = [224, 0], sizes = [32, 32], strides = [1, 1]} : vector<320x32xf32> to vector<32x32xf32>
    %420 = arith.addf %416, %419 : vector<32x32xf32>
    %421 = vector.extract_strided_slice %390 {offsets = [224, 0], sizes = [32, 1], strides = [1, 1]} : vector<320x1xf32> to vector<32x1xf32>
    %422 = arith.addf %418, %421 : vector<32x1xf32>
    %423 = vector.extract_strided_slice %392 {offsets = [256, 0], sizes = [32, 32], strides = [1, 1]} : vector<320x32xf32> to vector<32x32xf32>
    %424 = arith.addf %420, %423 : vector<32x32xf32>
    %425 = vector.extract_strided_slice %390 {offsets = [256, 0], sizes = [32, 1], strides = [1, 1]} : vector<320x1xf32> to vector<32x1xf32>
    %426 = arith.addf %422, %425 : vector<32x1xf32>
    %427 = vector.extract_strided_slice %392 {offsets = [288, 0], sizes = [32, 32], strides = [1, 1]} : vector<320x32xf32> to vector<32x32xf32>
    %428 = arith.addf %424, %427 : vector<32x32xf32>
    %429 = vector.extract_strided_slice %390 {offsets = [288, 0], sizes = [32, 1], strides = [1, 1]} : vector<320x1xf32> to vector<32x1xf32>
    %430 = arith.addf %426, %429 : vector<32x1xf32>
    %431 = vector.extract_strided_slice %428 {offsets = [0, 0], sizes = [28, 32], strides = [1, 1]} : vector<32x32xf32> to vector<28x32xf32>
    %432 = vector.extract_strided_slice %430 {offsets = [0, 0], sizes = [28, 1], strides = [1, 1]} : vector<32x1xf32> to vector<28x1xf32>
    %433 = vector.broadcast %432 : vector<28x1xf32> to vector<28x32xf32>
    %434 = arith.divf %431, %433 : vector<28x32xf32>
    %cst_97 = arith.constant dense<0.000000e+00> : vector<28x32xf32>
    %435 = tpu.matmul %376, %368, %cst_97 {dimension_numbers = #tpu.dot_dimension_numbers<[1], [0], [0], [1], [0, 0, 1, 1], [], []>} : vector<28x32xf32>, vector<32x32xf32>, vector<28x32xf32> -> vector<28x32xf32>
    %cst_98 = arith.constant dense<0.000000e+00> : vector<28x32xf32>
    %436 = tpu.matmul %434, %369, %cst_98 {dimension_numbers = #tpu.dot_dimension_numbers<[1], [0], [0], [1], [0, 0, 1, 1], [], []>} : vector<28x32xf32>, vector<32x32xf32>, vector<28x32xf32> -> vector<28x32xf32>
    %437 = arith.addf %435, %436 : vector<28x32xf32>
    %438 = vector.broadcast %374 : vector<1x32xf32> to vector<28x32xf32>
    %439 = arith.addf %437, %438 : vector<28x32xf32>
    %cst_99 = arith.constant dense<0.000000e+00> : vector<28x128xf32>
    %440 = tpu.matmul %439, %371, %cst_99 {dimension_numbers = #tpu.dot_dimension_numbers<[1], [0], [0], [1], [0, 0, 1, 1], [], []>} : vector<28x32xf32>, vector<32x128xf32>, vector<28x128xf32> -> vector<28x128xf32>
    %441 = vector.broadcast %372 : vector<1x128xf32> to vector<28x128xf32>
    %442 = arith.addf %440, %441 : vector<28x128xf32>
    %cst_100 = arith.constant dense<0xFF800000> : vector<28xf32>
    %443 = vector.multi_reduction <maximumf>, %442, %cst_100 [1] : vector<28x128xf32> to vector<28xf32>
    %444 = vector.shape_cast %443 : vector<28xf32> to vector<28x1xf32>
    %445 = vector.broadcast %444 : vector<28x1xf32> to vector<28x128xf32>
    %446 = arith.subf %442, %445 : vector<28x128xf32>
    %447 = math.exp %446 : vector<28x128xf32>
    %cst_101 = arith.constant dense<0.000000e+00> : vector<28xf32>
    %448 = vector.multi_reduction <add>, %447, %cst_101 [1] : vector<28x128xf32> to vector<28xf32>
    %449 = vector.shape_cast %448 : vector<28xf32> to vector<28x1xf32>
    %450 = math.log %449 : vector<28x1xf32>
    %451 = vector.broadcast %450 : vector<28x1xf32> to vector<28x128xf32>
    %452 = arith.subf %446, %451 : vector<28x128xf32>
    %c0_102 = arith.constant 0 : index
    %c0_103 = arith.constant 0 : index
    %453 = vector.load %arg5[%c0_102, %c0_103] : memref<28x128xf32, #tpu.memory_space<vmem>>, vector<28x128xf32>
    tpu.vector_store %arg5[%c0_102, %c0_103], %452 {strides = array<i32>} : memref<28x128xf32, #tpu.memory_space<vmem>>, vector<28x128xf32>,
    return
  }
}

</mosaic_0001>

<bundles_post_ra>
// kernel: seq2seq_forward.1
= control target key start
LH: loop header
LB: loop body
LE: loop exit
PB: predicated region body
PF: predicated region fallthrough
CT: control target
= control target key end

     0   :  { %v5060_v0 = vmov 0.0   ;;  %vm5061_vm0 = vmmov 0   ;;  %v5062_v3 = vmov 0   ;;  %vm67_vm1 = vcmask 261120   ;;  %s5063_s7 = smov 32   ;;  %s5064_s8 = smov 64   ;;  %s6113_s1 = inlined_call_operand.vmem [shape: bf16[128,128], index: 1, kind: input, shape index: {}]   ;;  %s6114_s0 = inlined_call_operand.vmem [shape: bf16[76,32], index: 0, kind: input, shape index: {}]   ;;  %s6115_s2 = inlined_call_operand.vmem [shape: f32[160,32], index: 2, kind: input, shape index: {}]   ;;  %s6116_s4 = inlined_call_operand.vmem [shape: f32[320,68], index: 4, kind: input, shape index: {}]   ;;  %s6117_s3 = inlined_call_operand.vmem [shape: f32[56,128], index: 3, kind: input, shape index: {}]   ;;  %s6118_s5 = inlined_call_operand.vmem [shape: f32[28,128], index: 5, kind: output, shape index: {}]  }
   0x1   :  { %4186 = vmatprep.subr.bf16.mxu1 %v5060_v0  ;;  %v4723_v1 = vld [vmem:[%s6113_s1] sm:$0xff]   ;;  %4190 = vmatprep.mubr.msk.bf16.mxu1 %vm5061_vm0, %v5060_v0  ;;  %v4724_v2 = vld [vmem:[%s6113_s1 + $0x8] sm:$0xff]   ;;  %v5112_v4 = vld [vmem:[%s6113_s1 + $0x10] sm:$0xff]   ;;  %vm217_vm2 = vcmask 257024   ;;  %vm301_vm3 = vcmask 261124   ;;  %vm1907_vm4 = vcmask 556032  }
   0x2   :  { %4226 = vmatprep.subr.bf16.mxu0 %v5060_v0  ;;  %4230 = vmatprep.mubr.msk.bf16.mxu0 %vm5061_vm0, %v5060_v0  ;;  %v4725_v5 = vld [vmem:[%s6114_s0] sm:$0xff]   ;;  %v5121_v6 = vld [vmem:[%s6113_s1 + $0x18] sm:$0xff]   ;;  %v4727_v7 = vld [vmem:[%s6114_s0 + $0x8] sm:$0xff]   ;;  %vm2028_vm5 = vcmask 1043456  }
   0x3   :  { %4187 = vmatpush3.bf16.msra.mxu1 %v4723_v1  ;;  %4721 = vset.pattern.permute.xlu1 %v5062_v3  ;;  %v4729_v8 = vld [vmem:[%s6114_s0 + $0x10] ss:$0 sps:$4 sm:$0xff]  }
   0x4   :  { %4188 = vmatprep.subr.bf16.mxu1 %v5060_v0  ;;  %4722 = vset.pattern.permute.xlu0 %v5062_v3 }
   0x5   :  { %4227 = vmatpush3.bf16.msra.mxu0 %v5112_v4 }
   0x6   :  { %4228 = vmatprep.subr.bf16.mxu0 %v5060_v0 }
   0x7   :  { %4189 = vmatpush3.bf16.msra.mxu1 %v4724_v2 }
   0x8   :  { %4202 = vmatprep.subr.bf16.mxu1 %v5060_v0 }
   0x9   :  { %4229 = vmatpush3.bf16.msra.mxu0 %v5121_v6 }
   0xa   :  { %4191 = vmatmul.mubr.msk.bf16.vlgmr.msra.gmra.mrb[0].mxu1 %vm67_vm1, %v4725_v5  ;;  %4242 = vmatprep.subr.bf16.mxu0 %v5060_v0 }
   0xb   :  { %4203 = vmatpush3.bf16.msra.mxu1 %v5112_v4  ;;  %4194 = vmatprep.mubr.msk.bf16.mxu1 %vm5061_vm0, %v5060_v0 }
   0xc   :  { %4204 = vmatprep.subr.bf16.mxu1 %v5060_v0 }
   0xf   :  { %4205 = vmatpush3.bf16.msra.mxu1 %v5121_v6 }
  0x10   :  { %4210 = vmatprep.subr.bf16.mxu1 %v5060_v0 }
  0x12   :  { %4195 = vmatmul.mubr.msk.bf16.gmra.mrb[4].mxu1 %vm67_vm1, %v4727_v7 }
  0x13   :  { %4198 = vmatprep.mubr.msk.bf16.mxu1 %vm5061_vm0, %v5060_v0 }
  0x1a   :  { %4199 = vmatmul.mubr.msk.bf16.gmra.mrb[8].mxu1 %vm67_vm1, %v4729_v8 }
  0x1b   :  { %4206 = vmatprep.mubr.msk.bf16.mxu1 %vm5061_vm0, %v5060_v0 }
  0x22   :  { %4207 = vmatmul.mubr.bf16.vlgmr.msra.gmra.mrb[12].mxu1 %v5062_v3 }
  0x23   :  { %4211 = vmatpush3.bf16.msra.mxu1 %v5112_v4  ;;  %4214 = vmatprep.mubr.msk.bf16.mxu1 %vm5061_vm0, %v5060_v0 }
  0x24   :  { %4212 = vmatprep.subr.bf16.mxu1 %v5060_v0 }
  0x27   :  { %4213 = vmatpush3.bf16.msra.mxu1 %v5121_v6 }
  0x28   :  { %4218 = vmatprep.subr.bf16.mxu1 %v5060_v0 }
  0xdd   :  { %v111_v9 = vpop.f32.mrb[0].mxu1 }
  0xde   :  { %v4192_v10 = vpop.f32.mrb[1].mxu1 }
  0xdf   :  { %v5152_v11 = vpop.f32.mrb[2].mxu1 }
  0xe0   :  { %v4193_v12 = vpop.f32.mrb[3].mxu1 }
  0xe5   :  { %v5154_v13 = vpop.f32.mrb[4].mxu1 }
  0xe6   :  { %v4196_v14 = vpop.f32.mrb[5].mxu1 }
  0xe7   :  { %v5156_v15 = vpop.f32.mrb[6].mxu1 }
  0xe8   :  { %v4197_v16 = vpop.f32.mrb[7].mxu1 }
  0xed   :  { %v5158_v17 = vpop.f32.mrb[8].mxu1 }
  0xee   :  { %v4200_v18 = vpop.f32.mrb[9].mxu1 }
  0xef   :  { %v130_v19 = vpop.f32.mrb[10].mxu1 }
  0xf0   :  { %v4201_v20 = vpop.f32.mrb[11].mxu1 }
  0xf5   :  { %v182_v21 = vpop.f32.mrb[12].mxu1 }
  0xf6   :  { %v188_v22 = vadd.f32 %v182_v21, %v111_v9  ;;  %v4208_v23 = vpop.f32.mrb[13].mxu1 }
  0xf7   :  { %v185_v24 = vpop.f32.mrb[14].mxu1 }
  0xf8   :  { %4736 = vtanh.f32 %v188_v22  ;;  %v4209_v25 = vpop.f32.mrb[15].mxu1  ;;  %v3761_v27 = vmul.f32 -1.442695, %v188_v22 }
  0xfa   :  { %4738 = vpow2.f32 %v3761_v27 }
 0x102   :  { %v4737_v26 = vpop.eup %4736 }
 0x103   :  { %198 = vrot.lane.b32.xlu0 %v4737_v26, %s5063_s7 }
 0x104   :  { %v4739_v28 = vpop.eup %4738 }
 0x105   :  { %v192_v29 = vadd.f32 1.0, %v4739_v28 }
 0x107   :  { %4740 = vrcp.f32 %v192_v29 }
 0x111   :  { %v4741_v30 = vpop.eup %4740 }
 0x112   :  { %v196_v33 = vmul.f32 0.0, %v4741_v30 }
 0x175   :  { %v199_v31 = vpop.permute.xlu0 %198 }
 0x176   :  { %v201_v32 = vmul.f32 %v4741_v30, %v199_v31 }
 0x178   :  { %203 = vrot.lane.b32.xlu0 %v201_v32, %s5063_s7 }
 0x1ea   :  { %v204_v34 = vpop.permute.xlu0 %203 }
 0x1eb   :  { %v206_v35 = vadd.f32 %v204_v34, %v196_v33 }
 0x1ed   :  { %4742 = vtanh.f32 %v206_v35  ;;  %v278_v54 = vrot.slane %v206_v35, 4 }
 0x1f7   :  { %v4743_v36 = vpop.eup %4742 }
 0x1f8   :  { %209 = vrot.lane.b32.xlu1 %v4743_v36, %s5063_s7 }
 0x26a   :  { %v210_v37 = vpop.permute.xlu1 %209 }
 0x26b   :  { %v5163_v38 = vmul.f32 %v4741_v30, %v210_v37 }
 0x26d   :  { %v219_v39 = vpack.c.bf16 %v5163_v38, %v5163_v38 }
 0x26f   :  { %221 = vrot.lane.b32.xlu1 %v219_v39, %s5064_s8 }
 0x2e1   :  { %v222_v40 = vpop.permute.xlu1 %221 }
 0x2e2   :  { %4215 = vmatmul.mubr.msk.bf16.vlgmr.msra.gmra.mrb[16].mxu1 %vm67_vm1, %v222_v40 }
 0x2e3   :  { %4219 = vmatpush3.bf16.msra.mxu1 %v5112_v4  ;;  %4222 = vmatprep.mubr.msk.bf16.mxu1 %vm5061_vm0, %v5060_v0 }
 0x2e4   :  { %4220 = vmatprep.subr.bf16.mxu1 %v5060_v0 }
 0x2e7   :  { %4221 = vmatpush3.bf16.msra.mxu1 %v5121_v6 }
 0x2e8   :  { %4234 = vmatprep.subr.bf16.mxu1 %v5060_v0 }
 0x3b5   :  { %v260_v41 = vpop.f32.mrb[16].mxu1 }
 0x3b6   :  { %v267_v42 = vrot.slane %v260_v41, 4  ;;  %v4216_v43 = vpop.f32.mrb[17].mxu1 }
 0x3b7   :  { %v263_v44 = vpop.f32.mrb[18].mxu1 }
 0x3b8   :  { %v269_v45 = vadd.f32 %v267_v42, %v111_v9  ;;  %v4217_v46 = vpop.f32.mrb[19].mxu1 }
 0x3ba   :  { %4744 = vtanh.f32 %v269_v45  ;;  %v3763_v48 = vmul.f32 -1.442695, %v269_v45 }
 0x3bc   :  { %4746 = vpow2.f32 %v3763_v48 }
 0x3c4   :  { %v4745_v47 = vpop.eup %4744 }
 0x3c5   :  { %282 = vrot.lane.b32.xlu0 %v4745_v47, %s5063_s7 }
 0x3c6   :  { %v4747_v49 = vpop.eup %4746 }
 0x3c7   :  { %v273_v50 = vadd.f32 1.0, %v4747_v49 }
 0x3c9   :  { %4748 = vrcp.f32 %v273_v50 }
 0x3d3   :  { %v4749_v51 = vpop.eup %4748 }
 0x3d4   :  { %v280_v55 = vmul.f32 %v4749_v51, %v278_v54 }
 0x437   :  { %v283_v52 = vpop.permute.xlu0 %282 }
 0x438   :  { %v285_v53 = vmul.f32 %v4749_v51, %v283_v52 }
 0x43a   :  { %287 = vrot.lane.b32.xlu1 %v285_v53, %s5063_s7 }
 0x4ac   :  { %v288_v56 = vpop.permute.xlu1 %287 }
 0x4ad   :  { %v290_v57 = vadd.f32 %v288_v56, %v280_v55 }
 0x4af   :  { %4750 = vtanh.f32 %v290_v57  ;;  %v360_v19 = vrot.slane %v290_v57, 4 }
 0x4b9   :  { %v4751_v58 = vpop.eup %4750 }
 0x4ba   :  { %293 = vrot.lane.b32.xlu0 %v4751_v58, %s5063_s7 }
 0x52c   :  { %v294_v59 = vpop.permute.xlu0 %293 }
 0x52d   :  { %v5178_v60 = vmul.f32 %v4749_v51, %v294_v59 }
 0x52f   :  { %v303_v61 = vpack.c.bf16 %v5178_v60, %v5178_v60 }
 0x531   :  { %v305_v62 = vrot.slane %v303_v61, 2 }
 0x533   :  { %306 = vrot.lane.b32.xlu1 %v305_v62, %s5064_s8 }
 0x5a5   :  { %v307_v63 = vpop.permute.xlu1 %306 }
 0x5a6   :  { %4223 = vmatmul.mubr.msk.bf16.vlgmr.msra.gmra.mrb[20].mxu1 %vm67_vm1, %v307_v63 }
 0x5a7   :  { %4235 = vmatpush3.bf16.msra.mxu1 %v5112_v4  ;;  %4238 = vmatprep.mubr.msk.bf16.mxu1 %vm5061_vm0, %v5060_v0 }
 0x5a8   :  { %4236 = vmatprep.subr.bf16.mxu1 %v5060_v0 }
 0x5ab   :  { %4237 = vmatpush3.bf16.msra.mxu1 %v5121_v6 }
 0x5ac   :  { %4250 = vmatprep.subr.bf16.mxu1 %v5060_v0 }
 0x679   :  { %v345_v1 = vpop.f32.mrb[20].mxu1 }
 0x67a   :  { %v351_v2 = vadd.f32 %v345_v1, %v5152_v11  ;;  %v4224_v3 = vpop.f32.mrb[21].mxu1 }
 0x67b   :  { %v348_v5 = vpop.f32.mrb[22].mxu1 }
 0x67c   :  { %4752 = vtanh.f32 %v351_v2  ;;  %v4225_v7 = vpop.f32.mrb[23].mxu1  ;;  %v3765_v9 = vmul.f32 -1.442695, %v351_v2 }
 0x67e   :  { %4754 = vpow2.f32 %v3765_v9 }
 0x686   :  { %v4753_v8 = vpop.eup %4752 }
 0x687   :  { %364 = vrot.lane.b32.xlu0 %v4753_v8, %s5063_s7 }
 0x688   :  { %v4755_v10 = vpop.eup %4754 }
 0x689   :  { %v355_v12 = vadd.f32 1.0, %v4755_v10 }
 0x68b   :  { %4756 = vrcp.f32 %v355_v12 }
 0x695   :  { %v4757_v14 = vpop.eup %4756 }
 0x696   :  { %v362_v20 = vmul.f32 %v4757_v14, %v360_v19 }
 0x6f9   :  { %v365_v16 = vpop.permute.xlu0 %364 }
 0x6fa   :  { %v367_v18 = vmul.f32 %v4757_v14, %v365_v16 }
 0x6fc   :  { %369 = vrot.lane.b32.xlu1 %v367_v18, %s5063_s7 }
 0x76e   :  { %v370_v21 = vpop.permute.xlu1 %369 }
 0x76f   :  { %v372_v22 = vadd.f32 %v370_v21, %v362_v20 }
 0x771   :  { %4758 = vtanh.f32 %v372_v22  ;;  %v443_v42 = vrot.slane %v372_v22, 4 }
 0x77b   :  { %v4759_v23 = vpop.eup %4758 }
 0x77c   :  { %375 = vrot.lane.b32.xlu0 %v4759_v23, %s5063_s7 }
 0x7ee   :  { %v376_v24 = vpop.permute.xlu0 %375 }
 0x7ef   :  { %v5194_v25 = vmul.f32 %v4757_v14, %v376_v24 }
 0x7f1   :  { %v384_v26 = vpack.c.bf16 %v5194_v25, %v5194_v25 }
 0x7f3   :  { %386 = vrot.lane.b32.xlu1 %v384_v26, %s5064_s8 }
 0x865   :  { %v387_v27 = vpop.permute.xlu1 %386 }
 0x866   :  { %4231 = vmatmul.mubr.msk.bf16.vlgmr.msra.gmra.mrb[0].mxu0 %vm67_vm1, %v387_v27 }
 0x867   :  { %4243 = vmatpush3.bf16.msra.mxu0 %v5112_v4  ;;  %4246 = vmatprep.mubr.msk.bf16.mxu0 %vm5061_vm0, %v5060_v0 }
 0x868   :  { %4244 = vmatprep.subr.bf16.mxu0 %v5060_v0 }
 0x86b   :  { %4245 = vmatpush3.bf16.msra.mxu0 %v5121_v6 }
 0x86c   :  { %4258 = vmatprep.subr.bf16.mxu0 %v5060_v0 }
 0x939   :  { %v425_v28 = vpop.f32.mrb[0].mxu0 }
 0x93a   :  { %v432_v29 = vrot.slane %v425_v28, 4  ;;  %v4232_v30 = vpop.f32.mrb[1].mxu0 }
 0x93b   :  { %v428_v31 = vpop.f32.mrb[2].mxu0 }
 0x93c   :  { %v434_v32 = vadd.f32 %v432_v29, %v5152_v11  ;;  %v4233_v33 = vpop.f32.mrb[3].mxu0 }
 0x93e   :  { %4760 = vtanh.f32 %v434_v32  ;;  %v3767_v35 = vmul.f32 -1.442695, %v434_v32 }
 0x940   :  { %4762 = vpow2.f32 %v3767_v35 }
 0x948   :  { %v4761_v34 = vpop.eup %4760 }
 0x949   :  { %447 = vrot.lane.b32.xlu0 %v4761_v34, %s5063_s7 }
 0x94a   :  { %v4763_v36 = vpop.eup %4762 }
 0x94b   :  { %v438_v37 = vadd.f32 1.0, %v4763_v36 }
 0x94d   :  { %4764 = vrcp.f32 %v438_v37 }
 0x957   :  { %v4765_v39 = vpop.eup %4764 }
 0x958   :  { %v445_v43 = vmul.f32 %v4765_v39, %v443_v42 }
 0x9bb   :  { %v448_v40 = vpop.permute.xlu0 %447 }
 0x9bc   :  { %v450_v41 = vmul.f32 %v4765_v39, %v448_v40 }
 0x9be   :  { %452 = vrot.lane.b32.xlu1 %v450_v41, %s5063_s7 }
 0xa30   :  { %v453_v44 = vpop.permute.xlu1 %452 }
 0xa31   :  { %v455_v45 = vadd.f32 %v453_v44, %v445_v43 }
 0xa33   :  { %4766 = vtanh.f32 %v455_v45  ;;  %v524_v1 = vrot.slane %v455_v45, 4 }
 0xa3d   :  { %v4767_v11 = vpop.eup %4766 }
 0xa3e   :  { %458 = vrot.lane.b32.xlu0 %v4767_v11, %s5063_s7 }
 0xab0   :  { %v459_v46 = vpop.permute.xlu0 %458 }
 0xab1   :  { %v5210_v47 = vmul.f32 %v4765_v39, %v459_v46 }
 0xab3   :  { %v467_v48 = vpack.c.bf16 %v5210_v47, %v5210_v47 }
 0xab5   :  { %v469_v49 = vrot.slane %v467_v48, 2 }
 0xab7   :  { %470 = vrot.lane.b32.xlu1 %v469_v49, %s5064_s8 }
 0xb29   :  { %v471_v50 = vpop.permute.xlu1 %470 }
 0xb2a   :  { %4239 = vmatmul.mubr.msk.bf16.vlgmr.msra.gmra.mrb[24].mxu1 %vm67_vm1, %v471_v50 }
 0xb2b   :  { %4251 = vmatpush3.bf16.msra.mxu1 %v5112_v4  ;;  %4254 = vmatprep.mubr.msk.bf16.mxu1 %vm5061_vm0, %v5060_v0 }
 0xb2c   :  { %4252 = vmatprep.subr.bf16.mxu1 %v5060_v0 }
 0xb2f   :  { %4253 = vmatpush3.bf16.msra.mxu1 %v5121_v6 }
 0xb30   :  { %4266 = vmatprep.subr.bf16.mxu1 %v5060_v0 }
 0xbfd   :  { %v509_v51 = vpop.f32.mrb[24].mxu1 }
 0xbfe   :  { %v515_v52 = vadd.f32 %v509_v51, %v5154_v13  ;;  %v4240_v53 = vpop.f32.mrb[25].mxu1 }
 0xbff   :  { %v512_v54 = vpop.f32.mrb[26].mxu1 }
 0xc00   :  { %4768 = vtanh.f32 %v515_v52  ;;  %v4241_v55 = vpop.f32.mrb[27].mxu1  ;;  %v3769_v57 = vmul.f32 -1.442695, %v515_v52 }
 0xc02   :  { %4770 = vpow2.f32 %v3769_v57 }
 0xc0a   :  { %v4769_v56 = vpop.eup %4768 }
 0xc0b   :  { %528 = vrot.lane.b32.xlu0 %v4769_v56, %s5063_s7 }
 0xc0c   :  { %v4771_v58 = vpop.eup %4770 }
 0xc0d   :  { %v519_v59 = vadd.f32 1.0, %v4771_v58 }
 0xc0f   :  { %4772 = vrcp.f32 %v519_v59 }
 0xc19   :  { %v4773_v61 = vpop.eup %4772 }
 0xc1a   :  { %v526_v2 = vmul.f32 %v4773_v61, %v524_v1 }
 0xc7d   :  { %v529_v62 = vpop.permute.xlu0 %528 }
 0xc7e   :  { %v531_v63 = vmul.f32 %v4773_v61, %v529_v62 }
 0xc80   :  { %533 = vrot.lane.b32.xlu1 %v531_v63, %s5063_s7 }
 0xcf2   :  { %v534_v3 = vpop.permute.xlu1 %533 }
 0xcf3   :  { %v536_v5 = vadd.f32 %v534_v3, %v526_v2 }
 0xcf5   :  { %4774 = vtanh.f32 %v536_v5  ;;  %v607_v30 = vrot.slane %v536_v5, 4 }
 0xcff   :  { %v4775_v7 = vpop.eup %4774 }
 0xd00   :  { %539 = vrot.lane.b32.xlu0 %v4775_v7, %s5063_s7 }
 0xd72   :  { %v540_v8 = vpop.permute.xlu0 %539 }
 0xd73   :  { %v5226_v9 = vmul.f32 %v4773_v61, %v540_v8 }
 0xd75   :  { %v548_v10 = vpack.c.bf16 %v5226_v9, %v5226_v9 }
 0xd77   :  { %550 = vrot.lane.b32.xlu1 %v548_v10, %s5064_s8 }
 0xde9   :  { %v551_v12 = vpop.permute.xlu1 %550 }
 0xdea   :  { %4247 = vmatmul.mubr.msk.bf16.vlgmr.msra.gmra.mrb[4].mxu0 %vm67_vm1, %v551_v12 }
 0xdeb   :  { %4259 = vmatpush3.bf16.msra.mxu0 %v5112_v4  ;;  %4262 = vmatprep.mubr.msk.bf16.mxu0 %vm5061_vm0, %v5060_v0 }
 0xdec   :  { %4260 = vmatprep.subr.bf16.mxu0 %v5060_v0 }
 0xdef   :  { %4261 = vmatpush3.bf16.msra.mxu0 %v5121_v6 }
 0xdf0   :  { %4274 = vmatprep.subr.bf16.mxu0 %v5060_v0 }
 0xebd   :  { %v589_v14 = vpop.f32.mrb[4].mxu0 }
 0xebe   :  { %v596_v16 = vrot.slane %v589_v14, 4  ;;  %v4248_v18 = vpop.f32.mrb[5].mxu0 }
 0xebf   :  { %v592_v19 = vpop.f32.mrb[6].mxu0 }
 0xec0   :  { %v598_v20 = vadd.f32 %v596_v16, %v5154_v13  ;;  %v4249_v21 = vpop.f32.mrb[7].mxu0 }
 0xec2   :  { %4776 = vtanh.f32 %v598_v20  ;;  %v3771_v23 = vmul.f32 -1.442695, %v598_v20 }
 0xec4   :  { %4778 = vpow2.f32 %v3771_v23 }
 0xecc   :  { %v4777_v22 = vpop.eup %4776 }
 0xecd   :  { %611 = vrot.lane.b32.xlu0 %v4777_v22, %s5063_s7 }
 0xece   :  { %v4779_v24 = vpop.eup %4778 }
 0xecf   :  { %v602_v26 = vadd.f32 1.0, %v4779_v24 }
 0xed1   :  { %4780 = vrcp.f32 %v602_v26 }
 0xedb   :  { %v4781_v27 = vpop.eup %4780 }
 0xedc   :  { %v609_v31 = vmul.f32 %v4781_v27, %v607_v30 }
 0xf3f   :  { %v612_v28 = vpop.permute.xlu0 %611 }
 0xf40   :  { %v614_v29 = vmul.f32 %v4781_v27, %v612_v28 }
 0xf42   :  { %616 = vrot.lane.b32.xlu1 %v614_v29, %s5063_s7 }
 0xfb4   :  { %v617_v32 = vpop.permute.xlu1 %616 }
 0xfb5   :  { %v619_v33 = vadd.f32 %v617_v32, %v609_v31 }
 0xfb7   :  { %4782 = vtanh.f32 %v619_v33  ;;  %v688_v52 = vrot.slane %v619_v33, 4 }
 0xfc1   :  { %v4783_v13 = vpop.eup %4782 }
 0xfc2   :  { %622 = vrot.lane.b32.xlu0 %v4783_v13, %s5063_s7 }
0x1034   :  { %v623_v34 = vpop.permute.xlu0 %622 }
0x1035   :  { %v5242_v35 = vmul.f32 %v4781_v27, %v623_v34 }
0x1037   :  { %v631_v36 = vpack.c.bf16 %v5242_v35, %v5242_v35 }
0x1039   :  { %v633_v37 = vrot.slane %v631_v36, 2 }
0x103b   :  { %634 = vrot.lane.b32.xlu1 %v633_v37, %s5064_s8 }
0x10ad   :  { %v635_v39 = vpop.permute.xlu1 %634 }
0x10ae   :  { %4255 = vmatmul.mubr.msk.bf16.vlgmr.msra.gmra.mrb[28].mxu1 %vm67_vm1, %v635_v39 }
0x10af   :  { %4267 = vmatpush3.bf16.msra.mxu1 %v5112_v4  ;;  %4270 = vmatprep.mubr.msk.bf16.mxu1 %vm5061_vm0, %v5060_v0 }
0x10b0   :  { %4268 = vmatprep.subr.bf16.mxu1 %v5060_v0 }
0x10b3   :  { %4269 = vmatpush3.bf16.msra.mxu1 %v5121_v6 }
0x1181   :  { %v673_v40 = vpop.f32.mrb[28].mxu1 }
0x1182   :  { %v679_v41 = vadd.f32 %v673_v40, %v5156_v15  ;;  %v4256_v42 = vpop.f32.mrb[29].mxu1 }
0x1183   :  { %v676_v43 = vpop.f32.mrb[30].mxu1 }
0x1184   :  { %4784 = vtanh.f32 %v679_v41  ;;  %v4257_v44 = vpop.f32.mrb[31].mxu1  ;;  %v3773_v11 = vmul.f32 -1.442695, %v679_v41 }
0x1186   :  { %4786 = vpow2.f32 %v3773_v11 }
0x118e   :  { %v4785_v45 = vpop.eup %4784 }
0x118f   :  { %692 = vrot.lane.b32.xlu0 %v4785_v45, %s5063_s7 }
0x1190   :  { %v4787_v46 = vpop.eup %4786 }
0x1191   :  { %v683_v48 = vadd.f32 1.0, %v4787_v46 }
0x1193   :  { %4788 = vrcp.f32 %v683_v48 }
0x119d   :  { %v4789_v49 = vpop.eup %4788 }
0x119e   :  { %v690_v53 = vmul.f32 %v4789_v49, %v688_v52 }
0x1201   :  { %v693_v50 = vpop.permute.xlu0 %692 }
0x1202   :  { %v695_v51 = vmul.f32 %v4789_v49, %v693_v50 }
0x1204   :  { %697 = vrot.lane.b32.xlu1 %v695_v51, %s5063_s7 }
0x1276   :  { %v698_v54 = vpop.permute.xlu1 %697 }
0x1277   :  { %v700_v55 = vadd.f32 %v698_v54, %v690_v53 }
0x1279   :  { %4790 = vtanh.f32 %v700_v55  ;;  %v771_v16 = vrot.slane %v700_v55, 4 }
0x1283   :  { %v4791_v56 = vpop.eup %4790 }
0x1284   :  { %703 = vrot.lane.b32.xlu0 %v4791_v56, %s5063_s7 }
0x12f6   :  { %v704_v57 = vpop.permute.xlu0 %703 }
0x12f7   :  { %v5257_v58 = vmul.f32 %v4789_v49, %v704_v57 }
0x12f9   :  { %v712_v59 = vpack.c.bf16 %v5257_v58, %v5257_v58 }
0x12fb   :  { %714 = vrot.lane.b32.xlu1 %v712_v59, %s5064_s8 }
0x136d   :  { %v715_v61 = vpop.permute.xlu1 %714 }
0x136e   :  { %4263 = vmatmul.mubr.msk.bf16.vlgmr.msra.gmra.mrb[8].mxu0 %vm67_vm1, %v715_v61 }
0x136f   :  { %4275 = vmatpush3.bf16.msra.mxu0 %v5112_v4  ;;  %4278 = vmatprep.mubr.msk.bf16.mxu0 %vm5061_vm0, %v5060_v0 }
0x1370   :  { %4276 = vmatprep.subr.bf16.mxu0 %v5060_v0 }
0x1373   :  { %4277 = vmatpush3.bf16.msra.mxu0 %v5121_v6 }
0x1374   :  { %4290 = vmatprep.subr.bf16.mxu0 %v5060_v0 }
0x1441   :  { %v753_v62 = vpop.f32.mrb[8].mxu0 }
0x1442   :  { %v760_v63 = vrot.slane %v753_v62, 4  ;;  %v4264_v1 = vpop.f32.mrb[9].mxu0 }
0x1443   :  { %v756_v2 = vpop.f32.mrb[10].mxu0 }
0x1444   :  { %v762_v3 = vadd.f32 %v760_v63, %v5156_v15  ;;  %v4265_v5 = vpop.f32.mrb[11].mxu0 }
0x1446   :  { %4792 = vtanh.f32 %v762_v3  ;;  %v3775_v4 = vmul.f32 -1.442695, %v762_v3 }
0x1448   :  { %4794 = vpow2.f32 %v3775_v4  ;;  %v5303_v4 = vld [vmem:[%s6113_s1 + $0x30] sm:$0xff]  }
0x1450   :  { %v4793_v7 = vpop.eup %4792 }
0x1451   :  { %775 = vrot.lane.b32.xlu0 %v4793_v7, %s5063_s7  ;;  %v4731_v7 = vld [vmem:[%s6113_s1 + $0x28] sm:$0xff]  }
0x1452   :  { %v4795_v8 = vpop.eup %4794 }
0x1453   :  { %v766_v10 = vadd.f32 1.0, %v4795_v8  ;;  %v4733_v8 = vld [vmem:[%s6114_s0 + $0x18] sm:$0xff]  }
0x1455   :  { %4796 = vrcp.f32 %v766_v10  ;;  %v5312_v10 = vld [vmem:[%s6113_s1 + $0x38] sm:$0xff]  }
0x145f   :  { %v4797_v12 = vpop.eup %4796 }
0x1460   :  { %v773_v18 = vmul.f32 %v4797_v12, %v771_v16 }
0x14c3   :  { %v776_v6 = vpop.permute.xlu0 %775 }
0x14c4   :  { %v778_v14 = vmul.f32 %v4797_v12, %v776_v6  ;;  %v4734_v6 = vld [vmem:[%s6114_s0 + $0x20] sm:$0x3f]  }
0x14c6   :  { %780 = vrot.lane.b32.xlu1 %v778_v14, %s5063_s7 }
0x1538   :  { %v781_v19 = vpop.permute.xlu1 %780 }
0x1539   :  { %v783_v20 = vadd.f32 %v781_v19, %v773_v18 }
0x153b   :  { %4798 = vtanh.f32 %v783_v20  ;;  %v852_v40 = vrot.slane %v783_v20, 4 }
0x1545   :  { %v4799_v15 = vpop.eup %4798 }
0x1546   :  { %786 = vrot.lane.b32.xlu0 %v4799_v15, %s5063_s7 }
0x15b8   :  { %v787_v21 = vpop.permute.xlu0 %786 }
0x15b9   :  { %v5273_v22 = vmul.f32 %v4797_v12, %v787_v21 }
0x15bb   :  { %v795_v23 = vpack.c.bf16 %v5273_v22, %v5273_v22 }
0x15bd   :  { %v797_v24 = vrot.slane %v795_v23, 2 }
0x15bf   :  { %798 = vrot.lane.b32.xlu1 %v797_v24, %s5064_s8 }
0x1631   :  { %v799_v26 = vpop.permute.xlu1 %798 }
0x1632   :  { %4271 = vmatmul.mubr.msk.bf16.vlgmr.msra.gmra.mrb[32].mxu1 %vm67_vm1, %v799_v26 }
0x1633   :  { %4286 = vmatprep.mubr.msk.bf16.mxu1 %vm67_vm1, %v4733_v8 }
0x1705   :  { %v837_v27 = vpop.f32.mrb[32].mxu1 }
0x1706   :  { %v843_v28 = vadd.f32 %v837_v27, %v5158_v17  ;;  %v4272_v29 = vpop.f32.mrb[33].mxu1 }
0x1707   :  { %v840_v30 = vpop.f32.mrb[34].mxu1 }
0x1708   :  { %4800 = vtanh.f32 %v843_v28  ;;  %v4273_v31 = vpop.f32.mrb[35].mxu1  ;;  %v3777_v33 = vmul.f32 -1.442695, %v843_v28 }
0x170a   :  { %4802 = vpow2.f32 %v3777_v33 }
0x1712   :  { %v4801_v32 = vpop.eup %4800 }
0x1713   :  { %856 = vrot.lane.b32.xlu0 %v4801_v32, %s5063_s7 }
0x1714   :  { %v4803_v13 = vpop.eup %4802 }
0x1715   :  { %v847_v34 = vadd.f32 1.0, %v4803_v13 }
0x1717   :  { %4804 = vrcp.f32 %v847_v34 }
0x1721   :  { %v4805_v36 = vpop.eup %4804 }
0x1722   :  { %v854_v41 = vmul.f32 %v4805_v36, %v852_v40 }
0x1785   :  { %v857_v37 = vpop.permute.xlu0 %856 }
0x1786   :  { %v859_v39 = vmul.f32 %v4805_v36, %v857_v37 }
0x1788   :  { %861 = vrot.lane.b32.xlu1 %v859_v39, %s5063_s7 }
0x17fa   :  { %v862_v42 = vpop.permute.xlu1 %861 }
0x17fb   :  { %v864_v43 = vadd.f32 %v862_v42, %v854_v41 }
0x17fd   :  { %4806 = vtanh.f32 %v864_v43  ;;  %v935_v1 = vrot.slane %v864_v43, 4 }
0x1807   :  { %v4807_v44 = vpop.eup %4806 }
0x1808   :  { %867 = vrot.lane.b32.xlu0 %v4807_v44, %s5063_s7 }
0x187a   :  { %v868_v45 = vpop.permute.xlu0 %867 }
0x187b   :  { %v5283_v11 = vmul.f32 %v4805_v36, %v868_v45 }
0x187d   :  { %v876_v46 = vpack.c.bf16 %v5283_v11, %v5283_v11 }
0x187f   :  { %878 = vrot.lane.b32.xlu1 %v876_v46, %s5064_s8 }
0x18f1   :  { %v879_v48 = vpop.permute.xlu1 %878 }
0x18f2   :  { %4279 = vmatmul.mubr.msk.bf16.vlgmr.msra.gmra.mrb[12].mxu0 %vm67_vm1, %v879_v48 }
0x18f3   :  { %4294 = vmatprep.mubr.msk.bf16.mxu0 %vm5061_vm0, %v5060_v0  ;;  %4291 = vmatpush3.bf16.msra.mxu0 %v5303_v4 }
0x18f4   :  { %4292 = vmatprep.subr.bf16.mxu0 %v5060_v0 }
0x18f7   :  { %4293 = vmatpush3.bf16.msra.mxu0 %v5312_v10 }
0x18f8   :  { %4306 = vmatprep.subr.bf16.mxu0 %v5060_v0 }
0x19c5   :  { %v917_v49 = vpop.f32.mrb[12].mxu0 }
0x19c6   :  { %v924_v50 = vrot.slane %v917_v49, 4  ;;  %v4280_v51 = vpop.f32.mrb[13].mxu0 }
0x19c7   :  { %v920_v52 = vpop.f32.mrb[14].mxu0 }
0x19c8   :  { %v926_v53 = vadd.f32 %v924_v50, %v5158_v17  ;;  %v4281_v54 = vpop.f32.mrb[15].mxu0  ;;  %v4730_v17 = vld [vmem:[%s6113_s1 + $0x20] sm:$0xff]  }
0x19c9   :  { %4282 = vmatprep.subr.bf16.mxu1 %v4730_v17 }
0x19ca   :  { %4808 = vtanh.f32 %v926_v53  ;;  %v3779_v56 = vmul.f32 -1.442695, %v926_v53  ;;  %4283 = vmatpush3.bf16.msra.mxu1 %v4730_v17 }
0x19cb   :  { %4284 = vmatprep.subr.bf16.mxu1 %v4731_v7 }
0x19cc   :  { %4810 = vpow2.f32 %v3779_v56 }
0x19ce   :  { %4285 = vmatpush3.bf16.msra.mxu1 %v4731_v7 }
0x19cf   :  { %4298 = vmatprep.subr.bf16.mxu1 %v5060_v0 }
0x19d1   :  { %4287 = vmatmul.mubr.msk.bf16.vlgmr.msra.gmra.mrb[36].mxu1 %vm67_vm1, %v4734_v6 }
0x19d2   :  { %4299 = vmatpush3.bf16.msra.mxu1 %v5303_v4  ;;  %4302 = vmatprep.mubr.msk.bf16.mxu1 %vm5061_vm0, %v5060_v0 }
0x19d3   :  { %4300 = vmatprep.subr.bf16.mxu1 %v5060_v0 }
0x19d4   :  { %v4809_v55 = vpop.eup %4808 }
0x19d5   :  { %939 = vrot.lane.b32.xlu0 %v4809_v55, %s5063_s7 }
0x19d6   :  { %v4811_v57 = vpop.eup %4810  ;;  %4301 = vmatpush3.bf16.msra.mxu1 %v5312_v10 }
0x19d7   :  { %v930_v59 = vadd.f32 1.0, %v4811_v57  ;;  %4314 = vmatprep.subr.bf16.mxu1 %v5060_v0 }
0x19d9   :  { %4812 = vrcp.f32 %v930_v59 }
0x19e3   :  { %v4813_v61 = vpop.eup %4812 }
0x19e4   :  { %v937_v2 = vmul.f32 %v4813_v61, %v935_v1 }
0x1a47   :  { %v940_v62 = vpop.permute.xlu0 %939 }
0x1a48   :  { %v942_v63 = vmul.f32 %v4813_v61, %v940_v62 }
0x1a4a   :  { %944 = vrot.lane.b32.xlu1 %v942_v63, %s5063_s7 }
0x1aa4   :  { %v5335_v20 = vpop.f32.mrb[36].mxu1 }
0x1aa5   :  { %v1025_v15 = vpop.f32.mrb[37].mxu1 }
0x1aa6   :  { %v5337_v21 = vpop.f32.mrb[38].mxu1 }
0x1aa7   :  { %v5339_v23 = vpop.f32.mrb[39].mxu1 }
0x1abc   :  { %v945_v3 = vpop.permute.xlu1 %944 }
0x1abd   :  { %v947_v5 = vadd.f32 %v945_v3, %v937_v2 }
0x1abf   :  { %4814 = vtanh.f32 %v947_v5  ;;  %v1109_v39 = vrot.slane %v947_v5, 4 }
0x1ac9   :  { %v4815_v12 = vpop.eup %4814 }
0x1aca   :  { %950 = vrot.lane.b32.xlu0 %v4815_v12, %s5063_s7 }
0x1b3c   :  { %v951_v14 = vpop.permute.xlu0 %950 }
0x1b3d   :  { %v5330_v16 = vmul.f32 %v4813_v61, %v951_v14 }
0x1b3f   :  { %v1040_v18 = vpack.c.bf16 %v5330_v16, %v5330_v16 }
0x1b41   :  { %v1042_v19 = vrot.slane %v1040_v18, 2 }
0x1b43   :  { %1043 = vrot.lane.b32.xlu1 %v1042_v19, %s5064_s8 }
0x1bb5   :  { %v1044_v24 = vpop.permute.xlu1 %1043 }
0x1bb6   :  { %4295 = vmatmul.mubr.msk.bf16.vlgmr.msra.gmra.mrb[16].mxu0 %vm67_vm1, %v1044_v24 }
0x1bb7   :  { %4307 = vmatpush3.bf16.msra.mxu0 %v5303_v4  ;;  %4310 = vmatprep.mubr.msk.bf16.mxu0 %vm5061_vm0, %v5060_v0 }
0x1bb8   :  { %4308 = vmatprep.subr.bf16.mxu0 %v5060_v0 }
0x1bbb   :  { %4309 = vmatpush3.bf16.msra.mxu0 %v5312_v10 }
0x1bbc   :  { %4322 = vmatprep.subr.bf16.mxu0 %v5060_v0 }
0x1c89   :  { %v1094_v26 = vpop.f32.mrb[16].mxu0 }
0x1c8a   :  { %v1100_v27 = vadd.f32 %v1094_v26, %v1025_v15  ;;  %v4296_v28 = vpop.f32.mrb[17].mxu0 }
0x1c8b   :  { %v1097_v29 = vpop.f32.mrb[18].mxu0 }
0x1c8c   :  { %4816 = vtanh.f32 %v1100_v27  ;;  %v4297_v30 = vpop.f32.mrb[19].mxu0  ;;  %v3789_v32 = vmul.f32 -1.442695, %v1100_v27 }
0x1c8e   :  { %4818 = vpow2.f32 %v3789_v32 }
0x1c96   :  { %v4817_v31 = vpop.eup %4816 }
0x1c97   :  { %1113 = vrot.lane.b32.xlu0 %v4817_v31, %s5063_s7 }
0x1c98   :  { %v4819_v33 = vpop.eup %4818 }
0x1c99   :  { %v1104_v13 = vadd.f32 1.0, %v4819_v33 }
0x1c9b   :  { %4820 = vrcp.f32 %v1104_v13 }
0x1ca5   :  { %v4821_v34 = vpop.eup %4820 }
0x1ca6   :  { %v1111_v40 = vmul.f32 %v4821_v34, %v1109_v39 }
0x1d09   :  { %v1114_v36 = vpop.permute.xlu0 %1113 }
0x1d0a   :  { %v1116_v37 = vmul.f32 %v4821_v34, %v1114_v36 }
0x1d0c   :  { %1118 = vrot.lane.b32.xlu1 %v1116_v37, %s5063_s7 }
0x1d7e   :  { %v1119_v41 = vpop.permute.xlu1 %1118 }
0x1d7f   :  { %v1121_v42 = vadd.f32 %v1119_v41, %v1111_v40 }
0x1d81   :  { %4822 = vtanh.f32 %v1121_v42  ;;  %v1192_v1 = vrot.slane %v1121_v42, 4 }
0x1d8b   :  { %v4823_v43 = vpop.eup %4822 }
0x1d8c   :  { %1124 = vrot.lane.b32.xlu0 %v4823_v43, %s5063_s7 }
0x1dfe   :  { %v1125_v44 = vpop.permute.xlu0 %1124 }
0x1dff   :  { %v5351_v45 = vmul.f32 %v4821_v34, %v1125_v44 }
0x1e01   :  { %v1133_v46 = vpack.c.bf16 %v5351_v45, %v5351_v45 }
0x1e03   :  { %1135 = vrot.lane.b32.xlu1 %v1133_v46, %s5064_s8 }
0x1e75   :  { %v1136_v48 = vpop.permute.xlu1 %1135 }
0x1e76   :  { %4303 = vmatmul.mubr.msk.bf16.vlgmr.msra.gmra.mrb[40].mxu1 %vm67_vm1, %v1136_v48 }
0x1e77   :  { %4315 = vmatpush3.bf16.msra.mxu1 %v5303_v4  ;;  %4318 = vmatprep.mubr.msk.bf16.mxu1 %vm5061_vm0, %v5060_v0 }
0x1e78   :  { %4316 = vmatprep.subr.bf16.mxu1 %v5060_v0 }
0x1e7b   :  { %4317 = vmatpush3.bf16.msra.mxu1 %v5312_v10 }
0x1e7c   :  { %4330 = vmatprep.subr.bf16.mxu1 %v5060_v0 }
0x1f49   :  { %v1174_v49 = vpop.f32.mrb[40].mxu1 }
0x1f4a   :  { %v1181_v50 = vrot.slane %v1174_v49, 4  ;;  %v4304_v51 = vpop.f32.mrb[41].mxu1 }
0x1f4b   :  { %v1177_v52 = vpop.f32.mrb[42].mxu1 }
0x1f4c   :  { %v1183_v53 = vadd.f32 %v1181_v50, %v1025_v15  ;;  %v4305_v54 = vpop.f32.mrb[43].mxu1 }
0x1f4e   :  { %4824 = vtanh.f32 %v1183_v53  ;;  %v3791_v56 = vmul.f32 -1.442695, %v1183_v53 }
0x1f50   :  { %4826 = vpow2.f32 %v3791_v56 }
0x1f58   :  { %v4825_v55 = vpop.eup %4824 }
0x1f59   :  { %1196 = vrot.lane.b32.xlu0 %v4825_v55, %s5063_s7 }
0x1f5a   :  { %v4827_v57 = vpop.eup %4826 }
0x1f5b   :  { %v1187_v59 = vadd.f32 1.0, %v4827_v57 }
0x1f5d   :  { %4828 = vrcp.f32 %v1187_v59 }
0x1f67   :  { %v4829_v61 = vpop.eup %4828 }
0x1f68   :  { %v1194_v2 = vmul.f32 %v4829_v61, %v1192_v1 }
0x1fcb   :  { %v1197_v62 = vpop.permute.xlu0 %1196 }
0x1fcc   :  { %v1199_v63 = vmul.f32 %v4829_v61, %v1197_v62 }
0x1fce   :  { %1201 = vrot.lane.b32.xlu1 %v1199_v63, %s5063_s7 }
0x2040   :  { %v1202_v3 = vpop.permute.xlu1 %1201 }
0x2041   :  { %v1204_v5 = vadd.f32 %v1202_v3, %v1194_v2 }
0x2043   :  { %4830 = vtanh.f32 %v1204_v5  ;;  %v1273_v13 = vrot.slane %v1204_v5, 4 }
0x204d   :  { %v4831_v17 = vpop.eup %4830 }
0x204e   :  { %1207 = vrot.lane.b32.xlu0 %v4831_v17, %s5063_s7 }
0x20c0   :  { %v1208_v7 = vpop.permute.xlu0 %1207 }
0x20c1   :  { %v5366_v8 = vmul.f32 %v4829_v61, %v1208_v7 }
0x20c3   :  { %v1216_v12 = vpack.c.bf16 %v5366_v8, %v5366_v8 }
0x20c5   :  { %v1218_v6 = vrot.slane %v1216_v12, 2 }
0x20c7   :  { %1219 = vrot.lane.b32.xlu1 %v1218_v6, %s5064_s8 }
0x2139   :  { %v1220_v14 = vpop.permute.xlu1 %1219 }
0x213a   :  { %4311 = vmatmul.mubr.msk.bf16.vlgmr.msra.gmra.mrb[20].mxu0 %vm67_vm1, %v1220_v14 }
0x213b   :  { %4323 = vmatpush3.bf16.msra.mxu0 %v5303_v4  ;;  %4326 = vmatprep.mubr.msk.bf16.mxu0 %vm5061_vm0, %v5060_v0 }
0x213c   :  { %4324 = vmatprep.subr.bf16.mxu0 %v5060_v0 }
0x213f   :  { %4325 = vmatpush3.bf16.msra.mxu0 %v5312_v10 }
0x2140   :  { %4338 = vmatprep.subr.bf16.mxu0 %v5060_v0 }
0x220d   :  { %v1258_v18 = vpop.f32.mrb[20].mxu0 }
0x220e   :  { %v1264_v19 = vadd.f32 %v1258_v18, %v5339_v23  ;;  %v4312_v15 = vpop.f32.mrb[21].mxu0 }
0x220f   :  { %v1261_v24 = vpop.f32.mrb[22].mxu0 }
0x2210   :  { %4832 = vtanh.f32 %v1264_v19  ;;  %v4313_v26 = vpop.f32.mrb[23].mxu0  ;;  %v3793_v28 = vmul.f32 -1.442695, %v1264_v19 }
0x2212   :  { %4834 = vpow2.f32 %v3793_v28 }
0x221a   :  { %v4833_v27 = vpop.eup %4832 }
0x221b   :  { %1277 = vrot.lane.b32.xlu0 %v4833_v27, %s5063_s7 }
0x221c   :  { %v4835_v29 = vpop.eup %4834 }
0x221d   :  { %v1268_v30 = vadd.f32 1.0, %v4835_v29 }
0x221f   :  { %4836 = vrcp.f32 %v1268_v30 }
0x2229   :  { %v4837_v31 = vpop.eup %4836 }
0x222a   :  { %v1275_v34 = vmul.f32 %v4837_v31, %v1273_v13 }
0x228d   :  { %v1278_v32 = vpop.permute.xlu0 %1277 }
0x228e   :  { %v1280_v33 = vmul.f32 %v4837_v31, %v1278_v32 }
0x2290   :  { %1282 = vrot.lane.b32.xlu1 %v1280_v33, %s5063_s7 }
0x2302   :  { %v1283_v36 = vpop.permute.xlu1 %1282 }
0x2303   :  { %v1285_v37 = vadd.f32 %v1283_v36, %v1275_v34 }
0x2305   :  { %4838 = vtanh.f32 %v1285_v37  ;;  %v1356_v61 = vrot.slane %v1285_v37, 4 }
0x230f   :  { %v4839_v39 = vpop.eup %4838 }
0x2310   :  { %1288 = vrot.lane.b32.xlu0 %v4839_v39, %s5063_s7 }
0x2382   :  { %v1289_v40 = vpop.permute.xlu0 %1288 }
0x2383   :  { %v5382_v41 = vmul.f32 %v4837_v31, %v1289_v40 }
0x2385   :  { %v1297_v42 = vpack.c.bf16 %v5382_v41, %v5382_v41 }
0x2387   :  { %1299 = vrot.lane.b32.xlu1 %v1297_v42, %s5064_s8 }
0x23f9   :  { %v1300_v43 = vpop.permute.xlu1 %1299 }
0x23fa   :  { %4319 = vmatmul.mubr.msk.bf16.vlgmr.msra.gmra.mrb[44].mxu1 %vm67_vm1, %v1300_v43 }
0x23fb   :  { %4331 = vmatpush3.bf16.msra.mxu1 %v5303_v4  ;;  %4334 = vmatprep.mubr.msk.bf16.mxu1 %vm5061_vm0, %v5060_v0 }
0x23fc   :  { %4332 = vmatprep.subr.bf16.mxu1 %v5060_v0 }
0x23ff   :  { %4333 = vmatpush3.bf16.msra.mxu1 %v5312_v10 }
0x24cd   :  { %v1338_v44 = vpop.f32.mrb[44].mxu1 }
0x24ce   :  { %v1345_v46 = vrot.slane %v1338_v44, 4  ;;  %v4320_v48 = vpop.f32.mrb[45].mxu1 }
0x24cf   :  { %v1341_v49 = vpop.f32.mrb[46].mxu1 }
0x24d0   :  { %v1347_v50 = vadd.f32 %v1345_v46, %v5339_v23  ;;  %v4321_v51 = vpop.f32.mrb[47].mxu1 }
0x24d2   :  { %4840 = vtanh.f32 %v1347_v50  ;;  %v3795_v53 = vmul.f32 -1.442695, %v1347_v50 }
0x24d4   :  { %4842 = vpow2.f32 %v3795_v53 }
0x24dc   :  { %v4841_v52 = vpop.eup %4840 }
0x24dd   :  { %1360 = vrot.lane.b32.xlu0 %v4841_v52, %s5063_s7 }
0x24de   :  { %v4843_v54 = vpop.eup %4842 }
0x24df   :  { %v1351_v55 = vadd.f32 1.0, %v4843_v54 }
0x24e1   :  { %4844 = vrcp.f32 %v1351_v55 }
0x24eb   :  { %v4845_v56 = vpop.eup %4844 }
0x24ec   :  { %v1358_v62 = vmul.f32 %v4845_v56, %v1356_v61 }
0x254f   :  { %v1361_v57 = vpop.permute.xlu0 %1360 }
0x2550   :  { %v1363_v59 = vmul.f32 %v4845_v56, %v1361_v57 }
0x2552   :  { %1365 = vrot.lane.b32.xlu1 %v1363_v59, %s5063_s7 }
0x25c4   :  { %v1366_v63 = vpop.permute.xlu1 %1365 }
0x25c5   :  { %v1368_v1 = vadd.f32 %v1366_v63, %v1358_v62 }
0x25c7   :  { %4846 = vtanh.f32 %v1368_v1 }
0x25d1   :  { %v4847_v23 = vpop.eup %4846 }
0x25d2   :  { %1371 = vrot.lane.b32.xlu0 %v4847_v23, %s5063_s7 }
0x2644   :  { %v1372_v2 = vpop.permute.xlu0 %1371 }
0x2645   :  { %v5397_v3 = vmul.f32 %v4845_v56, %v1372_v2 }
0x2647   :  { %v1380_v5 = vpack.c.bf16 %v5397_v3, %v5397_v3 }
0x2649   :  { %v1382_v17 = vrot.slane %v1380_v5, 2 }
0x264b   :  { %1383 = vrot.lane.b32.xlu1 %v1382_v17, %s5064_s8 }
0x26bd   :  { %v1384_v7 = vpop.permute.xlu1 %1383 }
0x26be   :  { %4327 = vmatmul.mubr.msk.bf16.vlgmr.msra.gmra.mrb[24].mxu0 %vm67_vm1, %v1384_v7 }
0x26bf   :  { %4339 = vmatpush3.bf16.msra.mxu0 %v5303_v4  ;;  %4342 = vmatprep.mubr.msk.bf16.mxu0 %vm5061_vm0, %v5060_v0 }
0x26c0   :  { %4340 = vmatprep.subr.bf16.mxu0 %v5060_v0 }
0x26c3   :  { %4341 = vmatpush3.bf16.msra.mxu0 %v5312_v10  ;;  %v1437_v10 = vrot.slane %v1368_v1, 4 }
0x2791   :  { %v1422_v12 = vpop.f32.mrb[24].mxu0 }
0x2792   :  { %v1428_v6 = vadd.f32 %v5335_v20, %v1422_v12  ;;  %v4328_v14 = vpop.f32.mrb[25].mxu0 }
0x2793   :  { %v1425_v18 = vpop.f32.mrb[26].mxu0 }
0x2794   :  { %4848 = vtanh.f32 %v1428_v6  ;;  %v4329_v19 = vpop.f32.mrb[27].mxu0  ;;  %v3797_v24 = vmul.f32 -1.442695, %v1428_v6 }
0x2796   :  { %4850 = vpow2.f32 %v3797_v24 }
0x279e   :  { %v4849_v15 = vpop.eup %4848 }
0x279f   :  { %1441 = vrot.lane.b32.xlu0 %v4849_v15, %s5063_s7 }
0x27a0   :  { %v4851_v4 = vpop.eup %4850 }
0x27a1   :  { %v1432_v26 = vadd.f32 1.0, %v4851_v4 }
0x27a3   :  { %4852 = vrcp.f32 %v1432_v26 }
0x27ad   :  { %v4853_v27 = vpop.eup %4852 }
0x27ae   :  { %v1439_v30 = vmul.f32 %v4853_v27, %v1437_v10 }
0x2811   :  { %v1442_v28 = vpop.permute.xlu0 %1441 }
0x2812   :  { %v1444_v29 = vmul.f32 %v4853_v27, %v1442_v28  ;;  %v1628_v28 = vld [vmem:[%s6115_s2 + $0x18] sm:$0xff] }
0x2814   :  { %1446 = vrot.lane.b32.xlu1 %v1444_v29, %s5063_s7 }
0x2886   :  { %v1447_v31 = vpop.permute.xlu1 %1446 }
0x2887   :  { %v1449_v32 = vadd.f32 %v1447_v31, %v1439_v30  ;;  %v1629_v30 = vld [vmem:[%s6115_s2 + $0x20] sm:$0xff]  ;;  %v1630_v31 = vld [vmem:[%s6115_s2 + $0x28] sm:$0xff] }
0x2889   :  { %4854 = vtanh.f32 %v1449_v32  ;;  %v1520_v55 = vrot.slane %v1449_v32, 4  ;;  %v4647_v32 = vpack.c.bf16 %v1630_v31, %v1629_v30  ;;  %v5620_v31 = vld [vmem:[%s6116_s4 + $0x68] sm:$0xff] }
0x288b   :  { %4648 = vmatprep.subr.bf16.mxu0 %v4647_v32 }
0x2893   :  { %v4855_v33 = vpop.eup %4854 }
0x2894   :  { %1452 = vrot.lane.b32.xlu0 %v4855_v33, %s5063_s7 }
0x2906   :  { %v1453_v13 = vpop.permute.xlu0 %1452 }
0x2907   :  { %v1455_v34 = vmul.f32 %v4853_v27, %v1453_v13  ;;  %v1627_v27 = vld [vmem:[%s6115_s2 + $0x10] sm:$0xff] }
0x2908   :  { %v4645_v10 = vpack.c.bf16 %v1628_v28, %v1627_v27  ;;  %v5606_v28 = vld [vmem:[%s6116_s4 + $0x58] sm:$0xff] }
0x2909   :  { %v1461_v36 = vpack.c.bf16 %v1455_v34, %v1455_v34 }
0x290b   :  { %1463 = vrot.lane.b32.xlu1 %v1461_v36, %s5064_s8  ;;  %v1632_v36 = vld [vmem:[%s6115_s2 + $0x38] sm:$0xff] }
0x297d   :  { %v1464_v37 = vpop.permute.xlu1 %1463 }
0x297e   :  { %4335 = vmatmul.mubr.msk.bf16.vlgmr.msra.gmra.mrb[48].mxu1 %vm67_vm1, %v1464_v37 }
0x297f   :  { %4354 = vmatprep.mubr.msk.f32.mxu1 %vm5061_vm0, %v5060_v0 }
0x2a51   :  { %v1502_v39 = vpop.f32.mrb[48].mxu1 }
0x2a52   :  { %v1509_v40 = vrot.slane %v1502_v39, 4  ;;  %v4336_v42 = vpop.f32.mrb[49].mxu1 }
0x2a53   :  { %v1505_v43 = vpop.f32.mrb[50].mxu1 }
0x2a54   :  { %v1511_v44 = vadd.f32 %v5335_v20, %v1509_v40  ;;  %v4337_v46 = vpop.f32.mrb[51].mxu1 }
0x2a56   :  { %4856 = vtanh.f32 %v1511_v44  ;;  %v3799_v49 = vmul.f32 -1.442695, %v1511_v44 }
0x2a58   :  { %4858 = vpow2.f32 %v3799_v49 }
0x2a60   :  { %v4857_v48 = vpop.eup %4856 }
0x2a61   :  { %1524 = vrot.lane.b32.xlu0 %v4857_v48, %s5063_s7 }
0x2a62   :  { %v4859_v50 = vpop.eup %4858 }
0x2a63   :  { %v1515_v51 = vadd.f32 1.0, %v4859_v50 }
0x2a65   :  { %4860 = vrcp.f32 %v1515_v51 }
0x2a6f   :  { %v4861_v52 = vpop.eup %4860 }
0x2a70   :  { %v1522_v56 = vmul.f32 %v4861_v52, %v1520_v55 }
0x2ad3   :  { %v1525_v53 = vpop.permute.xlu0 %1524 }
0x2ad4   :  { %v1527_v54 = vmul.f32 %v4861_v52, %v1525_v53 }
0x2ad6   :  { %1529 = vrot.lane.b32.xlu1 %v1527_v54, %s5063_s7 }
0x2b48   :  { %v1530_v57 = vpop.permute.xlu1 %1529 }
0x2b49   :  { %v1532_v59 = vadd.f32 %v1530_v57, %v1522_v56 }
0x2b4b   :  { %4862 = vtanh.f32 %v1532_v59 }
0x2b55   :  { %v4863_v20 = vpop.eup %4862 }
0x2b56   :  { %1535 = vrot.lane.b32.xlu0 %v4863_v20, %s5063_s7 }
0x2bc8   :  { %v1536_v61 = vpop.permute.xlu0 %1535 }
0x2bc9   :  { %v5420_v62 = vmul.f32 %v4861_v52, %v1536_v61 }
0x2bcb   :  { %v1544_v63 = vpack.c.bf16 %v5420_v62, %v5420_v62 }
0x2bcd   :  { %v1546_v1 = vrot.slane %v1544_v63, 2  ;;  %v5532_v63 = vld [vmem:[%s6116_s4 + $0x8] sm:$0xff] }
0x2bcf   :  { %1547 = vrot.lane.b32.xlu1 %v1546_v1, %s5064_s8  ;;  %v5538_v1 = vld [vmem:[%s6116_s4 + $0x10] sm:$0xff] }
0x2c41   :  { %v1548_v23 = vpop.permute.xlu1 %1547 }
0x2c42   :  { %4343 = vmatmul.mubr.msk.bf16.vlgmr.msra.gmra.mrb[28].mxu0 %vm67_vm1, %v1548_v23  ;;  %v5547_v23 = vld [vmem:[%s6116_s4 + $0x18] sm:$0xff] }
0x2c43   :  { %4650 = vmatpush3.bf16.msra.mxu0 %v4647_v32  ;;  %v5625_v32 = vld [vmem:[%s6116_s4 + $0x70] sm:$0xff] }
0x2d15   :  { %v1586_v2 = vpop.f32.mrb[28].mxu0 }
0x2d16   :  { %v1592_v5 = vadd.f32 %v5337_v21, %v1586_v2  ;;  %v4344_v17 = vpop.f32.mrb[29].mxu0 }
0x2d17   :  { %v1589_v7 = vpop.f32.mrb[30].mxu0 }
0x2d18   :  { %4864 = vtanh.f32 %v1592_v5  ;;  %v4345_v12 = vpop.f32.mrb[31].mxu0  ;;  %v3801_v14 = vmul.f32 -1.442695, %v1592_v5  ;;  %v5552_v5 = vld [vmem:[%s6116_s4 + $0x20] sm:$0xff]  ;;  %v3802_v7 = vld [vmem:[%s6117_s3 + $0x28] ss:$0 sm:$0xff] }
0x2d19   :  { %v5564_v12 = vld [vmem:[%s6116_s4 + $0x28] sm:$0xff] }
0x2d1a   :  { %4866 = vpow2.f32 %v3801_v14  ;;  %v5569_v14 = vld [vmem:[%s6116_s4 + $0x30] sm:$0xff] }
0x2d22   :  { %v4865_v6 = vpop.eup %4864 }
0x2d23   :  { %1605 = vrot.lane.b32.xlu0 %v4865_v6, %s5063_s7 }
0x2d24   :  { %v4867_v18 = vpop.eup %4866 }
0x2d25   :  { %v1596_v19 = vadd.f32 1.0, %v4867_v18 }
0x2d27   :  { %4868 = vrcp.f32 %v1596_v19 }
0x2d31   :  { %v5428_v15 = vpop.eup %4868 }
0x2d95   :  { %v1606_v24 = vpop.permute.xlu0 %1605 }
0x2d96   :  { %v1608_v4 = vmul.f32 %v5428_v15, %v1606_v24 }
0x2d98   :  { %1610 = vrot.lane.b32.xlu1 %v1608_v4, %s5063_s7  ;;  %v5578_v4 = vld [vmem:[%s6116_s4 + $0x38] sm:$0xff] }
0x2d9c   :  { %214 = vrot.lane.b32.xlu1 %v5163_v38, %s5064_s8  ;;  %v1601_v38 = vrot.slane %v1532_v59, 4 }
0x2da0   :  { %380 = vrot.lane.b32.xlu1 %v5194_v25, %s5064_s8  ;;  %v1603_v25 = vmul.f32 %v5428_v15, %v1601_v38 }
0x2da4   :  { %544 = vrot.lane.b32.xlu1 %v5226_v9, %s5064_s8  ;;  %v1625_v9 = vld [vmem:[%s6115_s2] sm:$0xff] }
0x2da8   :  { %708 = vrot.lane.b32.xlu1 %v5257_v58, %s5064_s8  ;;  %v1626_v58 = vld [vmem:[%s6115_s2 + $0x8] sm:$0xff] }
0x2dac   :  { %872 = vrot.lane.b32.xlu1 %v5283_v11, %s5064_s8 }
0x2db0   :  { %1129 = vrot.lane.b32.xlu1 %v5351_v45, %s5064_s8  ;;  %v4642_v45 = vpack.c.bf16 %v1626_v58, %v1625_v9  ;;  %v5597_v58 = vld [vmem:[%s6116_s4 + $0x50] sm:$0xff] }
0x2db4   :  { %1293 = vrot.lane.b32.xlu1 %v5382_v41, %s5064_s8  ;;  %v5065_v41 = vmov 0.0|0.0  }
0x2db5   :  { %4641 = vmatprep.subr.bf16.mxu1 %v5065_v41 }
0x2db6   :  { %4643 = vmatpush3.bf16.msra.mxu1 %v4642_v45 }
0x2db7   :  { %4644 = vmatprep.subr.bf16.mxu1 %v5065_v41 }
0x2db8   :  { %1457 = vrot.lane.b32.xlu1 %v1455_v34, %s5064_s8  ;;  %v1631_v34 = vld [vmem:[%s6115_s2 + $0x30] sm:$0xff] }
0x2db9   :  { %v4651_v37 = vpack.c.bf16 %v1632_v36, %v1631_v34  ;;  %v5641_v36 = vld [vmem:[%s6116_s4 + $0x80] sm:$0xff] }
0x2dba   :  { %4646 = vmatpush3.bf16.msra.mxu1 %v4645_v10  ;;  %v5611_v10 = vld [vmem:[%s6116_s4 + $0x60] sm:$0xff] }
0x2dbb   :  { %4652 = vmatprep.subr.bf16.mxu0 %v4651_v37 }
0x2dbc   :  { %4654 = vmatpush3.bf16.msra.mxu0 %v4651_v37 }
0x2e0a   :  { %v1611_v21 = vpop.permute.xlu1 %1610 }
0x2e0b   :  { %v1613_v26 = vadd.f32 %v1611_v21, %v1603_v25  ;;  %v5583_v25 = vld [vmem:[%s6116_s4 + $0x40] sm:$0xff] }
0x2e0d   :  { %4870 = vtanh.f32 %v1613_v26  ;;  %v5592_v26 = vld [vmem:[%s6116_s4 + $0x48] sm:$0xff] }
0x2e0e   :  { %v215_v11 = vpop.permute.xlu1 %214 }
0x2e0f   :  { %218 = vst.msk [vmem:[#allocation2] sm:$0xf] %vm217_vm2, %v215_v11 }
0x2e12   :  { %v381_v29 = vpop.permute.xlu1 %380 }
0x2e13   :  { %383 = vst.msk [vmem:[#allocation2 + $0x8] sm:$0xf] %vm217_vm2, %v381_v29 }
0x2e16   :  { %v545_v33 = vpop.permute.xlu1 %544 }
0x2e17   :  { %v4871_v13 = vpop.eup %4870  ;;  %547 = vst.msk [vmem:[#allocation2 + $0x10] sm:$0xf] %vm217_vm2, %v545_v33  ;;  %v5634_v33 = vld [vmem:[%s6116_s4 + $0x78] sm:$0xff] }
0x2e18   :  { %1616 = vrot.lane.b32.xlu0 %v4871_v13, %s5063_s7 }
0x2e1a   :  { %v709_v39 = vpop.permute.xlu1 %708 }
0x2e1b   :  { %711 = vst.msk [vmem:[#allocation2 + $0x18] sm:$0xf] %vm217_vm2, %v709_v39 }
0x2e1c   :  { %298 = vrot.lane.b32.xlu0 %v5178_v60, %s5064_s8 }
0x2e1e   :  { %v873_v40 = vpop.permute.xlu1 %872 }
0x2e1f   :  { %875 = vst.msk [vmem:[#allocation2 + $0x20] sm:$0xf] %vm217_vm2, %v873_v40  ;;  %v5650_v40 = vld [vmem:[%s6116_s4 + $0x88] sm:$0xff] }
0x2e20   :  { %463 = vrot.lane.b32.xlu0 %v5210_v47, %s5064_s8 }
0x2e22   :  { %v1130_v42 = vpop.permute.xlu1 %1129 }
0x2e23   :  { %1132 = vst.msk [vmem:[#allocation3] sm:$0xf] %vm217_vm2, %v1130_v42  ;;  %v5655_v42 = vld [vmem:[%s6116_s4 + $0x90] sm:$0xff] }
0x2e24   :  { %627 = vrot.lane.b32.xlu0 %v5242_v35, %s5064_s8 }
0x2e26   :  { %v1294_v43 = vpop.permute.xlu1 %1293 }
0x2e27   :  { %1296 = vst.msk [vmem:[#allocation3 + $0x8] sm:$0xf] %vm217_vm2, %v1294_v43  ;;  %v5664_v43 = vld [vmem:[%s6116_s4 + $0x98] sm:$0xff] }
0x2e28   :  { %791 = vrot.lane.b32.xlu0 %v5273_v22, %s5064_s8 }
0x2e2a   :  { %v1458_v60 = vpop.permute.xlu1 %1457 }
0x2e2b   :  { %1460 = vst.msk [vmem:[#allocation3 + $0x10] sm:$0xf] %vm217_vm2, %v1458_v60  ;;  %v5669_v60 = vld [vmem:[%s6116_s4 + $0xa0] sm:$0xff] }
0x2e2c   :  { %955 = vrot.lane.b32.xlu0 %v5330_v16, %s5064_s8 }
0x2e30   :  { %1212 = vrot.lane.b32.xlu0 %v5366_v8, %s5064_s8 }
0x2e34   :  { %1376 = vrot.lane.b32.xlu0 %v5397_v3, %s5064_s8 }
0x2e38   :  { %1540 = vrot.lane.b32.xlu0 %v5420_v62, %s5064_s8  ;;  %v1867_v62 = vld [vmem:[%s6116_s4] sm:$0xff] }
0x2e8a   :  { %v1617_v47 = vpop.permute.xlu0 %1616 }
0x2e8b   :  { %v1619_v35 = vmul.f32 %v5428_v15, %v1617_v47  ;;  %v5678_v47 = vld [vmem:[%s6116_s4 + $0xa8] sm:$0xff] }
0x2e8d   :  { %1621 = vrot.lane.b32.xlu1 %v1619_v35, %s5064_s8  ;;  %v5683_v35 = vld [vmem:[%s6116_s4 + $0xb0] sm:$0xff] }
0x2e8e   :  { %v299_v22 = vpop.permute.xlu0 %298 }
0x2e8f   :  { %302 = vst.msk [vmem:[#allocation2] sm:$0xf0] %vm301_vm3, %v299_v22  ;;  %v5692_v22 = vld [vmem:[%s6116_s4 + $0xb8] sm:$0xff] }
0x2e92   :  { %v464_v44 = vpop.permute.xlu0 %463 }
0x2e93   :  { %466 = vst.msk [vmem:[#allocation2 + $0x8] sm:$0xf0] %vm301_vm3, %v464_v44  ;;  %v5697_v44 = vld [vmem:[%s6116_s4 + $0xc0] sm:$0xff] }
0x2e96   :  { %v628_v16 = vpop.permute.xlu0 %627  ;;  %v1652_v8 = vld [vmem:[#allocation2] sm:$0xff] }
0x2e97   :  { %630 = vst.msk [vmem:[#allocation2 + $0x10] sm:$0xf0] %vm301_vm3, %v628_v16  ;;  %4355 = vmatmul.mubr.msk.f32.vlgmr.msra.gmra.mrb[52].mxu1 %vm67_vm1, %v1652_v8  ;;  %v5706_v16 = vld [vmem:[%s6116_s4 + $0xc8] sm:$0xff] }
0x2e98   :  { %4357 = vmatprep.mubr.msk.f32.mxu1 %vm5061_vm0, %v5060_v0 }
0x2e9a   :  { %v792_v3 = vpop.permute.xlu0 %791  ;;  %v1653_v46 = vld [vmem:[#allocation2 + $0x8] sm:$0xff] }
0x2e9b   :  { %794 = vst.msk [vmem:[#allocation2 + $0x18] sm:$0xf0] %vm301_vm3, %v792_v3  ;;  %4358 = vmatmul.mubr.msk.f32.gmra.mrb[54].mxu1 %vm67_vm1, %v1653_v46  ;;  %v4671_v48 = vpack.c.bf16 %v1653_v46, %v1652_v8  ;;  %v5711_v8 = vld [vmem:[%s6116_s4 + $0xd0] sm:$0xff]  ;;  %v5720_v3 = vld [vmem:[%s6116_s4 + $0xd8] sm:$0xff]  ;;  %v5725_v46 = vld [vmem:[%s6116_s4 + $0xe0] sm:$0xff] }
0x2e9c   :  { %4360 = vmatprep.mubr.msk.f32.mxu1 %vm5061_vm0, %v5060_v0 }
0x2e9d   :  { %4672 = vmatprep.subr.bf16.mxu0 %v4671_v48 }
0x2e9e   :  { %v956_v49 = vpop.permute.xlu0 %955  ;;  %v1654_v50 = vld [vmem:[#allocation2 + $0x10] sm:$0xff] }
0x2e9f   :  { %958 = vst.msk [vmem:[#allocation2 + $0x20] sm:$0xf0] %vm301_vm3, %v956_v49  ;;  %4361 = vmatmul.mubr.msk.f32.gmra.mrb[56].mxu1 %vm67_vm1, %v1654_v50  ;;  %v5739_v49 = vld [vmem:[%s6116_s4 + $0xf0] sm:$0xff] }
0x2ea0   :  { %4363 = vmatprep.mubr.msk.f32.mxu1 %vm5061_vm0, %v5060_v0 }
0x2ea2   :  { %v1213_v51 = vpop.permute.xlu0 %1212  ;;  %v1655_v52 = vld [vmem:[#allocation2 + $0x18] sm:$0xff] }
0x2ea3   :  { %1215 = vst.msk [vmem:[#allocation3] sm:$0xf0] %vm301_vm3, %v1213_v51  ;;  %4364 = vmatmul.mubr.msk.f32.gmra.mrb[58].mxu1 %vm67_vm1, %v1655_v52  ;;  %v4675_v59 = vpack.c.bf16 %v1655_v52, %v1654_v50  ;;  %v5748_v50 = vld [vmem:[%s6116_s4 + $0xf8] sm:$0xff]  ;;  %v5753_v51 = vld [vmem:[%s6116_s4 + $0x100] sm:$0xff]  ;;  %v5762_v52 = vld [vmem:[%s6116_s4 + $0x108] sm:$0xff] }
0x2ea4   :  { %4366 = vmatprep.mubr.msk.f32.mxu1 %vm5061_vm0, %v5060_v0 }
0x2ea6   :  { %v1377_v53 = vpop.permute.xlu0 %1376  ;;  %v1656_v54 = vld [vmem:[#allocation2 + $0x20] sm:$0xff] }
0x2ea7   :  { %1379 = vst.msk [vmem:[#allocation3 + $0x8] sm:$0xf0] %vm301_vm3, %v1377_v53  ;;  %4367 = vmatmul.mubr.msk.f32.gmra.mrb[60].mxu1 %vm67_vm1, %v1656_v54  ;;  %v5767_v53 = vld [vmem:[%s6116_s4 + $0x110] sm:$0xff] }
0x2ea8   :  { %4401 = vmatprep.mubr.msk.f32.mxu1 %vm1907_vm4, %v1867_v62 }
0x2eaa   :  { %v1541_v55 = vpop.permute.xlu0 %1540  ;;  %v1657_v56 = vld [vmem:[#allocation3] sm:$0xff] }
0x2eab   :  { %1543 = vst.msk [vmem:[#allocation3 + $0x10] sm:$0xf0] %vm301_vm3, %v1541_v55  ;;  %4377 = vmatprep.mubr.msk.f32.mxu0 %vm67_vm1, %v1657_v56  ;;  %v1903_v55 = vld [vmem:[%s6116_s4 + $0x120] sm:$0xff]  ;;  %v1904_v56 = vld [vmem:[%s6116_s4 + $0x128] sm:$0xff] }
0x2eae   :  { %v1658_v57 = vld [vmem:[#allocation3 + $0x8] sm:$0xff] }
0x2eaf   :  { %4378 = vmatmul.mubr.msk.f32.vlgmr.msra.gmra.mrb[32].mxu0 %vm67_vm1, %v1658_v57  ;;  %v1905_v57 = vld [vmem:[%s6116_s4 + $0x130] sm:$0xff] }
0x2eb0   :  { %4674 = vmatpush3.bf16.msra.mxu0 %v4671_v48  ;;  %v5734_v48 = vld [vmem:[%s6116_s4 + $0xe8] sm:$0xff] }
0x2eb1   :  { %4676 = vmatprep.subr.bf16.mxu0 %v4675_v59 }
0x2eb2   :  { %v1659_v20 = vld [vmem:[#allocation3 + $0x10] sm:$0xff] }
0x2eb3   :  { %4380 = vmatprep.mubr.msk.f32.mxu0 %vm67_vm1, %v1659_v20  ;;  %v1641_v20 = vld [vmem:[%s6115_s2 + $0x80] sm:$0xff] }
0x2eb4   :  { %4678 = vmatpush3.bf16.msra.mxu0 %v4675_v59  ;;  %v1906_v59 = vld [vmem:[%s6116_s4 + $0x138] sm:$0xff] }
0x2eb5   :  { %4469 = vmatprep.subr.mxu0 %v1656_v54 }
0x2eb8   :  { %4470 = vmatpush3.msra.mxu0 %v1656_v54  ;;  %v1902_v54 = vld [vmem:[%s6116_s4 + $0x118] sm:$0xff] }
0x2eff   :  { %v1622_v0 = vpop.permute.xlu1 %1621 }
0x2f00   :  { %1624 = vst.msk [vmem:[#allocation3 + $0x18] sm:$0xf] %vm217_vm2, %v1622_v0  ;;  %v1642_v0 = vld [vmem:[%s6115_s2 + $0x88] sm:$0xff] }
0x2f07   :  { %v1660_v61 = vld [vmem:[#allocation3 + $0x18] sm:$0xf] }
0x2f08   :  { %4381 = vmatmul.mubr.msk.f32.gmra.mrb[34].mxu0 %vm67_vm1, %v1660_v61  ;;  %v1643_v61 = vld [vmem:[%s6115_s2 + $0x90] sm:$0xff] }
0x2f09   :  { %4471 = vmatprep.mubr.msk.f32.mxu0 %vm1907_vm4, %v1867_v62  ;;  %v4679_v62 = vpack.c.bf16 %v1642_v0, %v1641_v20 }
0x2f0b   :  { %4680 = vmatprep.subr.bf16.mxu0 %v4679_v62 }
0x2f0c   :  { %4472 = vmatmul.mubr.msk.f32.vlgmr.msra.gmra.mrb[36].mxu0 %vm1907_vm4, %v5532_v63 }
0x2f0d   :  { %4474 = vmatprep.mubr.msk.f32.mxu0 %vm1907_vm4, %v5538_v1  ;;  %4682 = vmatpush3.bf16.msra.mxu0 %v4679_v62 }
0x2f10   :  { %4475 = vmatmul.mubr.msk.f32.gmra.mrb[38].mxu0 %vm1907_vm4, %v5547_v23 }
0x2f11   :  { %4477 = vmatprep.mubr.msk.f32.mxu0 %vm1907_vm4, %v5552_v5 }
0x2f14   :  { %4478 = vmatmul.mubr.msk.f32.gmra.mrb[40].mxu0 %vm1907_vm4, %v5564_v12 }
0x2f15   :  { %4480 = vmatprep.mubr.msk.f32.mxu0 %vm1907_vm4, %v5569_v14 }
0x2f18   :  { %4481 = vmatmul.mubr.msk.f32.gmra.mrb[42].mxu0 %vm1907_vm4, %v5578_v4 }
0x2f19   :  { %4483 = vmatprep.mubr.msk.f32.mxu0 %vm1907_vm4, %v5583_v25 }
0x2f1c   :  { %4484 = vmatmul.mubr.msk.f32.gmra.mrb[44].mxu0 %vm1907_vm4, %v5592_v26 }
0x2f1d   :  { %4486 = vmatprep.mubr.msk.f32.mxu0 %vm1907_vm4, %v5597_v58 }
0x2f20   :  { %4487 = vmatmul.mubr.msk.f32.gmra.mrb[46].mxu0 %vm1907_vm4, %v5606_v28 }
0x2f21   :  { %4489 = vmatprep.mubr.msk.f32.mxu0 %vm1907_vm4, %v5611_v10 }
0x2f24   :  { %4490 = vmatmul.mubr.msk.f32.gmra.mrb[48].mxu0 %vm1907_vm4, %v5620_v31 }
0x2f25   :  { %4492 = vmatprep.mubr.msk.f32.mxu0 %vm1907_vm4, %v5625_v32 }
0x2f28   :  { %4493 = vmatmul.mubr.msk.f32.gmra.mrb[50].mxu0 %vm1907_vm4, %v5634_v33 }
0x2f29   :  { %4495 = vmatprep.mubr.msk.f32.mxu0 %vm1907_vm4, %v5641_v36 }
0x2f2c   :  { %4496 = vmatmul.mubr.msk.f32.gmra.mrb[52].mxu0 %vm1907_vm4, %v5650_v40 }
0x2f2d   :  { %4498 = vmatprep.mubr.msk.f32.mxu0 %vm1907_vm4, %v5655_v42 }
0x2f30   :  { %4499 = vmatmul.mubr.msk.f32.gmra.mrb[54].mxu0 %vm1907_vm4, %v5664_v43 }
0x2f31   :  { %4501 = vmatprep.mubr.msk.f32.mxu0 %vm1907_vm4, %v5669_v60 }
0x2f34   :  { %4502 = vmatmul.mubr.msk.f32.gmra.mrb[56].mxu0 %vm1907_vm4, %v5678_v47 }
0x2f35   :  { %4504 = vmatprep.mubr.msk.f32.mxu0 %vm1907_vm4, %v5683_v35 }
0x2f38   :  { %4505 = vmatmul.mubr.msk.f32.gmra.mrb[58].mxu0 %vm1907_vm4, %v5692_v22 }
0x2f39   :  { %4507 = vmatprep.mubr.msk.f32.mxu0 %vm1907_vm4, %v5697_v44 }
0x2f3c   :  { %4508 = vmatmul.mubr.msk.f32.gmra.mrb[60].mxu0 %vm1907_vm4, %v5706_v16 }
0x2f3d   :  { %4510 = vmatprep.mubr.msk.f32.mxu0 %vm1907_vm4, %v5711_v8 }
0x2f40   :  { %4511 = vmatmul.mubr.msk.f32.gmra.mrb[62].mxu0 %vm1907_vm4, %v5720_v3 }
0x2f41   :  { %4513 = vmatprep.mubr.msk.f32.mxu0 %vm1907_vm4, %v5725_v46 }
0x2f44   :  { %4514 = vmatmul.mubr.msk.f32.gmra.mrb[64].mxu0 %vm1907_vm4, %v5734_v48 }
0x2f45   :  { %4516 = vmatprep.mubr.msk.f32.mxu0 %vm1907_vm4, %v5739_v49 }
0x2f48   :  { %4517 = vmatmul.mubr.msk.f32.gmra.mrb[66].mxu0 %vm1907_vm4, %v5748_v50 }
0x2f49   :  { %4519 = vmatprep.mubr.msk.f32.mxu0 %vm1907_vm4, %v5753_v51 }
0x2f4c   :  { %4520 = vmatmul.mubr.msk.f32.gmra.mrb[68].mxu0 %vm1907_vm4, %v5762_v52 }
0x2f4d   :  { %4522 = vmatprep.mubr.msk.f32.mxu0 %vm1907_vm4, %v5767_v53 }
0x2f50   :  { %4523 = vmatmul.mubr.msk.f32.gmra.mrb[70].mxu0 %vm1907_vm4, %v1902_v54 }
0x2f51   :  { %4525 = vmatprep.mubr.msk.f32.mxu0 %vm1907_vm4, %v1903_v55 }
0x2f54   :  { %4526 = vmatmul.mubr.msk.f32.gmra.mrb[72].mxu0 %vm1907_vm4, %v1904_v56 }
0x2f55   :  { %4528 = vmatprep.mubr.msk.f32.mxu0 %vm1907_vm4, %v1905_v57 }
0x2f58   :  { %4529 = vmatmul.mubr.msk.f32.gmra.mrb[74].mxu0 %vm1907_vm4, %v1906_v59 }
0x2f6a   :  { %v1746_v2 = vpop.f32.mrb[52].mxu1 }
0x2f6b   :  { %v4356_v17 = vpop.f32.mrb[53].mxu1  ;;  %v1747_v18 = vadd.f32 %v3802_v7, %v1746_v2  ;;  %v1644_v2 = vld [vmem:[%s6115_s2 + $0x98] sm:$0xff] }
0x2f6c   :  { %v4683_v17 = vpack.c.bf16 %v1644_v2, %v1643_v61 }
0x2f6e   :  { %v1751_v6 = vpop.f32.mrb[54].mxu1  ;;  %4684 = vmatprep.subr.bf16.mxu0 %v4683_v17 }
0x2f6f   :  { %v1752_v19 = vadd.f32 %v3802_v7, %v1751_v6  ;;  %v4359_v15 = vpop.f32.mrb[55].mxu1  ;;  %4686 = vmatpush3.bf16.msra.mxu0 %v4683_v17 }
0x2f71   :  { %v4655_v24 = vpack.c.bf16 %v1752_v19, %v1747_v18 }
0x2f72   :  { %v1756_v38 = vpop.f32.mrb[56].mxu1 }
0x2f73   :  { %v4362_v21 = vpop.f32.mrb[57].mxu1  ;;  %4656 = vmatprep.subr.bf16.mxu1 %v4655_v24  ;;  %v1757_v11 = vadd.f32 %v3802_v7, %v1756_v38 }
0x2f74   :  { %4658 = vmatpush3.bf16.msra.mxu1 %v4655_v24 }
0x2f76   :  { %v1761_v9 = vpop.f32.mrb[58].mxu1 }
0x2f77   :  { %v1762_v45 = vadd.f32 %v3802_v7, %v1761_v9  ;;  %v4365_v41 = vpop.f32.mrb[59].mxu1 }
0x2f79   :  { %v4659_v27 = vpack.c.bf16 %v1762_v45, %v1757_v11 }
0x2f7a   :  { %v1766_v29 = vpop.f32.mrb[60].mxu1 }
0x2f7b   :  { %v4368_v30 = vpop.f32.mrb[61].mxu1  ;;  %4660 = vmatprep.subr.bf16.mxu1 %v4659_v27  ;;  %v1767_v13 = vadd.f32 %v3802_v7, %v1766_v29 }
0x2f7c   :  { %4662 = vmatpush3.bf16.msra.mxu1 %v4659_v27 }
0x2f82   :  { %v5636_v34 = vpop.f32.mrb[32].mxu0 }
0x2f83   :  { %v1848_v37 = vpop.f32.mrb[33].mxu0 }
0x2f84   :  { %v4663_v39 = vpack.c.bf16 %v1848_v37, %v1767_v13 }
0x2f86   :  { %4664 = vmatprep.subr.bf16.mxu1 %v4663_v39 }
0x2f87   :  { %4666 = vmatpush3.bf16.msra.mxu1 %v4663_v39 }
0x2fdb   :  { %v4382_v7 = vpop.f32.mrb[34].mxu0 }
0x2fdc   :  { %v1858_v6 = vpop.f32.mrb[35].mxu0 }
0x2fdd   :  { %v4667_v18 = vpack.c.bf16 %v1858_v6, %v5636_v34 }
0x2fdf   :  { %4668 = vmatprep.subr.bf16.mxu1 %v4667_v18 }
0x2fe0   :  { %4670 = vmatpush3.bf16.msra.mxu1 %v4667_v18 }
0x2fe1   :  { %4399 = vmatprep.subr.msk.mxu1 %vm2028_vm5, %v4382_v7 }
0x2fe4   :  { %4400 = vmatpush3.msk.msra.mxu1 %vm2028_vm5, %v4382_v7 }
0x2fe5   :  { %4402 = vmatmul.mubr.msk.f32.vlgmr.msra.gmra.mrb[62].mxu1 %vm1907_vm4, %v5532_v63  ;;  %v5881_v63 = vpop.f32.mrb[36].mxu0 }
0x2fe6   :  { %4404 = vmatprep.mubr.msk.f32.mxu1 %vm1907_vm4, %v5538_v1  ;;  %v5883_v1 = vpop.f32.mrb[37].mxu0 }
0x2fe9   :  { %4405 = vmatmul.mubr.msk.f32.gmra.mrb[64].mxu1 %vm1907_vm4, %v5547_v23  ;;  %v5885_v23 = vpop.f32.mrb[38].mxu0 }
0x2fea   :  { %4407 = vmatprep.mubr.msk.f32.mxu1 %vm1907_vm4, %v5552_v5  ;;  %v5887_v5 = vpop.f32.mrb[39].mxu0 }
0x2fed   :  { %4408 = vmatmul.mubr.msk.f32.gmra.mrb[66].mxu1 %vm1907_vm4, %v5564_v12  ;;  %v5889_v12 = vpop.f32.mrb[40].mxu0 }
0x2fee   :  { %4410 = vmatprep.mubr.msk.f32.mxu1 %vm1907_vm4, %v5569_v14  ;;  %v5891_v14 = vpop.f32.mrb[41].mxu0 }
0x2fef   :  { %v5893_v19 = vpop.f32.mrb[42].mxu0 }
0x2ff0   :  { %v5895_v15 = vpop.f32.mrb[43].mxu0 }
0x2ff1   :  { %4411 = vmatmul.mubr.msk.f32.gmra.mrb[68].mxu1 %vm1907_vm4, %v5578_v4  ;;  %v5897_v24 = vpop.f32.mrb[44].mxu0 }
0x2ff2   :  { %4413 = vmatprep.mubr.msk.f32.mxu1 %vm1907_vm4, %v5583_v25  ;;  %v5899_v4 = vpop.f32.mrb[45].mxu0 }
0x2ff3   :  { %v5901_v38 = vpop.f32.mrb[46].mxu0 }
0x2ff4   :  { %v5903_v25 = vpop.f32.mrb[47].mxu0 }
0x2ff5   :  { %4414 = vmatmul.mubr.msk.f32.gmra.mrb[70].mxu1 %vm1907_vm4, %v5592_v26 }
0x2ff6   :  { %4416 = vmatprep.mubr.msk.f32.mxu1 %vm1907_vm4, %v5597_v58 }
0x2ff7   :  { %v5905_v21 = vpop.f32.mrb[48].mxu0 }
0x2ff8   :  { %v5907_v26 = vpop.f32.mrb[49].mxu0 }
0x2ff9   :  { %4417 = vmatmul.mubr.msk.f32.gmra.mrb[72].mxu1 %vm1907_vm4, %v5606_v28 }
0x2ffa   :  { %4419 = vmatprep.mubr.msk.f32.mxu1 %vm1907_vm4, %v5611_v10 }
0x2ffb   :  { %v5909_v9 = vpop.f32.mrb[50].mxu0 }
0x2ffc   :  { %v5911_v58 = vpop.f32.mrb[51].mxu0 }
0x2ffd   :  { %4420 = vmatmul.mubr.msk.f32.gmra.mrb[74].mxu1 %vm1907_vm4, %v5620_v31 }
0x2ffe   :  { %4422 = vmatprep.mubr.msk.f32.mxu1 %vm1907_vm4, %v5625_v32 }
0x2fff   :  { %v5913_v11 = vpop.f32.mrb[52].mxu0 }
0x3000   :  { %v5915_v45 = vpop.f32.mrb[53].mxu0 }
0x3001   :  { %4423 = vmatmul.mubr.msk.f32.gmra.mrb[76].mxu1 %vm1907_vm4, %v5634_v33 }
0x3002   :  { %4425 = vmatprep.mubr.msk.f32.mxu1 %vm1907_vm4, %v5641_v36 }
0x3003   :  { %v5917_v41 = vpop.f32.mrb[54].mxu0 }
0x3004   :  { %v5919_v27 = vpop.f32.mrb[55].mxu0 }
0x3005   :  { %4426 = vmatmul.mubr.msk.f32.gmra.mrb[78].mxu1 %vm1907_vm4, %v5650_v40 }
0x3006   :  { %4428 = vmatprep.mubr.msk.f32.mxu1 %vm1907_vm4, %v5655_v42 }
0x3007   :  { %v5921_v28 = vpop.f32.mrb[56].mxu0 }
0x3008   :  { %v5923_v29 = vpop.f32.mrb[57].mxu0 }
0x3009   :  { %4429 = vmatmul.mubr.msk.f32.gmra.mrb[80].mxu1 %vm1907_vm4, %v5664_v43 }
0x300a   :  { %4431 = vmatprep.mubr.msk.f32.mxu1 %vm1907_vm4, %v5669_v60 }
0x300b   :  { %v5925_v10 = vpop.f32.mrb[58].mxu0 }
0x300c   :  { %v5927_v30 = vpop.f32.mrb[59].mxu0 }
0x300d   :  { %4432 = vmatmul.mubr.msk.f32.gmra.mrb[82].mxu1 %vm1907_vm4, %v5678_v47 }
0x300e   :  { %4434 = vmatprep.mubr.msk.f32.mxu1 %vm1907_vm4, %v5683_v35 }
0x300f   :  { %v5929_v31 = vpop.f32.mrb[60].mxu0 }
0x3010   :  { %v5931_v32 = vpop.f32.mrb[61].mxu0 }
0x3011   :  { %4435 = vmatmul.mubr.msk.f32.gmra.mrb[84].mxu1 %vm1907_vm4, %v5692_v22 }
0x3012   :  { %4437 = vmatprep.mubr.msk.f32.mxu1 %vm1907_vm4, %v5697_v44 }
0x3013   :  { %v5933_v33 = vpop.f32.mrb[62].mxu0 }
0x3014   :  { %v5935_v13 = vpop.f32.mrb[63].mxu0 }
0x3015   :  { %4438 = vmatmul.mubr.msk.f32.gmra.mrb[86].mxu1 %vm1907_vm4, %v5706_v16 }
0x3016   :  { %4440 = vmatprep.mubr.msk.f32.mxu1 %vm1907_vm4, %v5711_v8 }
0x3017   :  { %v5937_v34 = vpop.f32.mrb[64].mxu0 }
0x3018   :  { %v5939_v36 = vpop.f32.mrb[65].mxu0 }
0x3019   :  { %4441 = vmatmul.mubr.msk.f32.gmra.mrb[88].mxu1 %vm1907_vm4, %v5720_v3 }
0x301a   :  { %4443 = vmatprep.mubr.msk.f32.mxu1 %vm1907_vm4, %v5725_v46 }
0x301b   :  { %v5941_v37 = vpop.f32.mrb[66].mxu0 }
0x301c   :  { %v5943_v39 = vpop.f32.mrb[67].mxu0 }
0x301d   :  { %4444 = vmatmul.mubr.msk.f32.gmra.mrb[90].mxu1 %vm1907_vm4, %v5734_v48 }
0x301e   :  { %4446 = vmatprep.mubr.msk.f32.mxu1 %vm1907_vm4, %v5739_v49 }
0x301f   :  { %v5945_v40 = vpop.f32.mrb[68].mxu0 }
0x3020   :  { %v5947_v42 = vpop.f32.mrb[69].mxu0 }
0x3021   :  { %4447 = vmatmul.mubr.msk.f32.gmra.mrb[92].mxu1 %vm1907_vm4, %v5748_v50 }
0x3022   :  { %4449 = vmatprep.mubr.msk.f32.mxu1 %vm1907_vm4, %v5753_v51 }
0x3023   :  { %v5949_v43 = vpop.f32.mrb[70].mxu0 }
0x3024   :  { %v5951_v60 = vpop.f32.mrb[71].mxu0 }
0x3025   :  { %4450 = vmatmul.mubr.msk.f32.gmra.mrb[94].mxu1 %vm1907_vm4, %v5762_v52 }
0x3026   :  { %4452 = vmatprep.mubr.msk.f32.mxu1 %vm1907_vm4, %v5767_v53 }
0x3027   :  { %v5953_v47 = vpop.f32.mrb[72].mxu0 }
0x3028   :  { %v5955_v35 = vpop.f32.mrb[73].mxu0 }
0x3029   :  { %4453 = vmatmul.mubr.msk.f32.gmra.mrb[96].mxu1 %vm1907_vm4, %v1902_v54 }
0x302a   :  { %4455 = vmatprep.mubr.msk.f32.mxu1 %vm1907_vm4, %v1903_v55 }
0x302b   :  { %v5957_v44 = vpop.f32.mrb[74].mxu0 }
0x302c   :  { %v5959_v8 = vpop.f32.mrb[75].mxu0 }
0x302d   :  { %4456 = vmatmul.mubr.msk.f32.gmra.mrb[98].mxu1 %vm1907_vm4, %v1904_v56 }
0x302e   :  { %4458 = vmatprep.mubr.msk.f32.mxu1 %vm1907_vm4, %v1905_v57 }
0x3031   :  { %4459 = vmatmul.mubr.msk.f32.gmra.mrb[100].mxu1 %vm1907_vm4, %v1906_v59 }
0x30b8   :  { %v4403_v22 = vpop.f32.mrb[62].mxu1 }
0x30b9   :  { %v2098_v16 = vpop.f32.mrb[63].mxu1 }
0x30ba   :  { %4872 = vtanh.f32 %v2098_v16 }
0x30bb   :  { %4874 = vtanh.f32 %v4403_v22 }
0x30bc   :  { %v4406_v3 = vpop.f32.mrb[64].mxu1 }
0x30bd   :  { %v2108_v46 = vpop.f32.mrb[65].mxu1 }
0x30be   :  { %4876 = vtanh.f32 %v2108_v46 }
0x30bf   :  { %4878 = vtanh.f32 %v4406_v3 }
0x30c0   :  { %v4409_v48 = vpop.f32.mrb[66].mxu1 }
0x30c1   :  { %v2118_v49 = vpop.f32.mrb[67].mxu1 }
0x30c2   :  { %4880 = vtanh.f32 %v2118_v49 }
0x30c3   :  { %4882 = vtanh.f32 %v4409_v48 }
0x30c4   :  { %v4873_v50 = vpop.eup %4872  ;;  %v4412_v51 = vpop.f32.mrb[68].mxu1 }
0x30c5   :  { %v4875_v52 = vpop.eup %4874  ;;  %v2128_v53 = vpop.f32.mrb[69].mxu1  ;;  %4539 = vmatprep.mubr.msk.f32.mxu0 %vm67_vm1, %v4873_v50 }
0x30c6   :  { %4884 = vtanh.f32 %v2128_v53  ;;  %4540 = vmatmul.mubr.msk.f32.vlgmr.msra.gmra.mrb[76].mxu0 %vm67_vm1, %v4875_v52 }
0x30c7   :  { %4886 = vtanh.f32 %v4412_v51 }
0x30c8   :  { %v4877_v54 = vpop.eup %4876  ;;  %v4415_v55 = vpop.f32.mrb[70].mxu1 }
0x30c9   :  { %v4879_v56 = vpop.eup %4878  ;;  %v2138_v57 = vpop.f32.mrb[71].mxu1  ;;  %4542 = vmatprep.mubr.msk.f32.mxu0 %vm67_vm1, %v4877_v54 }
0x30ca   :  { %4888 = vtanh.f32 %v2138_v57  ;;  %4543 = vmatmul.mubr.msk.f32.gmra.mrb[78].mxu0 %vm67_vm1, %v4879_v56 }
0x30cb   :  { %4890 = vtanh.f32 %v4415_v55 }
0x30cc   :  { %v4881_v59 = vpop.eup %4880  ;;  %v4418_v20 = vpop.f32.mrb[72].mxu1 }
0x30cd   :  { %v4883_v0 = vpop.eup %4882  ;;  %v2148_v61 = vpop.f32.mrb[73].mxu1  ;;  %4545 = vmatprep.mubr.msk.f32.mxu0 %vm67_vm1, %v4881_v59 }
0x30ce   :  { %4892 = vtanh.f32 %v2148_v61  ;;  %4546 = vmatmul.mubr.msk.f32.gmra.mrb[80].mxu0 %vm67_vm1, %v4883_v0 }
0x30cf   :  { %4894 = vtanh.f32 %v4418_v20 }
0x30d0   :  { %v4885_v62 = vpop.eup %4884  ;;  %v4421_v2 = vpop.f32.mrb[74].mxu1 }
0x30d1   :  { %v4887_v17 = vpop.eup %4886  ;;  %v2158_v7 = vpop.f32.mrb[75].mxu1  ;;  %4548 = vmatprep.mubr.msk.f32.mxu0 %vm67_vm1, %v4885_v62 }
0x30d2   :  { %4896 = vtanh.f32 %v2158_v7  ;;  %4549 = vmatmul.mubr.msk.f32.gmra.mrb[82].mxu0 %vm67_vm1, %v4887_v17 }
0x30d3   :  { %4898 = vtanh.f32 %v4421_v2 }
0x30d4   :  { %v4889_v6 = vpop.eup %4888  ;;  %v4424_v18 = vpop.f32.mrb[76].mxu1 }
0x30d5   :  { %v4891_v22 = vpop.eup %4890  ;;  %v2168_v16 = vpop.f32.mrb[77].mxu1  ;;  %4551 = vmatprep.mubr.msk.f32.mxu0 %vm67_vm1, %v4889_v6 }
0x30d6   :  { %4900 = vtanh.f32 %v2168_v16  ;;  %4552 = vmatmul.mubr.msk.f32.gmra.mrb[84].mxu0 %vm67_vm1, %v4891_v22 }
0x30d7   :  { %4902 = vtanh.f32 %v4424_v18 }
0x30d8   :  { %v4893_v3 = vpop.eup %4892  ;;  %v4427_v46 = vpop.f32.mrb[78].mxu1 }
0x30d9   :  { %v4895_v48 = vpop.eup %4894  ;;  %v2178_v49 = vpop.f32.mrb[79].mxu1  ;;  %4554 = vmatprep.mubr.msk.f32.mxu0 %vm67_vm1, %v4893_v3 }
0x30da   :  { %4904 = vtanh.f32 %v2178_v49  ;;  %4555 = vmatmul.mubr.msk.f32.gmra.mrb[86].mxu0 %vm67_vm1, %v4895_v48 }
0x30db   :  { %4906 = vtanh.f32 %v4427_v46 }
0x30dc   :  { %v4897_v50 = vpop.eup %4896  ;;  %v4430_v51 = vpop.f32.mrb[80].mxu1 }
0x30dd   :  { %v4899_v52 = vpop.eup %4898  ;;  %v2188_v53 = vpop.f32.mrb[81].mxu1  ;;  %4557 = vmatprep.mubr.msk.f32.mxu0 %vm67_vm1, %v4897_v50 }
0x30de   :  { %4908 = vtanh.f32 %v2188_v53  ;;  %4558 = vmatmul.mubr.msk.f32.gmra.mrb[88].mxu0 %vm67_vm1, %v4899_v52 }
0x30df   :  { %4910 = vtanh.f32 %v4430_v51 }
0x30e0   :  { %v4901_v54 = vpop.eup %4900  ;;  %v4433_v55 = vpop.f32.mrb[82].mxu1 }
0x30e1   :  { %v4903_v56 = vpop.eup %4902  ;;  %v2198_v57 = vpop.f32.mrb[83].mxu1  ;;  %4560 = vmatprep.mubr.msk.f32.mxu0 %vm67_vm1, %v4901_v54 }
0x30e2   :  { %4912 = vtanh.f32 %v2198_v57  ;;  %4561 = vmatmul.mubr.msk.f32.gmra.mrb[90].mxu0 %vm67_vm1, %v4903_v56 }
0x30e3   :  { %4914 = vtanh.f32 %v4433_v55 }
0x30e4   :  { %v4905_v59 = vpop.eup %4904  ;;  %v4436_v20 = vpop.f32.mrb[84].mxu1 }
0x30e5   :  { %v4907_v0 = vpop.eup %4906  ;;  %v2208_v61 = vpop.f32.mrb[85].mxu1  ;;  %4563 = vmatprep.mubr.msk.f32.mxu0 %vm67_vm1, %v4905_v59 }
0x30e6   :  { %4916 = vtanh.f32 %v2208_v61  ;;  %4564 = vmatmul.mubr.msk.f32.gmra.mrb[92].mxu0 %vm67_vm1, %v4907_v0 }
0x30e7   :  { %4918 = vtanh.f32 %v4436_v20 }
0x30e8   :  { %v4909_v62 = vpop.eup %4908  ;;  %v4439_v2 = vpop.f32.mrb[86].mxu1 }
0x30e9   :  { %v4911_v17 = vpop.eup %4910  ;;  %v2218_v7 = vpop.f32.mrb[87].mxu1  ;;  %4566 = vmatprep.mubr.msk.f32.mxu0 %vm67_vm1, %v4909_v62 }
0x30ea   :  { %4920 = vtanh.f32 %v2218_v7  ;;  %4567 = vmatmul.mubr.msk.f32.gmra.mrb[94].mxu0 %vm67_vm1, %v4911_v17 }
0x30eb   :  { %4922 = vtanh.f32 %v4439_v2 }
0x30ec   :  { %v4913_v6 = vpop.eup %4912  ;;  %v4442_v18 = vpop.f32.mrb[88].mxu1 }
0x30ed   :  { %v4915_v22 = vpop.eup %4914  ;;  %v2228_v16 = vpop.f32.mrb[89].mxu1  ;;  %4569 = vmatprep.mubr.msk.f32.mxu0 %vm67_vm1, %v4913_v6 }
0x30ee   :  { %4924 = vtanh.f32 %v2228_v16  ;;  %4570 = vmatmul.mubr.msk.f32.gmra.mrb[96].mxu0 %vm67_vm1, %v4915_v22 }
0x30ef   :  { %4926 = vtanh.f32 %v4442_v18 }
0x30f0   :  { %v4917_v3 = vpop.eup %4916  ;;  %v4445_v46 = vpop.f32.mrb[90].mxu1 }
0x30f1   :  { %v4919_v48 = vpop.eup %4918  ;;  %v2238_v49 = vpop.f32.mrb[91].mxu1  ;;  %4572 = vmatprep.mubr.msk.f32.mxu0 %vm67_vm1, %v4917_v3 }
0x30f2   :  { %4928 = vtanh.f32 %v2238_v49  ;;  %4573 = vmatmul.mubr.msk.f32.gmra.mrb[98].mxu0 %vm67_vm1, %v4919_v48 }
0x30f3   :  { %4930 = vtanh.f32 %v4445_v46 }
0x30f4   :  { %v4921_v50 = vpop.eup %4920  ;;  %v4448_v51 = vpop.f32.mrb[92].mxu1 }
0x30f5   :  { %v4923_v52 = vpop.eup %4922  ;;  %v2248_v53 = vpop.f32.mrb[93].mxu1  ;;  %4575 = vmatprep.mubr.msk.f32.mxu0 %vm67_vm1, %v4921_v50 }
0x30f6   :  { %4932 = vtanh.f32 %v2248_v53  ;;  %4576 = vmatmul.mubr.msk.f32.gmra.mrb[100].mxu0 %vm67_vm1, %v4923_v52 }
0x30f7   :  { %4934 = vtanh.f32 %v4448_v51 }
0x30f8   :  { %v4925_v54 = vpop.eup %4924  ;;  %v4451_v55 = vpop.f32.mrb[94].mxu1 }
0x30f9   :  { %v4927_v56 = vpop.eup %4926  ;;  %v2258_v57 = vpop.f32.mrb[95].mxu1  ;;  %4578 = vmatprep.mubr.msk.f32.mxu0 %vm67_vm1, %v4925_v54 }
0x30fa   :  { %4936 = vtanh.f32 %v2258_v57  ;;  %4579 = vmatmul.mubr.msk.f32.gmra.mrb[102].mxu0 %vm67_vm1, %v4927_v56 }
0x30fb   :  { %4938 = vtanh.f32 %v4451_v55 }
0x30fc   :  { %v4929_v59 = vpop.eup %4928  ;;  %v4454_v20 = vpop.f32.mrb[96].mxu1 }
0x30fd   :  { %v4931_v0 = vpop.eup %4930  ;;  %v2268_v61 = vpop.f32.mrb[97].mxu1  ;;  %4581 = vmatprep.mubr.msk.f32.mxu0 %vm67_vm1, %v4929_v59 }
0x30fe   :  { %4940 = vtanh.f32 %v2268_v61  ;;  %4582 = vmatmul.mubr.msk.f32.gmra.mrb[104].mxu0 %vm67_vm1, %v4931_v0 }
0x30ff   :  { %4942 = vtanh.f32 %v4454_v20 }
0x3100   :  { %v4933_v62 = vpop.eup %4932  ;;  %v4457_v2 = vpop.f32.mrb[98].mxu1 }
0x3101   :  { %v4935_v17 = vpop.eup %4934  ;;  %v2278_v7 = vpop.f32.mrb[99].mxu1  ;;  %4584 = vmatprep.mubr.msk.f32.mxu0 %vm67_vm1, %v4933_v62 }
0x3102   :  { %4944 = vtanh.f32 %v2278_v7  ;;  %4585 = vmatmul.mubr.msk.f32.gmra.mrb[106].mxu0 %vm67_vm1, %v4935_v17 }
0x3103   :  { %4946 = vtanh.f32 %v4457_v2 }
0x3104   :  { %v4937_v6 = vpop.eup %4936  ;;  %v4460_v18 = vpop.f32.mrb[100].mxu1 }
0x3105   :  { %v4939_v22 = vpop.eup %4938  ;;  %4948 = vtanh.f32 %v4460_v18  ;;  %v2288_v16 = vpop.f32.mrb[101].mxu1  ;;  %4587 = vmatprep.mubr.msk.f32.mxu0 %vm67_vm1, %v4937_v6 }
0x3106   :  { %4950 = vtanh.f32 %v2288_v16  ;;  %4588 = vmatmul.mubr.msk.f32.gmra.mrb[108].mxu0 %vm67_vm1, %v4939_v22 }
0x3108   :  { %v4941_v3 = vpop.eup %4940 }
0x3109   :  { %v4943_v46 = vpop.eup %4942  ;;  %4590 = vmatprep.mubr.msk.f32.mxu0 %vm67_vm1, %v4941_v3 }
0x310a   :  { %4591 = vmatmul.mubr.msk.f32.gmra.mrb[110].mxu0 %vm67_vm1, %v4943_v46 }
0x310c   :  { %v4945_v48 = vpop.eup %4944 }
0x310d   :  { %v4947_v49 = vpop.eup %4946  ;;  %4593 = vmatprep.mubr.msk.f32.mxu0 %vm67_vm1, %v4945_v48 }
0x310e   :  { %4594 = vmatmul.mubr.msk.f32.gmra.mrb[112].mxu0 %vm67_vm1, %v4947_v49 }
0x310f   :  { %v4949_v50 = vpop.eup %4948 }
0x3110   :  { %v4951_v51 = vpop.eup %4950 }
0x3111   :  { %4596 = vmatprep.mubr.msk.f32.mxu0 %vm67_vm1, %v4951_v51 }
0x3112   :  { %4597 = vmatmul.mubr.msk.f32.gmra.mrb[114].mxu0 %vm67_vm1, %v4949_v50 }
0x3199   :  { %v4541_v52 = vpop.f32.mrb[76].mxu0 }
0x319a   :  { %v2992_v53 = vmul.f32 1.442695, %v4541_v52  ;;  %v2791_v54 = vpop.f32.mrb[77].mxu0 }
0x319b   :  { %v2990_v55 = vmul.f32 1.442695, %v2791_v54 }
0x319c   :  { %4952 = vpow2.f32 %v2992_v53 }
0x319d   :  { %4954 = vpow2.f32 %v2990_v55  ;;  %v4544_v56 = vpop.f32.mrb[78].mxu0 }
0x319e   :  { %v2996_v57 = vmul.f32 1.442695, %v4544_v56  ;;  %v2801_v59 = vpop.f32.mrb[79].mxu0 }
0x319f   :  { %v2994_v20 = vmul.f32 1.442695, %v2801_v59 }
0x31a0   :  { %4956 = vpow2.f32 %v2996_v57 }
0x31a1   :  { %4958 = vpow2.f32 %v2994_v20  ;;  %v4547_v0 = vpop.f32.mrb[80].mxu0 }
0x31a2   :  { %v3000_v61 = vmul.f32 1.442695, %v4547_v0  ;;  %v2811_v62 = vpop.f32.mrb[81].mxu0 }
0x31a3   :  { %v2998_v2 = vmul.f32 1.442695, %v2811_v62 }
0x31a4   :  { %4960 = vpow2.f32 %v3000_v61 }
0x31a5   :  { %4962 = vpow2.f32 %v2998_v2  ;;  %v4550_v17 = vpop.f32.mrb[82].mxu0 }
0x31a6   :  { %v4953_v7 = vpop.eup %4952  ;;  %v3004_v6 = vmul.f32 1.442695, %v4550_v17  ;;  %v2821_v18 = vpop.f32.mrb[83].mxu0 }
0x31a7   :  { %v4955_v22 = vpop.eup %4954  ;;  %v3002_v16 = vmul.f32 1.442695, %v2821_v18  ;;  %3077 = vperm.xlu1 %4721, %v4953_v7  }
0x31a8   :  { %4964 = vpow2.f32 %v3004_v6  ;;  %3072 = vperm.xlu0 %4722, %v4955_v22  }
0x31a9   :  { %4966 = vpow2.f32 %v3002_v16  ;;  %v4553_v3 = vpop.f32.mrb[84].mxu0 }
0x31aa   :  { %v4957_v46 = vpop.eup %4956  ;;  %v3008_v48 = vmul.f32 1.442695, %v4553_v3  ;;  %v2831_v49 = vpop.f32.mrb[85].mxu0 }
0x31ab   :  { %v4959_v50 = vpop.eup %4958  ;;  %v3006_v51 = vmul.f32 1.442695, %v2831_v49  ;;  %v1637_v49 = vld [vmem:[%s6115_s2 + $0x60] sm:$0xff] }
0x31ac   :  { %4968 = vpow2.f32 %v3008_v48  ;;  %3087 = vperm.xlu0 %4722, %v4957_v46   ;;  %3082 = vperm.xlu1 %4721, %v4959_v50  }
0x31ad   :  { %4970 = vpow2.f32 %v3006_v51  ;;  %v4556_v52 = vpop.f32.mrb[86].mxu0  ;;  %v1638_v51 = vld [vmem:[%s6115_s2 + $0x68] sm:$0xff] }
0x31ae   :  { %v4961_v53 = vpop.eup %4960  ;;  %v3012_v54 = vmul.f32 1.442695, %v4556_v52  ;;  %v2841_v55 = vpop.f32.mrb[87].mxu0 }
0x31af   :  { %v4963_v56 = vpop.eup %4962  ;;  %v3315_v57 = vadd.f32 %v4961_v53, %v4953_v7  ;;  %v3010_v59 = vmul.f32 1.442695, %v2841_v55 }
0x31b0   :  { %v3314_v20 = vadd.f32 %v4963_v56, %v4955_v22  ;;  %4972 = vpow2.f32 %v3012_v54  ;;  %3097 = vperm.xlu0 %4722, %v4961_v53   ;;  %3092 = vperm.xlu1 %4721, %v4963_v56  }
0x31b1   :  { %4974 = vpow2.f32 %v3010_v59  ;;  %v4559_v0 = vpop.f32.mrb[88].mxu0 }
0x31b2   :  { %v4965_v61 = vpop.eup %4964  ;;  %v3016_v62 = vmul.f32 1.442695, %v4559_v0  ;;  %v2851_v2 = vpop.f32.mrb[89].mxu0 }
0x31b3   :  { %v4967_v17 = vpop.eup %4966  ;;  %v3317_v6 = vadd.f32 %v4965_v61, %v4957_v46  ;;  %v3014_v18 = vmul.f32 1.442695, %v2851_v2 }
0x31b4   :  { %v3316_v16 = vadd.f32 %v4967_v17, %v4959_v50  ;;  %4976 = vpow2.f32 %v3016_v62  ;;  %3107 = vperm.xlu1 %4721, %v4965_v61   ;;  %3102 = vperm.xlu0 %4722, %v4967_v17   ;;  %v4687_v50 = vpack.c.bf16 %v1638_v51, %v1637_v49 }
0x31b5   :  { %4978 = vpow2.f32 %v3014_v18  ;;  %v4562_v3 = vpop.f32.mrb[90].mxu0 }
0x31b6   :  { %v4969_v7 = vpop.eup %4968  ;;  %v3020_v48 = vmul.f32 1.442695, %v4562_v3  ;;  %v2861_v22 = vpop.f32.mrb[91].mxu0  ;;  %4688 = vmatprep.subr.bf16.mxu1 %v4687_v50 }
0x31b7   :  { %v4971_v52 = vpop.eup %4970  ;;  %v3323_v46 = vadd.f32 %v4969_v7, %v3315_v57  ;;  %v3018_v53 = vmul.f32 1.442695, %v2861_v22  ;;  %4690 = vmatpush3.bf16.msra.mxu1 %v4687_v50 }
0x31b8   :  { %v3322_v54 = vadd.f32 %v4971_v52, %v3314_v20  ;;  %4980 = vpow2.f32 %v3020_v48  ;;  %3117 = vperm.xlu0 %4722, %v4969_v7   ;;  %3112 = vperm.xlu1 %4721, %v4971_v52  }
0x31b9   :  { %4982 = vpow2.f32 %v3018_v53  ;;  %v4565_v55 = vpop.f32.mrb[92].mxu0 }
0x31ba   :  { %v4973_v56 = vpop.eup %4972  ;;  %v3024_v59 = vmul.f32 1.442695, %v4565_v55  ;;  %v2871_v0 = vpop.f32.mrb[93].mxu0 }
0x31bb   :  { %v4975_v61 = vpop.eup %4974  ;;  %v3325_v62 = vadd.f32 %v4973_v56, %v3317_v6  ;;  %v3022_v2 = vmul.f32 1.442695, %v2871_v0 }
0x31bc   :  { %v3324_v17 = vadd.f32 %v4975_v61, %v3316_v16  ;;  %4984 = vpow2.f32 %v3024_v59  ;;  %3127 = vperm.xlu1 %4721, %v4973_v56  }
0x31bd   :  { %4986 = vpow2.f32 %v3022_v2  ;;  %v4568_v57 = vpop.f32.mrb[94].mxu0 }
0x31be   :  { %v4977_v18 = vpop.eup %4976  ;;  %v3028_v20 = vmul.f32 1.442695, %v4568_v57  ;;  %v2881_v3 = vpop.f32.mrb[95].mxu0 }
0x31bf   :  { %v4979_v7 = vpop.eup %4978  ;;  %v3331_v48 = vadd.f32 %v4977_v18, %v3323_v46  ;;  %v3026_v22 = vmul.f32 1.442695, %v2881_v3  ;;  %3137 = vperm.xlu0 %4722, %v4977_v18  }
0x31c0   :  { %v3330_v49 = vadd.f32 %v4979_v7, %v3322_v54  ;;  %4988 = vpow2.f32 %v3028_v20  ;;  %3122 = vperm.xlu1 %4721, %v4975_v61  }
0x31c1   :  { %4990 = vpow2.f32 %v3026_v22  ;;  %v4571_v51 = vpop.f32.mrb[96].mxu0 }
0x31c2   :  { %v4981_v52 = vpop.eup %4980  ;;  %v3032_v6 = vmul.f32 1.442695, %v4571_v51  ;;  %v2891_v53 = vpop.f32.mrb[97].mxu0 }
0x31c3   :  { %v4983_v16 = vpop.eup %4982  ;;  %v3333_v50 = vadd.f32 %v4981_v52, %v3325_v62  ;;  %v3030_v55 = vmul.f32 1.442695, %v2891_v53 }
0x31c4   :  { %v3332_v56 = vadd.f32 %v4983_v16, %v3324_v17  ;;  %4992 = vpow2.f32 %v3032_v6  ;;  %3132 = vperm.xlu1 %4721, %v4979_v7  }
0x31c5   :  { %4994 = vpow2.f32 %v3030_v55  ;;  %v4574_v59 = vpop.f32.mrb[98].mxu0 }
0x31c6   :  { %v4985_v0 = vpop.eup %4984  ;;  %v3036_v46 = vmul.f32 1.442695, %v4574_v59  ;;  %v2901_v2 = vpop.f32.mrb[99].mxu0 }
0x31c7   :  { %v4987_v57 = vpop.eup %4986  ;;  %v3339_v54 = vadd.f32 %v4985_v0, %v3331_v48  ;;  %v3034_v18 = vmul.f32 1.442695, %v2901_v2  ;;  %3157 = vperm.xlu0 %4722, %v4985_v0  }
0x31c8   :  { %v3338_v61 = vadd.f32 %v4987_v57, %v3330_v49  ;;  %4996 = vpow2.f32 %v3036_v46  ;;  %3147 = vperm.xlu1 %4721, %v4981_v52  }
0x31c9   :  { %4998 = vpow2.f32 %v3034_v18  ;;  %v4577_v20 = vpop.f32.mrb[100].mxu0 }
0x31ca   :  { %v4989_v3 = vpop.eup %4988  ;;  %v3040_v62 = vmul.f32 1.442695, %v4577_v20  ;;  %v2911_v22 = vpop.f32.mrb[101].mxu0 }
0x31cb   :  { %v4991_v17 = vpop.eup %4990  ;;  %v3341_v51 = vadd.f32 %v4989_v3, %v3333_v50  ;;  %v3038_v7 = vmul.f32 1.442695, %v2911_v22  ;;  %3152 = vperm.xlu0 %4722, %v4987_v57  }
0x31cc   :  { %v3340_v6 = vadd.f32 %v4991_v17, %v3332_v56  ;;  %5000 = vpow2.f32 %v3040_v62  ;;  %3142 = vperm.xlu1 %4721, %v4983_v16  }
0x31cd   :  { %5002 = vpow2.f32 %v3038_v7  ;;  %v4580_v53 = vpop.f32.mrb[102].mxu0 }
0x31ce   :  { %v4993_v48 = vpop.eup %4992  ;;  %v3044_v55 = vmul.f32 1.442695, %v4580_v53  ;;  %v2921_v59 = vpop.f32.mrb[103].mxu0 }
0x31cf   :  { %v4995_v49 = vpop.eup %4994  ;;  %v3347_v0 = vadd.f32 %v4993_v48, %v3339_v54  ;;  %v3042_v52 = vmul.f32 1.442695, %v2921_v59  ;;  %3162 = vperm.xlu0 %4722, %v4991_v17  }
0x31d0   :  { %v3346_v46 = vadd.f32 %v4995_v49, %v3338_v61  ;;  %5004 = vpow2.f32 %v3044_v55  ;;  %3167 = vperm.xlu1 %4721, %v4989_v3  }
0x31d1   :  { %5006 = vpow2.f32 %v3042_v52  ;;  %v4583_v2 = vpop.f32.mrb[104].mxu0 }
0x31d2   :  { %v4997_v50 = vpop.eup %4996  ;;  %v3048_v18 = vmul.f32 1.442695, %v4583_v2  ;;  %v2931_v57 = vpop.f32.mrb[105].mxu0 }
0x31d3   :  { %v4999_v56 = vpop.eup %4998  ;;  %v3349_v20 = vadd.f32 %v4997_v50, %v3341_v51  ;;  %v3046_v16 = vmul.f32 1.442695, %v2931_v57  ;;  %3177 = vperm.xlu0 %4722, %v4993_v48  }
0x31d4   :  { %v3348_v62 = vadd.f32 %v4999_v56, %v3340_v6  ;;  %5008 = vpow2.f32 %v3048_v18  ;;  %3187 = vperm.xlu1 %4721, %v4997_v50  }
0x31d5   :  { %5010 = vpow2.f32 %v3046_v16  ;;  %v4586_v22 = vpop.f32.mrb[106].mxu0 }
0x31d6   :  { %v5001_v54 = vpop.eup %5000  ;;  %v3052_v7 = vmul.f32 1.442695, %v4586_v22  ;;  %v2941_v17 = vpop.f32.mrb[107].mxu0 }
0x31d7   :  { %v5003_v61 = vpop.eup %5002  ;;  %v3355_v53 = vadd.f32 %v5001_v54, %v3347_v0  ;;  %v3050_v3 = vmul.f32 1.442695, %v2941_v17  ;;  %3172 = vperm.xlu0 %4722, %v4995_v49  }
0x31d8   :  { %v3354_v55 = vadd.f32 %v5003_v61, %v3346_v46  ;;  %5012 = vpow2.f32 %v3052_v7  ;;  %3182 = vperm.xlu1 %4721, %v4999_v56  }
0x31d9   :  { %5014 = vpow2.f32 %v3050_v3  ;;  %v4589_v59 = vpop.f32.mrb[108].mxu0 }
0x31da   :  { %v5005_v51 = vpop.eup %5004  ;;  %v3056_v52 = vmul.f32 1.442695, %v4589_v59  ;;  %v2951_v48 = vpop.f32.mrb[109].mxu0 }
0x31db   :  { %v5007_v6 = vpop.eup %5006  ;;  %v3357_v2 = vadd.f32 %v5005_v51, %v3349_v20  ;;  %v3054_v50 = vmul.f32 1.442695, %v2951_v48  ;;  %3197 = vperm.xlu0 %4722, %v5001_v54   ;;  %v1639_v20 = vld [vmem:[%s6115_s2 + $0x70] sm:$0xff] }
0x31dc   :  { %v3356_v18 = vadd.f32 %v5007_v6, %v3348_v62  ;;  %5016 = vpow2.f32 %v3056_v52  ;;  %3192 = vperm.xlu1 %4721, %v5003_v61   ;;  %v1640_v62 = vld [vmem:[%s6115_s2 + $0x78] sm:$0xff] }
0x31dd   :  { %5018 = vpow2.f32 %v3054_v50  ;;  %v4592_v57 = vpop.f32.mrb[110].mxu0  ;;  %v4691_v59 = vpack.c.bf16 %v1640_v62, %v1639_v20 }
0x31de   :  { %v5009_v0 = vpop.eup %5008  ;;  %v3060_v16 = vmul.f32 1.442695, %v4592_v57  ;;  %v2961_v49 = vpop.f32.mrb[111].mxu0 }
0x31df   :  { %v5011_v46 = vpop.eup %5010  ;;  %v3058_v22 = vmul.f32 1.442695, %v2961_v49  ;;  %3202 = vperm.xlu0 %4722, %v5007_v6   ;;  %v3363_v56 = vadd.f32 %v5009_v0, %v3355_v53  ;;  %4692 = vmatprep.subr.bf16.mxu1 %v4691_v59 }
0x31e0   :  { %5020 = vpow2.f32 %v3060_v16  ;;  %3207 = vperm.xlu1 %4721, %v5005_v51   ;;  %v3362_v7 = vadd.f32 %v5011_v46, %v3354_v55  ;;  %4694 = vmatpush3.bf16.msra.mxu1 %v4691_v59 }
0x31e1   :  { %5022 = vpow2.f32 %v3058_v22  ;;  %v4595_v17 = vpop.f32.mrb[112].mxu0 }
0x31e2   :  { %v5013_v54 = vpop.eup %5012  ;;  %v3064_v61 = vmul.f32 1.442695, %v4595_v17  ;;  %v2971_v3 = vpop.f32.mrb[113].mxu0 }
0x31e3   :  { %v5015_v52 = vpop.eup %5014  ;;  %v3062_v48 = vmul.f32 1.442695, %v2971_v3  ;;  %3217 = vperm.xlu0 %4722, %v5009_v0   ;;  %v3365_v53 = vadd.f32 %v5013_v54, %v3357_v2 }
0x31e4   :  { %5024 = vpow2.f32 %v3064_v61  ;;  %3227 = vperm.xlu1 %4721, %v5013_v54   ;;  %v3364_v55 = vadd.f32 %v5015_v52, %v3356_v18 }
0x31e5   :  { %5026 = vpow2.f32 %v3062_v48  ;;  %v4598_v51 = vpop.f32.mrb[114].mxu0 }
0x31e6   :  { %v5017_v6 = vpop.eup %5016  ;;  %v3068_v50 = vmul.f32 1.442695, %v4598_v51  ;;  %v2981_v57 = vpop.f32.mrb[115].mxu0 }
0x31e7   :  { %v5019_v16 = vpop.eup %5018  ;;  %v3066_v49 = vmul.f32 1.442695, %v2981_v57  ;;  %3212 = vperm.xlu0 %4722, %v5011_v46   ;;  %v3371_v22 = vadd.f32 %v5017_v6, %v3363_v56 }
0x31e8   :  { %5028 = vpow2.f32 %v3068_v50  ;;  %3222 = vperm.xlu1 %4721, %v5015_v52   ;;  %v3370_v17 = vadd.f32 %v5019_v16, %v3362_v7  ;;  %v1633_v7 = vld [vmem:[%s6115_s2 + $0x40] sm:$0xff]  ;;  %v1634_v52 = vld [vmem:[%s6115_s2 + $0x48] sm:$0xff] }
0x31e9   :  { %5030 = vpow2.f32 %v3066_v49 }
0x31ea   :  { %v5021_v0 = vpop.eup %5020 }
0x31eb   :  { %v5023_v2 = vpop.eup %5022  ;;  %3237 = vperm.xlu0 %4722, %v5017_v6   ;;  %v3373_v20 = vadd.f32 %v5021_v0, %v3365_v53  ;;  %v6019_v53 = vpack.c.bf16 %v1634_v52, %v1633_v7 }
0x31ec   :  { %3232 = vperm.xlu1 %4721, %v5019_v16   ;;  %v3372_v18 = vadd.f32 %v5023_v2, %v3364_v55 }
0x31ed   :  { %4696 = vmatprep.subr.bf16.mxu1 %v6019_v53 }
0x31ee   :  { %v5025_v62 = vpop.eup %5024 }
0x31ef   :  { %v5027_v54 = vpop.eup %5026  ;;  %3257 = vperm.xlu0 %4722, %v5025_v62   ;;  %v3379_v61 = vadd.f32 %v5025_v62, %v3371_v22 }
0x31f0   :  { %v3378_v3 = vadd.f32 %v5027_v54, %v3370_v17 }
0x31f2   :  { %v5029_v59 = vpop.eup %5028  ;;  %3384 = vperm.xlu1 %4721, %v3378_v3  }
0x31f3   :  { %v5031_v48 = vpop.eup %5030  ;;  %3252 = vperm.xlu0 %4722, %v5027_v54   ;;  %v3381_v46 = vadd.f32 %v5029_v59, %v3373_v20 }
0x31f4   :  { %v3380_v56 = vadd.f32 %v5031_v48, %v3372_v18 }
0x31f6   :  { %3394 = vperm.xlu1 %4721, %v3380_v56  }
0x31f7   :  { %3389 = vperm.xlu0 %4722, %v3379_v61  }
0x31fa   :  { %3242 = vperm.xlu1 %4721, %v5023_v2  }
0x31fb   :  { %3399 = vperm.xlu0 %4722, %v3381_v46  }
0x31fe   :  { %3262 = vperm.xlu1 %4721, %v5031_v48  }
0x31ff   :  { %3247 = vperm.xlu0 %4722, %v5021_v0  }
0x3203   :  { %3267 = vperm.xlu0 %4722, %v5029_v59  }
0x3226   :  { %v3078_v55 = vpop.permute.xlu1 %3077 }
0x3227   :  { %v3271_v51 = vmul.f32 %v5881_v63, %v3078_v55  ;;  %v3073_v6 = vpop.permute.xlu0 %3072 }
0x3228   :  { %v3270_v0 = vmul.f32 %v3073_v6, %v5883_v1 }
0x322b   :  { %v3088_v50 = vpop.permute.xlu0 %3087  ;;  %v3083_v57 = vpop.permute.xlu1 %3082 }
0x322c   :  { %v3273_v16 = vmul.f32 %v5885_v23, %v3088_v50  ;;  %v3272_v49 = vmul.f32 %v3083_v57, %v5887_v5 }
0x322f   :  { %v3098_v22 = vpop.permute.xlu0 %3097  ;;  %v3093_v17 = vpop.permute.xlu1 %3092 }
0x3230   :  { %v3275_v2 = vmul.f32 %v5889_v12, %v3098_v22  ;;  %v3274_v20 = vmul.f32 %v3093_v17, %v5891_v14 }
0x3232   :  { %v3311_v18 = vadd.f32 %v3275_v2, %v3271_v51  ;;  %v3310_v62 = vadd.f32 %v3274_v20, %v3270_v0 }
0x3233   :  { %v3108_v54 = vpop.permute.xlu1 %3107  ;;  %v3103_v61 = vpop.permute.xlu0 %3102 }
0x3234   :  { %v3277_v63 = vmul.f32 %v5893_v19, %v3108_v54  ;;  %v3276_v3 = vmul.f32 %v3103_v61, %v5895_v15 }
0x3236   :  { %v3313_v59 = vadd.f32 %v3277_v63, %v3273_v16  ;;  %v3312_v23 = vadd.f32 %v3276_v3, %v3272_v49 }
0x3237   :  { %v3118_v48 = vpop.permute.xlu0 %3117  ;;  %v3113_v5 = vpop.permute.xlu1 %3112 }
0x3238   :  { %v3279_v46 = vmul.f32 %v5897_v24, %v3118_v48  ;;  %v3278_v1 = vmul.f32 %v3113_v5, %v5899_v4 }
0x323a   :  { %v3319_v56 = vadd.f32 %v3311_v18, %v3279_v46  ;;  %v3318_v12 = vadd.f32 %v3310_v62, %v3278_v1 }
0x323b   :  { %v3128_v7 = vpop.permute.xlu1 %3127 }
0x323c   :  { %v3281_v14 = vmul.f32 %v5901_v38, %v3128_v7 }
0x323e   :  { %v3321_v52 = vadd.f32 %v3313_v59, %v3281_v14  ;;  %v3138_v55 = vpop.permute.xlu0 %3137 }
0x323f   :  { %v3283_v51 = vmul.f32 %v5905_v21, %v3138_v55  ;;  %v3123_v19 = vpop.permute.xlu1 %3122 }
0x3240   :  { %v3280_v15 = vmul.f32 %v3123_v19, %v5903_v25 }
0x3241   :  { %v3327_v6 = vadd.f32 %v3319_v56, %v3283_v51 }
0x3242   :  { %v3320_v50 = vadd.f32 %v3312_v23, %v3280_v15 }
0x3243   :  { %v3133_v57 = vpop.permute.xlu1 %3132 }
0x3244   :  { %v3282_v16 = vmul.f32 %v3133_v57, %v5907_v26 }
0x3246   :  { %v3326_v24 = vadd.f32 %v3318_v12, %v3282_v16  ;;  %v3158_v49 = vpop.permute.xlu0 %3157 }
0x3247   :  { %v3287_v4 = vmul.f32 %v5913_v11, %v3158_v49  ;;  %v3148_v22 = vpop.permute.xlu1 %3147 }
0x3248   :  { %v3285_v17 = vmul.f32 %v5909_v9, %v3148_v22 }
0x3249   :  { %v3335_v38 = vadd.f32 %v3327_v6, %v3287_v4 }
0x324a   :  { %v3329_v0 = vadd.f32 %v3321_v52, %v3285_v17  ;;  %v3153_v2 = vpop.permute.xlu0 %3152 }
0x324b   :  { %v3286_v21 = vmul.f32 %v3153_v2, %v5915_v45  ;;  %v3143_v20 = vpop.permute.xlu1 %3142 }
0x324c   :  { %v3284_v25 = vmul.f32 %v3143_v20, %v5911_v58 }
0x324d   :  { %v3334_v18 = vadd.f32 %v3326_v24, %v3286_v21 }
0x324e   :  { %v3328_v62 = vadd.f32 %v3320_v50, %v3284_v25  ;;  %v3163_v54 = vpop.permute.xlu0 %3162 }
0x324f   :  { %v3288_v26 = vmul.f32 %v3163_v54, %v5919_v27  ;;  %v3168_v61 = vpop.permute.xlu1 %3167 }
0x3250   :  { %v3289_v63 = vmul.f32 %v5917_v41, %v3168_v61 }
0x3251   :  { %v3336_v11 = vadd.f32 %v3328_v62, %v3288_v26 }
0x3252   :  { %v3337_v3 = vadd.f32 %v3329_v0, %v3289_v63  ;;  %v3178_v59 = vpop.permute.xlu0 %3177 }
0x3253   :  { %v3291_v9 = vmul.f32 %v5921_v28, %v3178_v59  ;;  %v3188_v23 = vpop.permute.xlu1 %3187 }
0x3254   :  { %v3293_v48 = vmul.f32 %v5925_v10, %v3188_v23 }
0x3255   :  { %v3343_v45 = vadd.f32 %v3335_v38, %v3291_v9 }
0x3256   :  { %v3345_v5 = vadd.f32 %v3337_v3, %v3293_v48  ;;  %v3173_v46 = vpop.permute.xlu0 %3172 }
0x3257   :  { %v3290_v58 = vmul.f32 %v3173_v46, %v5923_v29  ;;  %v3183_v1 = vpop.permute.xlu1 %3182 }
0x3258   :  { %v3292_v56 = vmul.f32 %v3183_v1, %v5927_v30 }
0x3259   :  { %v3342_v27 = vadd.f32 %v3334_v18, %v3290_v58 }
0x325a   :  { %v3344_v12 = vadd.f32 %v3336_v11, %v3292_v56  ;;  %v3198_v7 = vpop.permute.xlu0 %3197 }
0x325b   :  { %v3295_v41 = vmul.f32 %v5929_v31, %v3198_v7  ;;  %v3193_v14 = vpop.permute.xlu1 %3192 }
0x325c   :  { %v3294_v52 = vmul.f32 %v3193_v14, %v5931_v32 }
0x325d   :  { %v3351_v28 = vadd.f32 %v3343_v45, %v3295_v41 }
0x325e   :  { %v3350_v55 = vadd.f32 %v3342_v27, %v3294_v52  ;;  %v3203_v51 = vpop.permute.xlu0 %3202  ;;  %v1645_v27 = vld [vmem:[%s6117_s3] sm:$0xff] }
0x325f   :  { %v3296_v10 = vmul.f32 %v3203_v51, %v5935_v13  ;;  %v3208_v19 = vpop.permute.xlu1 %3207  ;;  %v5059_v51 = vld [vmem:[#allocation3 + $0x18] sm:$0xf] }
0x3260   :  { %v3297_v15 = vmul.f32 %v5933_v33, %v3208_v19 }
0x3261   :  { %v3352_v29 = vadd.f32 %v3344_v12, %v3296_v10  ;;  %v1646_v12 = vld [vmem:[%s6117_s3 + $0x8] sm:$0xff]  ;;  %v1648_v10 = vld [vmem:[%s6117_s3 + $0x18] sm:$0xff] }
0x3262   :  { %v3353_v6 = vadd.f32 %v3345_v5, %v3297_v15  ;;  %v3218_v50 = vpop.permute.xlu0 %3217  ;;  %v4703_v52 = vpack.c.bf16 %v1646_v12, %v1645_v27  ;;  %v3941_v15 = vld [vmem:[%s6117_s3 + $0x30] ss:$0 sm:$0xff] }
0x3263   :  { %v3299_v30 = vmul.f32 %v5937_v34, %v3218_v50  ;;  %v3228_v57 = vpop.permute.xlu1 %3227 }
0x3264   :  { %v3301_v16 = vmul.f32 %v5941_v37, %v3228_v57 }
0x3265   :  { %v3359_v31 = vadd.f32 %v3351_v28, %v3299_v30  ;;  %v5057_v28 = vld [vmem:[#allocation3 + $0x8] sm:$0xff] }
0x3266   :  { %v3361_v24 = vadd.f32 %v3353_v6, %v3301_v16  ;;  %v3213_v49 = vpop.permute.xlu0 %3212 }
0x3267   :  { %v3298_v32 = vmul.f32 %v3213_v49, %v5939_v36  ;;  %v3223_v4 = vpop.permute.xlu1 %3222  ;;  %v3942_v49 = vld [vmem:[%s6117_s3 + $0x20] ss:$0 sm:$0xff] }
0x3268   :  { %v3300_v22 = vmul.f32 %v3223_v4, %v5943_v39 }
0x3269   :  { %v3358_v13 = vadd.f32 %v3350_v55, %v3298_v32  ;;  %v5058_v55 = vld [vmem:[#allocation3 + $0x10] sm:$0xff] }
0x326a   :  { %v3360_v17 = vadd.f32 %v3352_v29, %v3300_v22  ;;  %v3238_v38 = vpop.permute.xlu0 %3237 }
0x326b   :  { %v3303_v33 = vmul.f32 %v5945_v40, %v3238_v38  ;;  %v3233_v0 = vpop.permute.xlu1 %3232 }
0x326c   :  { %v3302_v2 = vmul.f32 %v3233_v0, %v5947_v42 }
0x326d   :  { %v3367_v34 = vadd.f32 %v3359_v31, %v3303_v33 }
0x326e   :  { %v3366_v21 = vadd.f32 %v3358_v13, %v3302_v2  ;;  %v3258_v20 = vpop.permute.xlu0 %3257 }
0x326f   :  { %v3307_v37 = vmul.f32 %v5953_v47, %v3258_v20 }
0x3271   :  { %v3375_v25 = vadd.f32 %v3367_v34, %v3307_v37  ;;  %v3385_v18 = vpop.permute.xlu1 %3384 }
0x3272   :  { %5032 = vrcp.f32 %v3385_v18  ;;  %v3253_v36 = vpop.permute.xlu0 %3252 }
0x3273   :  { %v3306_v62 = vmul.f32 %v3253_v36, %v5955_v35  ;;  %v1635_v35 = vld [vmem:[%s6115_s2 + $0x50] sm:$0xff] }
0x3275   :  { %v3374_v39 = vadd.f32 %v3366_v21, %v3306_v62  ;;  %v3395_v54 = vpop.permute.xlu1 %3394 }
0x3276   :  { %5034 = vrcp.f32 %v3395_v54  ;;  %v3390_v26 = vpop.permute.xlu0 %3389 }
0x3277   :  { %5036 = vrcp.f32 %v3390_v26 }
0x3279   :  { %v3243_v40 = vpop.permute.xlu1 %3242 }
0x327a   :  { %v3304_v61 = vmul.f32 %v3243_v40, %v5951_v60  ;;  %v3400_v42 = vpop.permute.xlu0 %3399  ;;  %v1636_v60 = vld [vmem:[%s6115_s2 + $0x58] sm:$0xff] }
0x327b   :  { %5038 = vrcp.f32 %v3400_v42  ;;  %v4699_v56 = vpack.c.bf16 %v1636_v60, %v1635_v35 }
0x327c   :  { %v5033_v63 = vpop.eup %5032  ;;  %v3368_v11 = vadd.f32 %v3360_v17, %v3304_v61 }
0x327d   :  { %v3403_v3 = vmul.f32 %v5033_v63, %v3374_v39  ;;  %v3263_v47 = vpop.permute.xlu1 %3262 }
0x327e   :  { %v3308_v59 = vmul.f32 %v3263_v47, %v5959_v8  ;;  %v3248_v9 = vpop.permute.xlu0 %3247 }
0x327f   :  { %v3305_v23 = vmul.f32 %v5949_v43, %v3248_v9  ;;  %4607 = vmatprep.mubr.msk.f32.mxu1 %vm67_vm1, %v3403_v3 }
0x3280   :  { %v5035_v48 = vpop.eup %5034  ;;  %v3376_v45 = vadd.f32 %v3368_v11, %v3308_v59 }
0x3281   :  { %v5037_v5 = vpop.eup %5036  ;;  %v3369_v46 = vadd.f32 %v3361_v24, %v3305_v23 }
0x3282   :  { %v3405_v58 = vmul.f32 %v5037_v5, %v3375_v25  ;;  %v3407_v1 = vmul.f32 %v5035_v48, %v3376_v45  ;;  %v3268_v8 = vpop.permute.xlu0 %3267 }
0x3283   :  { %v3309_v43 = vmul.f32 %v5957_v44, %v3268_v8  ;;  %v5056_v44 = vld [vmem:[#allocation3] sm:$0xff] }
0x3284   :  { %4608 = vmatmul.mubr.msk.f32.vlgmr.msra.gmra.mrb[102].mxu1 %vm67_vm1, %v3405_v58 }
0x3285   :  { %v5039_v7 = vpop.eup %5038  ;;  %v3377_v41 = vadd.f32 %v3369_v46, %v3309_v43  ;;  %4610 = vmatprep.mubr.msk.f32.mxu1 %vm67_vm1, %v3407_v1  ;;  %4698 = vmatpush3.bf16.msra.mxu1 %v6019_v53  ;;  %v1647_v53 = vld [vmem:[%s6117_s3 + $0x10] sm:$0xff] }
0x3286   :  { %4700 = vmatprep.subr.bf16.mxu1 %v4699_v56  ;;  %v4707_v19 = vpack.c.bf16 %v1648_v10, %v1647_v53 }
0x3287   :  { %v3409_v14 = vmul.f32 %v5039_v7, %v3377_v41 }
0x3289   :  { %4611 = vmatmul.mubr.msk.f32.gmra.mrb[104].mxu1 %vm67_vm1, %v3409_v14 }
0x328a   :  { %4702 = vmatpush3.bf16.msra.mxu1 %v4699_v56  ;;  %4621 = vmatprep.mubr.msk.f32.mxu1 %vm67_vm1, %v5056_v44 }
0x328b   :  { %4704 = vmatprep.subr.bf16.mxu1 %v4703_v52 }
0x328d   :  { %4622 = vmatmul.mubr.msk.f32.vlgmr.msra.gmra.mrb[102].mxu1 %vm67_vm1, %v5057_v28 }
0x328e   :  { %4624 = vmatprep.mubr.msk.f32.mxu1 %vm67_vm1, %v5058_v55  ;;  %4706 = vmatpush3.bf16.msra.mxu1 %v4703_v52 }
0x328f   :  { %4708 = vmatprep.subr.bf16.mxu1 %v4707_v19 }
0x3291   :  { %4625 = vmatmul.mubr.msk.f32.gmra.mrb[104].mxu1 %vm67_vm1, %v5059_v51 }
0x3292   :  { %4710 = vmatpush3.bf16.msra.mxu1 %v4707_v19 }
0x3360   :  { %v4623_v29 = vpop.f32.mrb[102].mxu1 }
0x3361   :  { %v3573_v6 = vpop.f32.mrb[103].mxu1  ;;  %v3597_v30 = vadd.f32 %v4623_v29, %v3941_v15 }
0x3362   :  { %v3596_v50 = vadd.f32 %v3941_v15, %v3573_v6 }
0x3364   :  { %v4626_v57 = vpop.f32.mrb[104].mxu1  ;;  %4635 = vmatprep.mubr.msk.f32.mxu1 %vm67_vm1, %v3596_v50 }
0x3365   :  { %v3583_v16 = vpop.f32.mrb[105].mxu1  ;;  %4636 = vmatmul.mubr.msk.f32.vlgmr.msra.gmra.mrb[106].mxu1 %vm67_vm1, %v3597_v30  ;;  %v3599_v24 = vadd.f32 %v4626_v57, %v3941_v15 }
0x3366   :  { %v3598_v31 = vadd.f32 %v3941_v15, %v3583_v16 }
0x3368   :  { %4638 = vmatprep.mubr.msk.f32.mxu1 %vm67_vm1, %v3598_v31 }
0x3369   :  { %4639 = vmatmul.mubr.msk.f32.gmra.mrb[108].mxu1 %vm67_vm1, %v3599_v24 }
0x3438   :  { %v4637_v32 = vpop.f32.mrb[106].mxu1 }
0x3439   :  { %v3682_v4 = vpop.f32.mrb[107].mxu1  ;;  %v3688_v33 = vadd.f32 %v4637_v32, %v3942_v49 }
0x343a   :  { %v3683_v22 = vadd.f32 %v3942_v49, %v3682_v4 }
0x343c   :  { %3701 = vmax.xlane.f32.xlu0 %v3683_v22  ;;  %v4640_v13 = vpop.f32.mrb[108].mxu1 }
0x343d   :  { %v3698_v17 = vadd.f32 %v4640_v13, %v3942_v49  ;;  %v3692_v38 = vpop.f32.mrb[109].mxu1 }
0x343e   :  { %v3693_v2 = vadd.f32 %v3942_v49, %v3692_v38 }
0x343f   :  { %v3707_v0 = vsel %vm2028_vm5, %v3698_v17, -inf }
0x3440   :  { %3703 = vmax.xlane.f32.xlu0 %v3688_v33  ;;  %3708 = vmax.xlane.f32.xlu1 %v3707_v0 }
0x3444   :  { %3705 = vmax.xlane.f32.xlu1 %v3693_v2 }
0x34c9   :  { %v3702_v34 = vpop.xlane.xlu0 %3701 }
0x34ca   :  { %v3710_v21 = vsub.f32 %v3683_v22, %v3702_v34 }
0x34cc   :  { %v3714_v20 = vmul.f32 1.442695, %v3710_v21 }
0x34cd   :  { %v3704_v37 = vpop.xlane.xlu0 %3703  ;;  %v3709_v25 = vpop.xlane.xlu1 %3708 }
0x34ce   :  { %5040 = vpow2.f32 %v3714_v20  ;;  %v3711_v18 = vsub.f32 %v3688_v33, %v3704_v37  ;;  %v3713_v36 = vsub.f32 %v3698_v17, %v3709_v25 }
0x34d0   :  { %v3716_v62 = vmul.f32 1.442695, %v3711_v18  ;;  %v3720_v39 = vmul.f32 1.442695, %v3713_v36 }
0x34d1   :  { %v3706_v54 = vpop.xlane.xlu1 %3705 }
0x34d2   :  { %5042 = vpow2.f32 %v3716_v62  ;;  %v3712_v26 = vsub.f32 %v3693_v2, %v3706_v54 }
0x34d3   :  { %5044 = vpow2.f32 %v3720_v39 }
0x34d4   :  { %v3718_v40 = vmul.f32 1.442695, %v3712_v26 }
0x34d6   :  { %5046 = vpow2.f32 %v3718_v40 }
0x34d8   :  { %v5041_v61 = vpop.eup %5040 }
0x34d9   :  { %3722 = vadd.xlane.f32.xlu0 %v5041_v61 }
0x34dc   :  { %v5043_v42 = vpop.eup %5042 }
0x34dd   :  { %v5045_v63 = vpop.eup %5044  ;;  %3724 = vadd.xlane.f32.xlu1 %v5043_v42 }
0x34de   :  { %v3728_v3 = vsel %vm2028_vm5, %v5045_v63, 0.0 }
0x34e0   :  { %v5047_v11 = vpop.eup %5046 }
0x34e1   :  { %3729 = vadd.xlane.f32.xlu1 %v3728_v3  ;;  %3726 = vadd.xlane.f32.xlu0 %v5047_v11 }
0x3566   :  { %v3723_v47 = vpop.xlane.xlu0 %3722 }
0x3567   :  { %5048 = vlog2.f32 %v3723_v47 }
0x356a   :  { %v3725_v59 = vpop.xlane.xlu1 %3724 }
0x356b   :  { %5050 = vlog2.f32 %v3725_v59 }
0x356e   :  { %v3727_v9 = vpop.xlane.xlu0 %3726  ;;  %v3730_v23 = vpop.xlane.xlu1 %3729 }
0x356f   :  { %5052 = vlog2.f32 %v3727_v9 }
0x3570   :  { %5054 = vlog2.f32 %v3730_v23 }
0x3571   :  { %v5049_v35 = vpop.eup %5048 }
0x3572   :  { %v3732_v60 = vmul.f32 0.6931472, %v5049_v35 }
0x3574   :  { %v3739_v48 = vsub.f32 %v3710_v21, %v3732_v60 }
0x3575   :  { %v5051_v45 = vpop.eup %5050 }
0x3576   :  { %3743 = vst [vmem:[%s6118_s5] sm:$0xff] %v3739_v48  ;;  %v3734_v5 = vmul.f32 0.6931472, %v5051_v45 }
0x3578   :  { %v3740_v46 = vsub.f32 %v3711_v18, %v3734_v5 }
0x3579   :  { %v5053_v58 = vpop.eup %5052 }
0x357a   :  { %v5055_v1 = vpop.eup %5054  ;;  %3744 = vst [vmem:[%s6118_s5 + $0x8] sm:$0xff] %v3740_v46  ;;  %v3736_v8 = vmul.f32 0.6931472, %v5053_v58 }
0x357b   :  { %v3738_v56 = vmul.f32 0.6931472, %v5055_v1 }
0x357c   :  { %v3741_v43 = vsub.f32 %v3712_v26, %v3736_v8 }
0x357d   :  { %v3742_v27 = vsub.f32 %v3713_v36, %v3738_v56 }
0x357e   :  { %3745 = vst [vmem:[%s6118_s5 + $0x10] sm:$0xff] %v3741_v43 }
0x357f   :  { %3746 = vst [vmem:[%s6118_s5 + $0x18] sm:$0xf] %v3742_v27 }

</bundles_post_ra>
